<compile_context>
chip_gen: v5e
topology: v5e:2x2
jax: 0.10.0
libtpu: 0.0.40
codegen_flags: <defaults>
</compile_context>

<pallas_src>
import functools

import numpy as np
import jax
import jax.numpy as jnp
from jax.experimental import pallas as pl
from jax.experimental.pallas import tpu as pltpu


def _round_up(x, m):
    return ((x + m - 1) // m) * m


# ----------------------------------------------------------------------------
# Fused kernel.
#   Phase 1 (steps 0..nqt-1):  encode query tile -> resident VMEM scratch.
#   Phase 2 (steps nqt..):     encode context tile, write relu(Q @ C_tile^T)
#                              into that tile's 128-wide score column block.
# ----------------------------------------------------------------------------
def retriever_kernel(xq_ref, xc_ref, w_ref, b_ref, scores_ref, q_emb_ref, *,
                     nqt, seq_len):
    # xq_ref:     (TB_Q*S, E) bf16   flattened query-token tile
    # xc_ref:     (TB_C*S, E) bf16   flattened context-token tile
    # w_ref:      (E, H)      bf16   synthetic encoder weight (resident)
    # b_ref:      (1, H)      f32    synthetic encoder bias   (resident)
    # scores_ref: (NQ_PAD, TB_C) f32 lane-dense score column block
    # q_emb_ref:  (NQ_PAD, H) bf16   query embeddings, persist across steps
    i = pl.program_id(0)
    H = w_ref.shape[1]

    # TODO(synk): the pretrained BERT/DPR transformer stack (and the HF
    # tokenizer) are not reproduced; a single linear+tanh token encoder
    # stands in for them.
    def encode(x_ref):
        rows = x_ref.shape[0]
        tb = rows // seq_len
        # bf16 operands straight to the MXU, f32 accumulation.
        h = jnp.dot(x_ref[...], w_ref[...],
                    preferred_element_type=jnp.float32)       # (rows, H) f32
        h = jnp.tanh(h + b_ref[...])                          # f32 (EUP/VPU)
        # Sum-pool: the 1/S of mean-pooling cancels under L2 normalization.
        pooled = jnp.sum(h.reshape(tb, seq_len, H), axis=1)   # (tb, H) f32
        # normalize(mean, eps=1e-12) == sum / max(||sum||, S*eps).
        sumsq = jnp.sum(pooled * pooled, axis=-1, keepdims=True)
        eps = float(seq_len) * 1e-12
        inv = jax.lax.rsqrt(jnp.maximum(sumsq, eps * eps))
        # Unit-norm embeddings -> bf16 is safe (<=~1e-3 error), halves scratch
        # and cuts the score-matmul MXU passes.
        return (pooled * inv).astype(jnp.bfloat16)            # (tb, H) bf16

    @pl.when(i < nqt)
    def _():
        tbq = xq_ref.shape[0] // seq_len
        start = pl.multiple_of(i * tbq, tbq)
        q_emb_ref[pl.ds(start, tbq), :] = encode(xq_ref)

    @pl.when(i >= nqt)
    def _():
        c_emb = encode(xc_ref)                                # (TB_C, H) bf16
        q = q_emb_ref[...]                                    # (NQ_PAD, H) bf16
        # Q @ C_tile^T: contract on H (no transpose copy), f32 accumulation.
        s = jax.lax.dot_general(q, c_emb, (((1,), (1,)), ((), ())),
                                preferred_element_type=jnp.float32)
        scores_ref[...] = jnp.maximum(s, 0.0)                 # torch.relu


# ----------------------------------------------------------------------------
# Retriever.forward equivalent
# ----------------------------------------------------------------------------
def retriever_forward(query_tokens, context_tokens, w, b):
    # TODO(synk): HuggingFace tokenizer has no Pallas equivalent; inputs are
    # already-embedded token features.
    NQ, S, E = query_tokens.shape
    NC = context_tokens.shape[0]
    H = w.shape[1]

    TB_Q = 32    # MXU M = TB_Q*S = 256 for the query encode dot
    TB_C = 128   # MXU M = 1024 for the context encode dot; lane-dense scores
    NQ_PAD = _round_up(NQ, TB_Q)
    NC_PAD = _round_up(NC, TB_C)
    NQT = NQ_PAD // TB_Q
    NCT = NC_PAD // TB_C

    def prep(x, to):
        # bf16 token features (they hit the MXU in bf16 anyway) + zero pad,
        # flattened to (rows*S, E) so the kernel never reshapes bf16 data.
        # Padded rows produce garbage embeddings/scores; sliced off below.
        x = x.astype(jnp.bfloat16)
        x = jnp.pad(x, ((0, to - x.shape[0]), (0, 0), (0, 0)))
        return x.reshape(to * S, E)

    xq = prep(query_tokens, NQ_PAD)                           # (NQ_PAD*S, E)
    xc = prep(context_tokens, NC_PAD)                         # (NC_PAD*S, E)
    w_bf = w.astype(jnp.bfloat16)                             # cast once here
    b_f32 = b.astype(jnp.float32)

    kernel = functools.partial(retriever_kernel, nqt=NQT, seq_len=S)

    scores_pad = pl.pallas_call(
        kernel,
        out_shape=jax.ShapeDtypeStruct((NQ_PAD, NC_PAD), jnp.float32),
        grid_spec=pltpu.PrefetchScalarGridSpec(
            num_scalar_prefetch=0,
            grid=(NQT + NCT,),
            in_specs=[
                # Query tiles advance during phase 1, then hold the last tile.
                pl.BlockSpec((TB_Q * S, E),
                             lambda i: (jnp.minimum(i, NQT - 1), 0)),
                # Context tiles hold tile 0 during phase 1, then advance.
                pl.BlockSpec((TB_C * S, E),
                             lambda i: (jnp.maximum(i - NQT, 0), 0)),
                pl.BlockSpec((E, H), lambda i: (0, 0)),       # resident weight
                pl.BlockSpec((1, H), lambda i: (0, 0)),       # resident bias
            ],
            # Lane-dense 128-wide score column block per context tile.
            out_specs=pl.BlockSpec((NQ_PAD, TB_C),
                                   lambda i: (0, jnp.maximum(i - NQT, 0))),
            scratch_shapes=[pltpu.VMEM((NQ_PAD, H), jnp.bfloat16)],
        ),
        compiler_params=pltpu.CompilerParams(
            # Phase 2 reads scratch written by every phase-1 step.
            dimension_semantics=("arbitrary",),
            vmem_limit_bytes=48 * 1024 * 1024,
        ),
    )(xq, xc, w_bf, b_f32)

    scores = scores_pad[:NQ, :NC]
    # torch's .squeeze(0): only drops dim 0 when it has size 1.
    return jnp.squeeze(scores, axis=0) if NQ == 1 else scores


if __name__ == "__main__":
    # Small deterministic shapes: 2 queries, 8 contexts, seq=8, embed=hidden=128
    # (128 keeps every matmul / store lane-dense on TPU).
    NQ, NC, S, E, H = 2, 8, 8, 128, 128
    key = jax.random.PRNGKey(0)
    k1, k2, k3, k4 = jax.random.split(key, 4)

    query_tokens = jax.random.normal(k1, (NQ, S, E), dtype=jnp.float32)
    context_tokens = jax.random.normal(k2, (NC, S, E), dtype=jnp.float32)
    w = jax.random.normal(k3, (E, H), dtype=jnp.float32) * 0.05
    b = jax.random.normal(k4, (1, H), dtype=jnp.float32) * 0.01

    fwd = jax.jit(retriever_forward)
    scores = jax.block_until_ready(fwd(query_tokens, context_tokens, w, b))
    assert scores.shape == (NQ, NC)

    # Pure-JAX reference with the same bf16-at-the-MXU math as the kernel.
    def ref_encode(x):
        B = x.shape[0]
        x2 = x.astype(jnp.bfloat16).reshape(B * S, E)
        h = jnp.dot(x2, w.astype(jnp.bfloat16),
                    preferred_element_type=jnp.float32)
        h = jnp.tanh(h + b).reshape(B, S, H)
        p = jnp.sum(h, axis=1)
        ss = jnp.sum(p * p, axis=-1, keepdims=True)
        eps = float(S) * 1e-12
        return (p * jax.lax.rsqrt(jnp.maximum(ss, eps * eps))).astype(jnp.bfloat16)

    qe, ce = ref_encode(query_tokens), ref_encode(context_tokens)
    ref = jnp.maximum(
        jax.lax.dot_general(qe, ce, (((1,), (1,)), ((), ())),
                            preferred_element_type=jnp.float32), 0.0)
    np.testing.assert_allclose(np.asarray(scores), np.asarray(ref),
                               rtol=2e-3, atol=2e-3)

    print("KERNEL_OK")
</pallas_src>

<mosaic_0001>
module attributes {stable_mosaic.version = 11 : i64} {
  func.func @retriever_kernel(%arg0: i32, %arg1: memref<256x128xbf16, #tpu.memory_space<vmem>>, %arg2: memref<1024x128xbf16, #tpu.memory_space<vmem>>, %arg3: memref<128x128xbf16, #tpu.memory_space<vmem>>, %arg4: memref<1x128xf32, #tpu.memory_space<vmem>>, %arg5: memref<32x128xf32, #tpu.memory_space<vmem>>, %arg6: memref<32x128xbf16, #tpu.memory_space<vmem>>) attributes {dimension_semantics = [#tpu.dimension_semantics<arbitrary>], iteration_bounds = array<i64: 2>, scalar_prefetch = 0 : i64, scratch_operands = 1 : i64, tpu.core_type = #tpu.core_type<tc>, window_params = [{transform_indices = @transform_0, window_bounds = array<i64: 256, 128>}, {transform_indices = @transform_1, window_bounds = array<i64: 1024, 128>}, {pipeline_mode = #tpu.pipeline_mode<synchronous>, transform_indices = @transform_2, window_bounds = array<i64: 128, 128>}, {pipeline_mode = #tpu.pipeline_mode<synchronous>, transform_indices = @transform_3, window_bounds = array<i64: 1, 128>}, {transform_indices = @transform_4, window_bounds = array<i64: 32, 128>}]} {
    %c1_i32 = arith.constant 1 : i32
    %0 = arith.cmpi slt, %arg0, %c1_i32 : i32
    %1 = arith.extui %0 : i1 to i32
    %c0_i32 = arith.constant 0 : i32
    %2 = arith.cmpi ne, %1, %c0_i32 : i32
    scf.if %2 {
      %c32_i32 = arith.constant 32 : i32
      %6 = arith.muli %arg0, %c32_i32 : i32
      %7 = tpu.assume_multiple %6, 32 : i32
      %c0 = arith.constant 0 : index
      %c0_2 = arith.constant 0 : index
      %8 = vector.load %arg1[%c0, %c0_2] : memref<256x128xbf16, #tpu.memory_space<vmem>>, vector<256x128xbf16>
      %c0_3 = arith.constant 0 : index
      %c0_4 = arith.constant 0 : index
      %9 = vector.load %arg3[%c0_3, %c0_4] : memref<128x128xbf16, #tpu.memory_space<vmem>>, vector<128x128xbf16>
      %cst = arith.constant dense<0.000000e+00> : vector<256x128xf32>
      %10 = tpu.matmul %8, %9, %cst {dimension_numbers = #tpu.dot_dimension_numbers<[1], [0], [0], [1], [0, 0, 1, 1], [], []>} : vector<256x128xbf16>, vector<128x128xbf16>, vector<256x128xf32> -> vector<256x128xf32>
      %c0_5 = arith.constant 0 : index
      %c0_6 = arith.constant 0 : index
      %11 = vector.load %arg4[%c0_5, %c0_6] : memref<1x128xf32, #tpu.memory_space<vmem>>, vector<1x128xf32>
      %12 = vector.broadcast %11 : vector<1x128xf32> to vector<256x128xf32>
      %13 = arith.addf %10, %12 : vector<256x128xf32>
      %14 = math.tanh %13 : vector<256x128xf32>
      %15 = vector.shape_cast %14 : vector<256x128xf32> to vector<32x8x128xf32>
      %cst_7 = arith.constant dense<0.000000e+00> : vector<32x128xf32>
      %16 = vector.multi_reduction <add>, %15, %cst_7 [1] : vector<32x8x128xf32> to vector<32x128xf32>
      %17 = arith.mulf %16, %16 : vector<32x128xf32>
      %cst_8 = arith.constant dense<0.000000e+00> : vector<32xf32>
      %18 = vector.multi_reduction <add>, %17, %cst_8 [1] : vector<32x128xf32> to vector<32xf32>
      %19 = vector.shape_cast %18 : vector<32xf32> to vector<32x1xf32>
      %cst_9 = arith.constant 6.400000e-23 : f32
      %20 = vector.broadcast %cst_9 : f32 to vector<32x1xf32>
      %21 = arith.maximumf %19, %20 : vector<32x1xf32>
      %22 = math.rsqrt %21 : vector<32x1xf32>
      %23 = vector.broadcast %22 : vector<32x1xf32> to vector<32x128xf32>
      %24 = arith.mulf %16, %23 : vector<32x128xf32>
      %25 = arith.truncf %24 : vector<32x128xf32> to vector<32x128xbf16>
      %26 = arith.index_cast %7 : i32 to index
      %c0_10 = arith.constant 0 : index
      %27 = vector.load %arg6[%26, %c0_10] : memref<32x128xbf16, #tpu.memory_space<vmem>>, vector<32x128xbf16>
      tpu.vector_store %arg6[%26, %c0_10], %25 {strides = array<i32>} : memref<32x128xbf16, #tpu.memory_space<vmem>>, vector<32x128xbf16>,
    } else {
    }
    %c1_i32_0 = arith.constant 1 : i32
    %3 = arith.cmpi sge, %arg0, %c1_i32_0 : i32
    %4 = arith.extui %3 : i1 to i32
    %c0_i32_1 = arith.constant 0 : i32
    %5 = arith.cmpi ne, %4, %c0_i32_1 : i32
    scf.if %5 {
      %c0 = arith.constant 0 : index
      %c0_2 = arith.constant 0 : index
      %6 = vector.load %arg2[%c0, %c0_2] : memref<1024x128xbf16, #tpu.memory_space<vmem>>, vector<1024x128xbf16>
      %c0_3 = arith.constant 0 : index
      %c0_4 = arith.constant 0 : index
      %7 = vector.load %arg3[%c0_3, %c0_4] : memref<128x128xbf16, #tpu.memory_space<vmem>>, vector<128x128xbf16>
      %cst = arith.constant dense<0.000000e+00> : vector<1024x128xf32>
      %8 = tpu.matmul %6, %7, %cst {dimension_numbers = #tpu.dot_dimension_numbers<[1], [0], [0], [1], [0, 0, 1, 1], [], []>} : vector<1024x128xbf16>, vector<128x128xbf16>, vector<1024x128xf32> -> vector<1024x128xf32>
      %c0_5 = arith.constant 0 : index
      %c0_6 = arith.constant 0 : index
      %9 = vector.load %arg4[%c0_5, %c0_6] : memref<1x128xf32, #tpu.memory_space<vmem>>, vector<1x128xf32>
      %10 = vector.broadcast %9 : vector<1x128xf32> to vector<1024x128xf32>
      %11 = arith.addf %8, %10 : vector<1024x128xf32>
      %12 = math.tanh %11 : vector<1024x128xf32>
      %13 = vector.shape_cast %12 : vector<1024x128xf32> to vector<128x8x128xf32>
      %cst_7 = arith.constant dense<0.000000e+00> : vector<128x128xf32>
      %14 = vector.multi_reduction <add>, %13, %cst_7 [1] : vector<128x8x128xf32> to vector<128x128xf32>
      %15 = arith.mulf %14, %14 : vector<128x128xf32>
      %cst_8 = arith.constant dense<0.000000e+00> : vector<128xf32>
      %16 = vector.multi_reduction <add>, %15, %cst_8 [1] : vector<128x128xf32> to vector<128xf32>
      %17 = vector.shape_cast %16 : vector<128xf32> to vector<128x1xf32>
      %cst_9 = arith.constant 6.400000e-23 : f32
      %18 = vector.broadcast %cst_9 : f32 to vector<128x1xf32>
      %19 = arith.maximumf %17, %18 : vector<128x1xf32>
      %20 = math.rsqrt %19 : vector<128x1xf32>
      %21 = vector.broadcast %20 : vector<128x1xf32> to vector<128x128xf32>
      %22 = arith.mulf %14, %21 : vector<128x128xf32>
      %23 = arith.truncf %22 : vector<128x128xf32> to vector<128x128xbf16>
      %c0_10 = arith.constant 0 : index
      %c0_11 = arith.constant 0 : index
      %24 = vector.load %arg6[%c0_10, %c0_11] : memref<32x128xbf16, #tpu.memory_space<vmem>>, vector<32x128xbf16>
      %cst_12 = arith.constant dense<0.000000e+00> : vector<32x128xf32>
      %25 = tpu.matmul %24, %23, %cst_12 {dimension_numbers = #tpu.dot_dimension_numbers<[1], [1], [0], [0], [0, 0, 1, 0], [], []>} : vector<32x128xbf16>, vector<128x128xbf16>, vector<32x128xf32> -> vector<32x128xf32>
      %cst_13 = arith.constant 0.000000e+00 : f32
      %26 = vector.broadcast %cst_13 : f32 to vector<32x128xf32>
      %27 = arith.maximumf %25, %26 : vector<32x128xf32>
      %c0_14 = arith.constant 0 : index
      %c0_15 = arith.constant 0 : index
      %28 = vector.load %arg5[%c0_14, %c0_15] : memref<32x128xf32, #tpu.memory_space<vmem>>, vector<32x128xf32>
      tpu.vector_store %arg5[%c0_14, %c0_15], %27 {strides = array<i32>} : memref<32x128xf32, #tpu.memory_space<vmem>>, vector<32x128xf32>,
    } else {
    }
    return
  }
  func.func @transform_0(%arg0: i32) -> (i32, i32) {
    %c0_i32 = arith.constant 0 : i32
    %0 = arith.minsi %arg0, %c0_i32 : i32
    %c0_i32_0 = arith.constant 0 : i32
    %c0_i32_1 = arith.constant 0 : i32
    return %0, %c0_i32_0 : i32, i32
  }
  func.func @transform_1(%arg0: i32) -> (i32, i32) {
    %c1_i32 = arith.constant 1 : i32
    %0 = arith.subi %arg0, %c1_i32 : i32
    %c0_i32 = arith.constant 0 : i32
    %1 = arith.maxsi %0, %c0_i32 : i32
    %c0_i32_0 = arith.constant 0 : i32
    %c0_i32_1 = arith.constant 0 : i32
    return %1, %c0_i32_0 : i32, i32
  }
  func.func @transform_2(%arg0: i32) -> (i32, i32) {
    %c0_i32 = arith.constant 0 : i32
    %c0_i32_0 = arith.constant 0 : i32
    %c0_i32_1 = arith.constant 0 : i32
    return %c0_i32, %c0_i32_0 : i32, i32
  }
  func.func @transform_3(%arg0: i32) -> (i32, i32) {
    %c0_i32 = arith.constant 0 : i32
    %c0_i32_0 = arith.constant 0 : i32
    %c0_i32_1 = arith.constant 0 : i32
    return %c0_i32, %c0_i32_0 : i32, i32
  }
  func.func @transform_4(%arg0: i32) -> (i32, i32) {
    %c1_i32 = arith.constant 1 : i32
    %0 = arith.subi %arg0, %c1_i32 : i32
    %c0_i32 = arith.constant 0 : i32
    %1 = arith.maxsi %0, %c0_i32 : i32
    %c0_i32_0 = arith.constant 0 : i32
    %c0_i32_1 = arith.constant 0 : i32
    return %c0_i32_0, %1 : i32, i32
  }
}

</mosaic_0001>

<bundles_post_ra>
// kernel: retriever_forward.1
= control target key start
LH: loop header
LB: loop body
LE: loop exit
PB: predicated region body
PF: predicated region fallthrough
CT: control target
= control target key end

     0   :  { %s5708_s15 = smov 0   ;;  %s8069_s0 = inlined_call_operand.vmem [shape: bf16[256,128], index: 0, kind: input, shape index: {}]   ;;  %s8070_s1 = inlined_call_operand.vmem [shape: bf16[1024,128], index: 1, kind: input, shape index: {}]   ;;  %s8071_s2 = inlined_call_operand.vmem [shape: bf16[128,128], index: 2, kind: input, shape index: {}]   ;;  %s8072_s3 = inlined_call_operand.vmem [shape: f32[1,128], index: 3, kind: input, shape index: {}]   ;;  %s8073_s4 = inlined_call_operand.vmem [shape: f32[32,128], index: 4, kind: output, shape index: {}]  }
   0x1 LB: > { %s5714_s16 = sadd.s32 4294967295, %s5681_s15   ;;  %p4746_p0 = scmp.ge.s32.totalorder %s5681_s15, 1  ;;  %s5681_s15 = sphi %s5708_s15, %s14_s15  }
   0x2   : > { %p200_p1 = scmp.lt.s32.totalorder %s5681_s15, 3 }
   0x4   : > { %p201_p2 = pnand %p4746_p0, %p200_p1 }
   0x5   : > { %p238_p3 = scmp.lt.s32.totalorder (!%p201_p2), %s5714_s16, 0  ;;  %s4749_s17 = sadd.s32 (!%p201_p2), 4294967295, %s5714_s16 }
   0x6   : > { %204 = sbr.rel (%p201_p2) target bundleno = 1434 (0x59a), region = 36  ;;  %p249_p4 = scmp.gt.s32.totalorder (!%p201_p2), %s4749_s17, 0 }
   0x7   : > { %p4759_p7 = scmp.ge.s32.totalorder (!%p201_p2), %s5714_s16, 1 }
   0xb   : > { %s239_s18 = scalar_select %p238_p3, %s5714_s16, 0 }
   0xc   : > { %s8555_s17 = smov (!%p249_p4, %s4749_s17), 0 }
   0xd   : > { %s4747_s19 = sshll.u32 %s239_s18, 5  ;;  %s4750_s20 = sshll.u32 %s8555_s17, 7 }
   0xe   : > { %p241_p5 = scmp.lt.s32.totalorder %s4747_s19, 31  ;;  %p252_p6 = scmp.lt.s32.totalorder %s4750_s20, 127 }
   0xf   : > { %273 = sbr.rel (%p4759_p7) target bundleno = 460 (0x1cc), region = 40 }
  0x10   : > { %s8557_s19 = smov (!%p241_p5, %s4747_s19), 31  ;;  %s8559_s20 = smov (!%p252_p6, %s4750_s20), 127 }
  0x11   : > { %s4748_s21 = sshll.u32 %s8557_s19, 2  ;;  %s4751_s25 = sshll.u32 %s8559_s20, 2 }
  0x12   : > { %s5724_s24 = scalar_lea.vmem %s8069_s0, %s4748_s21  ;;  %s5729_s28 = scalar_lea.vmem %s8070_s1, %s4751_s25 }
  0x14   : > { %v5180_v0 = vld [vmem:[%s8071_s2 + $0x38] sm:$0xff]  ;;  %v5179_v1 = vld [vmem:[%s8071_s2 + $0x30] sm:$0xff]  ;;  %v5178_v2 = vld [vmem:[%s8071_s2 + $0x28] sm:$0xff]  ;;  %vm848_vm0 = vcmask 1041409   ;;  %vm850_vm1 = vcmask 1042434   ;;  %vm852_vm2 = vcmask 1043459  }
  0x15   : > { %471 = vmatpush.bf16.msra.mxu0 %v5180_v0  ;;  %5255 = vmatpush.bf16.msra.mxu1 %v5180_v0  ;;  %v5177_v3 = vld [vmem:[%s8071_s2 + $0x20] sm:$0xff]  ;;  %v5176_v4 = vld [vmem:[%s8071_s2 + $0x18] sm:$0xff]  ;;  %v5175_v5 = vld [vmem:[%s8071_s2 + $0x10] sm:$0xff]  ;;  %vm854_vm3 = vcmask 1044484   ;;  %vm856_vm4 = vcmask 1045509   ;;  %vm858_vm5 = vcmask 1046534  }
  0x16   : > { %5256 = vmatpush.bf16.msra.mxu2 %v5180_v0  ;;  %5257 = vmatpush.bf16.msra.mxu3 %v5180_v0  ;;  %v5174_v6 = vld [vmem:[%s8071_s2 + $0x8] sm:$0xff]  ;;  %v5173_v7 = vld [vmem:[%s8071_s2] sm:$0xff]  ;;  %v5159_v16 = vld [vmem:[%s5724_s24 + $0x10] sm:$0xff]  ;;  %vm860_vm6 = vcmask 1047559   ;;  %s4760_s23 = sshll.u32 %s5714_s16, 5 }
  0x17   : > { %v5157_v8 = vld [vmem:[%s5724_s24] sm:$0xff]  ;;  %v5158_v12 = vld [vmem:[%s5724_s24 + $0x8] sm:$0xff]  ;;  %v5163_v17 = vld [vmem:[%s5724_s24 + $0x30] sm:$0xff] }
  0x18   : > { %v5161_v9 = vld [vmem:[%s5724_s24 + $0x20] sm:$0xff]  ;;  %v5162_v13 = vld [vmem:[%s5724_s24 + $0x28] sm:$0xff]  ;;  %v5167_v18 = vld [vmem:[%s5724_s24 + $0x50] sm:$0xff] }
  0x19   : > { %472 = vmatpush.bf16.msra.mxu0 %v5179_v1  ;;  %5258 = vmatpush.bf16.msra.mxu1 %v5179_v1  ;;  %v5165_v10 = vld [vmem:[%s5724_s24 + $0x40] sm:$0xff]  ;;  %v5166_v14 = vld [vmem:[%s5724_s24 + $0x48] sm:$0xff]  ;;  %v5171_v19 = vld [vmem:[%s5724_s24 + $0x70] sm:$0xff] }
  0x1a   : > { %5259 = vmatpush.bf16.msra.mxu2 %v5179_v1  ;;  %5260 = vmatpush.bf16.msra.mxu3 %v5179_v1  ;;  %v5169_v11 = vld [vmem:[%s5724_s24 + $0x60] sm:$0xff]  ;;  %v5170_v15 = vld [vmem:[%s5724_s24 + $0x68] sm:$0xff]  ;;  %v5160_v20 = vld [vmem:[%s5724_s24 + $0x18] sm:$0xff] }
  0x1b   : > { %v5164_v21 = vld [vmem:[%s5724_s24 + $0x38] sm:$0xff]  ;;  %v5775_v24 = vld [vmem:[%s8072_s3] ss:$0 sm:$0xff] }
  0x1c   : > { %v5168_v22 = vld [vmem:[%s5724_s24 + $0x58] sm:$0xff] }
  0x1d   : > { %473 = vmatpush.bf16.msra.mxu0 %v5178_v2  ;;  %5261 = vmatpush.bf16.msra.mxu1 %v5178_v2  ;;  %v5172_v23 = vld [vmem:[%s5724_s24 + $0x78] sm:$0xff]  ;;  %s6027_s24 = sshra.s32 %s4760_s23, 3 }
  0x1e   : > { %5262 = vmatpush.bf16.msra.mxu2 %v5178_v2  ;;  %5263 = vmatpush.bf16.msra.mxu3 %v5178_v2  ;;  %s4857_s25 = sshll.u32 %s6027_s24, 2 }
  0x1f   : > { %s6055_s26 = scalar_lea.vmem [#allocation2], %s4857_s25 }
  0x21   : > { %474 = vmatpush.bf16.msra.mxu0 %v5177_v3  ;;  %5264 = vmatpush.bf16.msra.mxu1 %v5177_v3 }
  0x22   : > { %5265 = vmatpush.bf16.msra.mxu2 %v5177_v3  ;;  %5266 = vmatpush.bf16.msra.mxu3 %v5177_v3 }
  0x25   : > { %475 = vmatpush.bf16.msra.mxu0 %v5176_v4  ;;  %5267 = vmatpush.bf16.msra.mxu1 %v5176_v4 }
  0x26   : > { %5268 = vmatpush.bf16.msra.mxu2 %v5176_v4  ;;  %5269 = vmatpush.bf16.msra.mxu3 %v5176_v4 }
  0x29   : > { %476 = vmatpush.bf16.msra.mxu0 %v5175_v5  ;;  %5270 = vmatpush.bf16.msra.mxu1 %v5175_v5 }
  0x2a   : > { %5271 = vmatpush.bf16.msra.mxu2 %v5175_v5  ;;  %5272 = vmatpush.bf16.msra.mxu3 %v5175_v5 }
  0x2d   : > { %477 = vmatpush.bf16.msra.mxu0 %v5174_v6  ;;  %5273 = vmatpush.bf16.msra.mxu1 %v5174_v6 }
  0x2e   : > { %5274 = vmatpush.bf16.msra.mxu2 %v5174_v6  ;;  %5275 = vmatpush.bf16.msra.mxu3 %v5174_v6 }
  0x31   : > { %478 = vmatpush.bf16.msra.mxu0 %v5173_v7  ;;  %5276 = vmatpush.bf16.msra.mxu1 %v5173_v7 }
  0x32   : > { %5277 = vmatpush.bf16.msra.mxu2 %v5173_v7  ;;  %5278 = vmatpush.bf16.msra.mxu3 %v5173_v7 }
  0x34   : > { %479 = vmatmul.bf16.vlgmr.msra.gmra.mxu0 %v5157_v8  ;;  %499 = vmatmul.bf16.vlgmr.msra.gmra.mxu1 %v5161_v9 }
  0x35   : > { %519 = vmatmul.bf16.vlgmr.msra.gmra.mxu2 %v5165_v10  ;;  %539 = vmatmul.bf16.vlgmr.msra.gmra.mxu3 %v5169_v11 }
  0x44   : > { %484 = vmatmul.bf16.gmra.mxu0 %v5158_v12  ;;  %504 = vmatmul.bf16.gmra.mxu1 %v5162_v13 }
  0x45   : > { %524 = vmatmul.bf16.gmra.mxu2 %v5166_v14  ;;  %544 = vmatmul.bf16.gmra.mxu3 %v5170_v15 }
  0x54   : > { %489 = vmatmul.bf16.gmra.mxu0 %v5159_v16  ;;  %509 = vmatmul.bf16.gmra.mxu1 %v5163_v17 }
  0x55   : > { %529 = vmatmul.bf16.gmra.mxu2 %v5167_v18  ;;  %549 = vmatmul.bf16.gmra.mxu3 %v5171_v19 }
  0x64   : > { %494 = vmatmul.bf16.gmra.mxu0 %v5160_v20  ;;  %514 = vmatmul.bf16.gmra.mxu1 %v5164_v21 }
  0x65   : > { %534 = vmatmul.bf16.gmra.mxu2 %v5168_v22  ;;  %554 = vmatmul.bf16.gmra.mxu3 %v5172_v23 }
  0xb1   : > { %v480_v25 = vpop.f32.mrf.mxu0  ;;  %v500_v26 = vpop.f32.mrf.mxu1 }
  0xb2   : > { %v481_v27 = vadd.f32 %v5775_v24, %v480_v25  ;;  %v501_v28 = vadd.f32 %v5775_v24, %v500_v26 }
  0xb4   : > { %5312 = vtanh.f32 %v481_v27 }
  0xb5   : > { %5314 = vtanh.f32 %v501_v28 }
  0xb8   : > { %v520_v29 = vpop.f32.mrf.mxu2  ;;  %v540_v30 = vpop.f32.mrf.mxu3 }
  0xb9   : > { %v521_v31 = vadd.f32 %v5775_v24, %v520_v29  ;;  %v541_v32 = vadd.f32 %v5775_v24, %v540_v30  ;;  %v482_v33 = vpop.f32.mrf.mxu0  ;;  %v502_v34 = vpop.f32.mrf.mxu1 }
  0xba   : > { %v5313_v35 = vpop.eup %5312  ;;  %v483_v36 = vadd.f32 %v5775_v24, %v482_v33  ;;  %v503_v37 = vadd.f32 %v5775_v24, %v502_v34 }
  0xbb   : > { %v5315_v38 = vpop.eup %5314  ;;  %v592_v39 = vrot.slane %v5313_v35, 4  ;;  %5316 = vtanh.f32 %v521_v31 }
  0xbc   : > { %v640_v40 = vrot.slane %v5315_v38, 4  ;;  %5318 = vtanh.f32 %v541_v32 }
  0xbd   : > { %v593_v41 = vadd.f32 %v5313_v35, %v592_v39  ;;  %5320 = vtanh.f32 %v483_v36 }
  0xbe   : > { %v641_v42 = vadd.f32 %v5315_v38, %v640_v40  ;;  %5322 = vtanh.f32 %v503_v37 }
  0xbf   : > { %v594_v43 = vrot.slane %v593_v41, 2 }
  0xc0   : > { %v642_v44 = vrot.slane %v641_v42, 2  ;;  %v522_v45 = vpop.f32.mrf.mxu2  ;;  %v542_v46 = vpop.f32.mrf.mxu3 }
  0xc1   : > { %v5317_v47 = vpop.eup %5316  ;;  %v595_v48 = vadd.f32 %v594_v43, %v593_v41  ;;  %v523_v49 = vadd.f32 %v5775_v24, %v522_v45  ;;  %v543_v50 = vadd.f32 %v5775_v24, %v542_v46  ;;  %v485_v51 = vpop.f32.mrf.mxu0 }
  0xc2   : > { %v505_v52 = vpop.f32.mrf.mxu1  ;;  %v5319_v53 = vpop.eup %5318  ;;  %v643_v54 = vadd.f32 %v642_v44, %v641_v42  ;;  %v688_v55 = vrot.slane %v5317_v47, 4  ;;  %v486_v56 = vadd.f32 %v5775_v24, %v485_v51 }
  0xc3   : > { %v506_v57 = vadd.f32 %v5775_v24, %v505_v52  ;;  %v5321_v58 = vpop.eup %5320  ;;  %v736_v59 = vrot.slane %v5319_v53, 4  ;;  %5324 = vtanh.f32 %v523_v49  ;;  %v596_v63 = vrot.slane %v595_v48, 1 }
  0xc4   : > { %v5323_v60 = vpop.eup %5322  ;;  %v689_v61 = vadd.f32 %v5317_v47, %v688_v55  ;;  %v598_v62 = vrot.slane %v5321_v58, 4  ;;  %5326 = vtanh.f32 %v543_v50  ;;  %v644_v2 = vrot.slane %v643_v54, 1 }
  0xc5   : > { %v737_v0 = vadd.f32 %v5319_v53, %v736_v59  ;;  %v646_v1 = vrot.slane %v5323_v60, 4  ;;  %5328 = vtanh.f32 %v486_v56  ;;  %v5788_v18 = vadd.f32 %v596_v63, %v595_v48 }
  0xc6   : > { %v690_v3 = vrot.slane %v689_v61, 2  ;;  %v599_v4 = vadd.f32 %v5321_v58, %v598_v62  ;;  %5330 = vtanh.f32 %v506_v57  ;;  %v5790_v19 = vadd.f32 %v644_v2, %v643_v54 }
  0xc7   : > { %v738_v5 = vrot.slane %v737_v0, 2  ;;  %v647_v6 = vadd.f32 %v5323_v60, %v646_v1  ;;  %v5796_v36 = vmul.f32 %v5788_v18, %v5788_v18 }
  0xc8   : > { %v691_v7 = vadd.f32 %v690_v3, %v689_v61  ;;  %v600_v8 = vrot.slane %v599_v4, 2  ;;  %v525_v9 = vpop.f32.mrf.mxu2  ;;  %v545_v10 = vpop.f32.mrf.mxu3  ;;  %v5800_v40 = vmul.f32 %v5790_v19, %v5790_v19 }
  0xc9   : > { %v5325_v11 = vpop.eup %5324  ;;  %v739_v12 = vadd.f32 %v738_v5, %v737_v0  ;;  %v648_v13 = vrot.slane %v647_v6, 2  ;;  %v526_v14 = vadd.f32 %v5775_v24, %v525_v9  ;;  %v487_v15 = vpop.f32.mrf.mxu0  ;;  %v546_v31 = vadd.f32 %v5775_v24, %v545_v10 }
  0xca   : > { %v507_v16 = vpop.f32.mrf.mxu1  ;;  %v5327_v17 = vpop.eup %5326  ;;  %v601_v20 = vadd.f32 %v600_v8, %v599_v4  ;;  %v694_v21 = vrot.slane %v5325_v11, 4  ;;  %v692_v23 = vrot.slane %v691_v7, 1  ;;  %v488_v35 = vadd.f32 %v5775_v24, %v487_v15 }
  0xcb   : > { %v5329_v22 = vpop.eup %5328  ;;  %v649_v25 = vadd.f32 %v648_v13, %v647_v6  ;;  %v742_v26 = vrot.slane %v5327_v17, 4  ;;  %5332 = vtanh.f32 %v526_v14  ;;  %v740_v28 = vrot.slane %v739_v12, 1 }
  0xcc   : > { %v5331_v27 = vpop.eup %5330  ;;  %v695_v29 = vadd.f32 %v5325_v11, %v694_v21  ;;  %v604_v30 = vrot.slane %v5329_v22, 4  ;;  %v602_v32 = vrot.slane %v601_v20, 1  ;;  %v5802_v41 = vadd.f32 %v692_v23, %v691_v7 }
  0xcd   : > { %v743_v33 = vadd.f32 %v5327_v17, %v742_v26  ;;  %v652_v34 = vrot.slane %v5331_v27, 4  ;;  %v650_v37 = vrot.slane %v649_v25, 1  ;;  %v5804_v44 = vadd.f32 %v740_v28, %v739_v12 }
  0xce   : > { %v696_v38 = vrot.slane %v695_v29, 2  ;;  %v605_v39 = vadd.f32 %v5329_v22, %v604_v30  ;;  %5334 = vtanh.f32 %v546_v31  ;;  %v5806_v50 = vadd.f32 %v602_v32, %v601_v20 }
  0xcf   : > { %v744_v42 = vrot.slane %v743_v33, 2  ;;  %v653_v43 = vadd.f32 %v5331_v27, %v652_v34  ;;  %5336 = vtanh.f32 %v488_v35  ;;  %v5808_v55 = vadd.f32 %v650_v37, %v649_v25 }
  0xd0   : > { %v697_v45 = vadd.f32 %v696_v38, %v695_v29  ;;  %v606_v46 = vrot.slane %v605_v39, 2  ;;  %v527_v47 = vpop.f32.mrf.mxu2  ;;  %v547_v48 = vpop.f32.mrf.mxu3  ;;  %v508_v58 = vadd.f32 %v5775_v24, %v507_v16  ;;  %v5815_v63 = vmul.f32 %v5802_v41, %v5802_v41 }
  0xd1   : > { %v5333_v49 = vpop.eup %5332  ;;  %v745_v51 = vadd.f32 %v744_v42, %v743_v33  ;;  %v654_v52 = vrot.slane %v653_v43, 2  ;;  %v490_v53 = vpop.f32.mrf.mxu0  ;;  %v528_v61 = vadd.f32 %v5775_v24, %v527_v47  ;;  %v548_v62 = vadd.f32 %v5775_v24, %v547_v48 }
  0xd2   : > { %v510_v54 = vpop.f32.mrf.mxu1  ;;  %v607_v56 = vadd.f32 %v606_v46, %v605_v39  ;;  %v700_v57 = vrot.slane %v5333_v49, 4  ;;  %v698_v59 = vrot.slane %v697_v45, 1  ;;  %5338 = vtanh.f32 %v508_v58 }
  0xd3   : > { %v746_v60 = vrot.slane %v745_v51, 1  ;;  %v655_v0 = vadd.f32 %v654_v52, %v653_v43  ;;  %v5819_v2 = vmul.f32 %v5804_v44, %v5804_v44  ;;  %5340 = vtanh.f32 %v528_v61 }
  0xd4   : > { %v701_v1 = vadd.f32 %v5333_v49, %v700_v57  ;;  %v608_v3 = vrot.slane %v607_v56, 1  ;;  %v491_v4 = vadd.f32 %v5775_v24, %v490_v53  ;;  %v5335_v5 = vpop.eup %5334  ;;  %v5824_v6 = vmul.f32 %v5806_v50, %v5806_v50 }
  0xd5   : > { %v5828_v7 = vmul.f32 %v5808_v55, %v5808_v55  ;;  %5342 = vtanh.f32 %v548_v62  ;;  %v5337_v9 = vpop.eup %5336  ;;  %v5830_v10 = vadd.f32 %v698_v59, %v697_v45  ;;  %v5832_v11 = vadd.f32 %v746_v60, %v745_v51 }
  0xd6   : > { %v702_v8 = vrot.slane %v701_v1, 2  ;;  %v748_v12 = vrot.slane %v5335_v5, 4  ;;  %5344 = vtanh.f32 %v491_v4  ;;  %v656_v13 = vrot.slane %v655_v0, 1 }
  0xd7   : > { %v610_v15 = vrot.slane %v5337_v9, 4  ;;  %v511_v16 = vadd.f32 %v5775_v24, %v510_v54  ;;  %v5835_v21 = vadd.f32 %v608_v3, %v607_v56  ;;  %v5847_v58 = vmul.f32 %v5830_v10, %v5830_v10 }
  0xd8   : > { %v703_v14 = vadd.f32 %v702_v8, %v701_v1  ;;  %v530_v17 = vpop.f32.mrf.mxu2  ;;  %v550_v20 = vpop.f32.mrf.mxu3  ;;  %v749_v22 = vadd.f32 %v5335_v5, %v748_v12  ;;  %v5841_v38 = vadd.f32 %v656_v13, %v655_v0  ;;  %v5851_v59 = vmul.f32 %v5832_v11, %v5832_v11 }
  0xd9   : > { %v531_v23 = vadd.f32 %v5775_v24, %v530_v17  ;;  %v551_v25 = vadd.f32 %v5775_v24, %v550_v20  ;;  %v492_v26 = vpop.f32.mrf.mxu0  ;;  %v5339_v28 = vpop.eup %5338  ;;  %v611_v30 = vadd.f32 %v5337_v9, %v610_v15  ;;  %5346 = vtanh.f32 %v511_v16 }
  0xda   : > { %v512_v27 = vpop.f32.mrf.mxu1  ;;  %v704_v29 = vrot.slane %v703_v14, 1  ;;  %v493_v31 = vadd.f32 %v5775_v24, %v492_v26  ;;  %v5341_v32 = vpop.eup %5340  ;;  %v750_v33 = vrot.slane %v749_v22, 2  ;;  %v658_v34 = vrot.slane %v5339_v28, 4 }
  0xdb   : > { %5348 = vtanh.f32 %v531_v23  ;;  %v513_v35 = vadd.f32 %v5775_v24, %v512_v27  ;;  %v5343_v37 = vpop.eup %5342  ;;  %v612_v39 = vrot.slane %v611_v30, 2  ;;  %v706_v42 = vrot.slane %v5341_v32, 4 }
  0xdc   : > { %5350 = vtanh.f32 %v551_v25  ;;  %v5345_v43 = vpop.eup %5344  ;;  %v751_v45 = vadd.f32 %v750_v33, %v749_v22  ;;  %v659_v46 = vadd.f32 %v5339_v28, %v658_v34  ;;  %v754_v47 = vrot.slane %v5343_v37, 4 }
  0xdd   : > { %5352 = vtanh.f32 %v493_v31  ;;  %v5843_v48 = vadd.f32 %v704_v29, %v703_v14  ;;  %v613_v49 = vadd.f32 %v612_v39, %v611_v30  ;;  %v707_v51 = vadd.f32 %v5341_v32, %v706_v42 }
  0xde   : > { %v616_v52 = vrot.slane %v5345_v43, 4  ;;  %v752_v53 = vrot.slane %v751_v45, 1  ;;  %v660_v54 = vrot.slane %v659_v46, 2  ;;  %v755_v56 = vadd.f32 %v5343_v37, %v754_v47 }
  0xdf   : > { %5354 = vtanh.f32 %v513_v35  ;;  %v5347_v57 = vpop.eup %5346  ;;  %v708_v60 = vrot.slane %v707_v51, 2  ;;  %v614_v3 = vrot.slane %v613_v49, 1  ;;  %v5855_v14 = vmul.f32 %v5835_v21, %v5835_v21 }
  0xe0   : > { %v617_v61 = vadd.f32 %v5345_v43, %v616_v52  ;;  %v532_v62 = vpop.f32.mrf.mxu2  ;;  %v552_v0 = vpop.f32.mrf.mxu3  ;;  %v661_v4 = vadd.f32 %v660_v54, %v659_v46  ;;  %v756_v5 = vrot.slane %v755_v56, 2  ;;  %v664_v8 = vrot.slane %v5347_v57, 4 }
  0xe1   : > { %v5349_v1 = vpop.eup %5348  ;;  %v495_v9 = vpop.f32.mrf.mxu0  ;;  %v5857_v15 = vadd.f32 %v752_v53, %v751_v45  ;;  %v5861_v22 = vmul.f32 %v5841_v38, %v5841_v38  ;;  %v5865_v23 = vmul.f32 %v5843_v48, %v5843_v48  ;;  %v709_v25 = vadd.f32 %v708_v60, %v707_v51 }
  0xe2   : > { %v515_v12 = vpop.f32.mrf.mxu1  ;;  %v5351_v13 = vpop.eup %5350  ;;  %v618_v16 = vrot.slane %v617_v61, 2  ;;  %v712_v17 = vrot.slane %v5349_v1, 4  ;;  %v665_v26 = vadd.f32 %v5347_v57, %v664_v8  ;;  %v662_v27 = vrot.slane %v661_v4, 1 }
  0xe3   : > { %8220 = vst [vmem:[#allocation3_spill] sm:$0xff] %v5857_v15  ;;  %v5353_v20 = vpop.eup %5352  ;;  %v760_v29 = vrot.slane %v5351_v13, 4  ;;  %v5870_v30 = vsel %vm848_vm0, %v5824_v6, %v5796_v36  ;;  %v5872_v32 = vadd.f32 %v614_v3, %v613_v49  ;;  %v757_v33 = vadd.f32 %v756_v5, %v755_v56 }
  0xe4   : > { %v713_v28 = vadd.f32 %v5349_v1, %v712_v17  ;;  %v666_v34 = vrot.slane %v665_v26, 2  ;;  %v622_v35 = vrot.slane %v5353_v20, 4  ;;  %v5876_v37 = vmul.f32 %v5857_v15, %v5857_v15 }
  0xe5   : > { %v5355_v31 = vpop.eup %5354  ;;  %v619_v39 = vadd.f32 %v618_v16, %v617_v61  ;;  %v761_v43 = vadd.f32 %v5351_v13, %v760_v29  ;;  %v710_v45 = vrot.slane %v709_v25, 1  ;;  %v5878_v52 = vadd.f32 %v662_v27, %v661_v4 }
  0xe6   : > { %v714_v42 = vrot.slane %v713_v28, 2  ;;  %v667_v46 = vadd.f32 %v666_v34, %v665_v26  ;;  %v623_v47 = vadd.f32 %v5353_v20, %v622_v35  ;;  %v670_v51 = vrot.slane %v5355_v31, 4 }
  0xe7   : > { %v762_v6 = vrot.slane %v761_v43, 2  ;;  %v533_v49 = vadd.f32 %v5775_v24, %v532_v62  ;;  %v758_v56 = vrot.slane %v757_v33, 1  ;;  %v553_v1 = vadd.f32 %v5775_v24, %v552_v0 }
  0xe8   : > { %v715_v36 = vadd.f32 %v714_v42, %v713_v28  ;;  %v535_v53 = vpop.f32.mrf.mxu2  ;;  %v555_v54 = vpop.f32.mrf.mxu3  ;;  %v624_v57 = vrot.slane %v623_v47, 2  ;;  %v671_v60 = vadd.f32 %v5355_v31, %v670_v51  ;;  %v620_v61 = vrot.slane %v619_v39, 1 }
  0xe9   : > { %v763_v3 = vadd.f32 %v762_v6, %v761_v43  ;;  %5356 = vtanh.f32 %v533_v49  ;;  %v496_v5 = vadd.f32 %v5775_v24, %v495_v9  ;;  %v668_v8 = vrot.slane %v667_v46, 1  ;;  %v497_v16 = vpop.f32.mrf.mxu0 }
  0xea   : > { %v716_v4 = vrot.slane %v715_v36, 1  ;;  %v625_v13 = vadd.f32 %v624_v57, %v623_v47  ;;  %5358 = vtanh.f32 %v553_v1  ;;  %v517_v17 = vpop.f32.mrf.mxu1  ;;  %v672_v20 = vrot.slane %v671_v60, 2 }
  0xeb   : > { %v764_v62 = vrot.slane %v763_v3, 1  ;;  %5360 = vtanh.f32 %v496_v5  ;;  %v516_v26 = vadd.f32 %v5775_v24, %v515_v12  ;;  %v5884_v27 = vadd.f32 %v710_v45, %v709_v25 }
  0xec   : > { %v626_v0 = vrot.slane %v625_v13, 1  ;;  %v536_v28 = vadd.f32 %v5775_v24, %v535_v53  ;;  %v556_v29 = vadd.f32 %v5775_v24, %v555_v54  ;;  %v5888_v31 = vadd.f32 %v620_v61, %v619_v39 }
  0xed   : > { %5362 = vtanh.f32 %v516_v26  ;;  %v498_v9 = vadd.f32 %v5775_v24, %v497_v16  ;;  %v518_v34 = vadd.f32 %v5775_v24, %v517_v17  ;;  %v5892_v35 = vadd.f32 %v758_v56, %v757_v33 }
  0xee   : > { %v5894_v42 = vadd.f32 %v668_v8, %v667_v46  ;;  %v5896_v43 = vadd.f32 %v716_v4, %v715_v36  ;;  %5364 = vtanh.f32 %v536_v28  ;;  %v5898_v25 = vadd.f32 %v764_v62, %v763_v3 }
  0xef   : > { %v5357_v12 = vpop.eup %5356  ;;  %v5900_v45 = vadd.f32 %v672_v20, %v671_v60  ;;  %5366 = vtanh.f32 %v556_v29  ;;  %v5902_v51 = vadd.f32 %v626_v0, %v625_v13  ;;  %v787_v54 = vmul.f32 %v5872_v32, %v5872_v32 }
  0xf0   : > { %v537_v39 = vpop.f32.mrf.mxu2  ;;  %v557_v47 = vpop.f32.mrf.mxu3  ;;  %v718_v49 = vrot.slane %v5357_v12, 4  ;;  %5368 = vtanh.f32 %v498_v9  ;;  %v788_v56 = vmul.f32 %v5888_v31, %v5888_v31 }
  0xf1   : > { %v5359_v6 = vpop.eup %5358  ;;  %v538_v33 = vadd.f32 %v5775_v24, %v537_v39  ;;  %v558_v46 = vadd.f32 %v5775_v24, %v557_v47  ;;  %5370 = vtanh.f32 %v518_v34  ;;  %v789_v3 = vmul.f32 %v5902_v51, %v5902_v51 }
  0xf2   : > { %v5361_v36 = vpop.eup %5360  ;;  %v766_v53 = vrot.slane %v5359_v6, 4  ;;  %v719_v57 = vadd.f32 %v5357_v12, %v718_v49  ;;  %v851_v24 = vsel %vm850_vm1, %v5855_v14, %v5870_v30  ;;  %v674_v12 = vrot.slane %v5900_v45, 1 }
  0xf3   : > { %v628_v60 = vrot.slane %v5361_v36, 4  ;;  %5372 = vtanh.f32 %v538_v33  ;;  %v5363_v1 = vpop.eup %5362  ;;  %v853_v20 = vsel %vm852_vm2, %v787_v54, %v851_v24 }
  0xf4   : > { %v767_v61 = vadd.f32 %v5359_v6, %v766_v53  ;;  %5374 = vtanh.f32 %v558_v46  ;;  %v5365_v5 = vpop.eup %5364  ;;  %v720_v8 = vrot.slane %v719_v57, 2  ;;  %v676_v13 = vrot.slane %v5363_v1, 4 }
  0xf5   : > { %v629_v4 = vadd.f32 %v5361_v36, %v628_v60  ;;  %v5367_v16 = vpop.eup %5366  ;;  %v724_v62 = vrot.slane %v5365_v5, 4  ;;  %v855_v39 = vsel %vm854_vm3, %v788_v56, %v853_v20 }
  0xf6   : > { %v768_v17 = vrot.slane %v767_v61, 2  ;;  %v5369_v26 = vpop.eup %5368  ;;  %v721_v0 = vadd.f32 %v720_v8, %v719_v57  ;;  %v677_v29 = vadd.f32 %v5363_v1, %v676_v13  ;;  %v772_v9 = vrot.slane %v5367_v16, 4 }
  0xf7   : > { %v630_v28 = vrot.slane %v629_v4, 2  ;;  %v5371_v34 = vpop.eup %5370  ;;  %v725_v14 = vadd.f32 %v5365_v5, %v724_v62  ;;  %v634_v30 = vrot.slane %v5369_v26, 4  ;;  %v857_v46 = vsel %vm856_vm4, %v789_v3, %v855_v39 }
  0xf8   : > { %v722_v6 = vrot.slane %v721_v0, 1  ;;  %v678_v33 = vrot.slane %v677_v29, 2  ;;  %v773_v54 = vadd.f32 %v5367_v16, %v772_v9  ;;  %v682_v60 = vrot.slane %v5371_v34, 4 }
  0xf9   : > { %v5373_v47 = vpop.eup %5372  ;;  %v631_v49 = vadd.f32 %v630_v28, %v629_v4  ;;  %v726_v53 = vrot.slane %v725_v14, 2  ;;  %v635_v57 = vadd.f32 %v5369_v26, %v634_v30  ;;  %v769_v1 = vadd.f32 %v768_v17, %v767_v61 }
  0xfa   : > { %v5375_v36 = vpop.eup %5374  ;;  %v730_v24 = vrot.slane %v5373_v47, 4  ;;  %v683_v62 = vadd.f32 %v5371_v34, %v682_v60  ;;  %v679_v20 = vadd.f32 %v678_v33, %v677_v29  ;;  %v5919_v4 = vadd.f32 %v722_v6, %v721_v0 }
  0xfb   : > { %v778_v8 = vrot.slane %v5375_v36, 4  ;;  %v727_v5 = vadd.f32 %v726_v53, %v725_v14  ;;  %v636_v13 = vrot.slane %v635_v57, 2  ;;  %v632_v56 = vrot.slane %v631_v49, 1 }
  0xfc   : > { %v731_v15 = vadd.f32 %v5373_v47, %v730_v24  ;;  %v803_v3 = vmul.f32 %v5884_v27, %v5884_v27  ;;  %v774_v28 = vrot.slane %v773_v54, 2  ;;  %v770_v61 = vrot.slane %v769_v1, 1 }
  0xfd   : > { %v5923_v16 = vadd.f32 %v632_v56, %v631_v49  ;;  %v637_v26 = vadd.f32 %v636_v13, %v635_v57  ;;  %v728_v9 = vrot.slane %v727_v5, 1  ;;  %v684_v17 = vrot.slane %v683_v62, 2 }
  0xfe   : > { %v732_v30 = vrot.slane %v731_v15, 2  ;;  %v779_v39 = vadd.f32 %v5375_v36, %v778_v8  ;;  %v804_v29 = vmul.f32 %v5896_v43, %v5896_v43  ;;  %v805_v0 = vmul.f32 %v5919_v4, %v5919_v4 }
  0xff   : > { %v638_v14 = vrot.slane %v637_v26, 1  ;;  %v5925_v53 = vadd.f32 %v728_v9, %v727_v5  ;;  %v790_v34 = vmul.f32 %v5923_v16, %v5923_v16  ;;  %v869_v6 = vsel %vm848_vm0, %v5847_v58, %v5815_v63 }
 0x100   : > { %v733_v47 = vadd.f32 %v732_v30, %v731_v15  ;;  %v680_v49 = vrot.slane %v679_v20, 1  ;;  %v775_v33 = vadd.f32 %v774_v28, %v773_v54  ;;  %v870_v60 = vsel %vm850_vm1, %v5865_v23, %v869_v6 }
 0x101   : > { %v5936_v36 = vadd.f32 %v638_v14, %v637_v26  ;;  %v806_v57 = vmul.f32 %v5925_v53, %v5925_v53  ;;  %v780_v24 = vrot.slane %v779_v39, 2  ;;  %v871_v5 = vsel %vm852_vm2, %v803_v3, %v870_v60 }
 0x102   : > { %v734_v8 = vrot.slane %v733_v47, 1  ;;  %v685_v13 = vadd.f32 %v684_v17, %v683_v62  ;;  %v872_v63 = vsel %vm854_vm3, %v804_v29, %v871_v5  ;;  %v5947_v58 = vadd.f32 %v674_v12, %v5900_v45 }
 0x103   : > { %v791_v15 = vmul.f32 %v5936_v36, %v5936_v36  ;;  %v5949_v54 = vadd.f32 %v680_v49, %v679_v20  ;;  %v859_v56 = vsel %vm858_vm5, %v790_v34, %v857_v46  ;;  %v873_v23 = vsel %vm856_vm4, %v805_v0, %v872_v63 }
 0x104   : > { %v5952_v28 = vadd.f32 %v734_v8, %v733_v47  ;;  %v686_v26 = vrot.slane %v685_v13, 1  ;;  %v874_v62 = vsel %vm858_vm5, %v806_v57, %v873_v23  ;;  %v795_v9 = vmul.f32 %v5878_v52, %v5878_v52 }
 0x105   : > { %v861_v3 = vsel %vm860_vm6, %v791_v15, %v859_v56  ;;  %v796_v45 = vmul.f32 %v5894_v42, %v5894_v42  ;;  %v5965_v20 = vadd.f32 %v770_v61, %v769_v1  ;;  %v776_v17 = vrot.slane %v775_v33, 1 }
 0x106   : > { %887 = vadd.xlane.f32.xlu0 %v861_v3  ;;  %v807_v12 = vmul.f32 %v5952_v28, %v5952_v28  ;;  %v5963_v46 = vadd.f32 %v686_v26, %v685_v13  ;;  %v797_v30 = vmul.f32 %v5947_v58, %v5947_v58  ;;  %v798_v14 = vmul.f32 %v5949_v54, %v5949_v54 }
 0x107   : > { %v862_v29 = vsel %vm848_vm0, %v5828_v7, %v5800_v40  ;;  %v781_v0 = vadd.f32 %v780_v24, %v779_v39  ;;  %v5977_v6 = vadd.f32 %v776_v17, %v775_v33  ;;  %v811_v1 = vmul.f32 %v5892_v35, %v5892_v35 }
 0x108   : > { %v875_v34 = vsel %vm860_vm6, %v807_v12, %v874_v62  ;;  %v863_v47 = vsel %vm850_vm1, %v5861_v22, %v862_v29  ;;  %v799_v61 = vmul.f32 %v5963_v46, %v5963_v46  ;;  %v812_v40 = vmul.f32 %v5898_v25, %v5898_v25 }
 0x109   : > { %891 = vadd.xlane.f32.xlu1 %v875_v34  ;;  %v864_v49 = vsel %vm852_vm2, %v795_v9, %v863_v47  ;;  %v782_v57 = vrot.slane %v781_v0, 1  ;;  %v813_v22 = vmul.f32 %v5965_v20, %v5965_v20  ;;  %v876_v39 = vsel %vm848_vm0, %v5851_v59, %v5819_v2 }
 0x10a   : > { %v865_v7 = vsel %vm854_vm3, %v796_v45, %v864_v49  ;;  %v814_v24 = vmul.f32 %v5977_v6, %v5977_v6  ;;  %v877_v8 = vsel %vm850_vm1, %v5876_v37, %v876_v39 }
 0x10b   : > { %v866_v33 = vsel %vm856_vm4, %v797_v30, %v865_v7  ;;  %v5993_v60 = vadd.f32 %v782_v57, %v781_v0  ;;  %v878_v13 = vsel %vm852_vm2, %v811_v1, %v877_v8 }
 0x10c   : > { %v867_v5 = vsel %vm858_vm5, %v798_v14, %v866_v33  ;;  %v879_v2 = vsel %vm854_vm3, %v812_v40, %v878_v13 }
 0x10d   : > { %v868_v15 = vsel %vm860_vm6, %v799_v61, %v867_v5  ;;  %v815_v63 = vmul.f32 %v5993_v60, %v5993_v60  ;;  %v880_v59 = vsel %vm856_vm4, %v813_v22, %v879_v2 }
 0x10e   : > { %889 = vadd.xlane.f32.xlu0 %v868_v15  ;;  %v881_v56 = vsel %vm858_vm5, %v814_v24, %v880_v59 }
 0x10f   : > { %v882_v23 = vsel %vm860_vm6, %v815_v63, %v881_v56 }
 0x111   : > { %893 = vadd.xlane.f32.xlu1 %v882_v23 }
 0x179   : > { %v888_v37 = vpop.xlane.xlu0 %887 }
 0x17a   : > { %v895_v26 = vmax.f32 %v888_v37, 6.4e-23 }
 0x17c   : > { %5376 = vrsqrt.f32 %v895_v26  ;;  %v892_v3 = vpop.xlane.xlu1 %891  ;;  %vm905_vm8 = vweird.f32 %v895_v26 }
 0x17d   : > { %v6008_v9 = vmax.f32 %v892_v3, 6.4e-23 }
 0x17f   : > { %5378 = vrsqrt.f32 %v6008_v9  ;;  %vm925_vm11 = vweird.f32 %v6008_v9 }
 0x182   : > { %v5377_v62 = vpop.eup %5376 }
 0x183   : > { %v900_v45 = vmul.f32 %v5377_v62, %v895_v26  ;;  %vm906_vm7 = vweird.f32 %v5377_v62 }
 0x184   : > { %vm907_vm9 = vmor %vm905_vm8, %vm906_vm7 }
 0x185   : > { %v901_v12 = vmul.f32 %v5377_v62, %v900_v45  ;;  %v6011_v14 = vpop.eup %5378 }
 0x186   : > { %v920_v0 = vmul.f32 %v6011_v14, %v6008_v9  ;;  %vm926_vm10 = vweird.f32 %v6011_v14 }
 0x187   : > { %v902_v17 = vmul.f32 0.5, %v901_v12  ;;  %vm927_vm12 = vmor %vm925_vm11, %vm926_vm10 }
 0x188   : > { %v921_v47 = vmul.f32 %v6011_v14, %v920_v0  ;;  %v894_v0 = vpop.xlane.xlu1 %893 }
 0x189   : > { %v903_v30 = vsub.f32 1.5, %v902_v17 }
 0x18a   : > { %v922_v45 = vmul.f32 0.5, %v921_v47 }
 0x18b   : > { %v904_v29 = vmul.f32 %v5377_v62, %v903_v30 }
 0x18d   : > { %v908_v34 = vsel %vm907_vm9, %v5377_v62, %v904_v29  ;;  %v923_v29 = vsub.f32 1.5, %v922_v45 }
 0x18e   : > { %v943_v1 = vrot.slane %v908_v34, 1  ;;  %v944_v61 = vrot.slane %v908_v34, 2  ;;  %v945_v49 = vrot.slane %v908_v34, 3  ;;  %v946_v57 = vrot.slane %v908_v34, 4 }
 0x18f   : > { %v947_v40 = vrot.slane %v908_v34, 5  ;;  %v948_v7 = vrot.slane %v908_v34, 6  ;;  %v949_v22 = vrot.slane %v908_v34, 7  ;;  %v1003_v39 = vmul.f32 %v908_v34, %v5788_v18 }
 0x190   : > { %v1004_v33 = vmul.f32 %v943_v1, %v5806_v50  ;;  %v1005_v24 = vmul.f32 %v944_v61, %v5835_v21  ;;  %v1006_v8 = vmul.f32 %v945_v49, %v5872_v32  ;;  %v1007_v5 = vmul.f32 %v946_v57, %v5888_v31 }
 0x191   : > { %v1008_v13 = vmul.f32 %v947_v40, %v5902_v51  ;;  %v1009_v15 = vmul.f32 %v948_v7, %v5923_v16  ;;  %v1010_v63 = vmul.f32 %v949_v22, %v5936_v36  ;;  %v1035_v2 = vpack.c.bf16 %v1003_v39, %v1003_v39  ;;  %v890_v51 = vpop.xlane.xlu0 %889 }
 0x192   : > { %v1036_v59 = vpack.c.bf16 %v1004_v33, %v1004_v33  ;;  %v1037_v56 = vpack.c.bf16 %v1005_v24, %v1005_v24  ;;  %v1038_v23 = vpack.c.bf16 %v1006_v8, %v1006_v8  ;;  %v1039_v18 = vpack.c.bf16 %v1007_v5, %v1007_v5 }
 0x193   : > { %v1040_v37 = vpack.c.bf16 %v1008_v13, %v1008_v13  ;;  %v1041_v50 = vpack.c.bf16 %v1009_v15, %v1009_v15  ;;  %v1042_v26 = vpack.c.bf16 %v1010_v63, %v1010_v63  ;;  %v1099_v62 = vunpack.c.l.b16 %v1035_v2 }
 0x194   : > { %v1100_v21 = vunpack.c.l.b16 %v1036_v59  ;;  %v1101_v3 = vunpack.c.l.b16 %v1037_v56  ;;  %v1102_v32 = vunpack.c.l.b16 %v1038_v23  ;;  %v1103_v31 = vunpack.c.l.b16 %v1039_v18 }
 0x195   : > { %v1104_v12 = vunpack.c.l.b16 %v1040_v37  ;;  %v1105_v16 = vunpack.c.l.b16 %v1041_v50  ;;  %v1106_v30 = vunpack.c.l.b16 %v1042_v26  ;;  %v6029_v61 = vmax.f32 %v890_v51, 6.4e-23 }
 0x196   : > { %v1131_v17 = vrot.slane %v1100_v21, 7  ;;  %v1133_v36 = vrot.slane %v1101_v3, 6  ;;  %v1135_v1 = vrot.slane %v1102_v32, 5  ;;  %v6031_v49 = vmax.f32 %v894_v0, 6.4e-23 }
 0x197   : > { %v1137_v57 = vrot.slane %v1103_v31, 4  ;;  %v924_v40 = vmul.f32 %v6011_v14, %v923_v29  ;;  %v1139_v22 = vrot.slane %v1104_v12, 3  ;;  %v1141_v39 = vrot.slane %v1105_v16, 2 }
 0x198   : > { %v1132_v34 = vsel %vm848_vm0, %v1131_v17, %v1099_v62  ;;  %5380 = vrsqrt.f32 %v6029_v61  ;;  %v1143_v24 = vrot.slane %v1106_v30, 1  ;;  %vm915_vm14 = vweird.f32 %v6029_v61 }
 0x199   : > { %v1134_v47 = vsel %vm850_vm1, %v1133_v36, %v1132_v34  ;;  %v928_v8 = vsel %vm927_vm12, %v6011_v14, %v924_v40  ;;  %5382 = vrsqrt.f32 %v6031_v49  ;;  %vm935_vm7 = vweird.f32 %v6031_v49 }
 0x19a   : > { %v1136_v7 = vsel %vm852_vm2, %v1135_v1, %v1134_v47  ;;  %v957_v13 = vrot.slane %v928_v8, 1  ;;  %v958_v15 = vrot.slane %v928_v8, 2  ;;  %v959_v9 = vrot.slane %v928_v8, 3 }
 0x19b   : > { %v1138_v33 = vsel %vm854_vm3, %v1137_v57, %v1136_v7  ;;  %v960_v2 = vrot.slane %v928_v8, 4  ;;  %v961_v59 = vrot.slane %v928_v8, 5  ;;  %v962_v56 = vrot.slane %v928_v8, 6 }
 0x19c   : > { %v1140_v5 = vsel %vm856_vm4, %v1139_v22, %v1138_v33  ;;  %v963_v18 = vrot.slane %v928_v8, 7  ;;  %v1019_v37 = vmul.f32 %v928_v8, %v5802_v41  ;;  %v1020_v50 = vmul.f32 %v957_v13, %v5830_v10 }
 0x19d   : > { %v1142_v63 = vsel %vm858_vm5, %v1141_v39, %v1140_v5  ;;  %v1021_v26 = vmul.f32 %v958_v15, %v5843_v48  ;;  %v1022_v21 = vmul.f32 %v959_v9, %v5884_v27  ;;  %v1023_v3 = vmul.f32 %v960_v2, %v5896_v43 }
 0x19e   : > { %v1144_v23 = vsel %vm860_vm6, %v1143_v24, %v1142_v63  ;;  %v5381_v32 = vpop.eup %5380  ;;  %v1024_v62 = vmul.f32 %v961_v59, %v5919_v4  ;;  %v1025_v31 = vmul.f32 %v962_v56, %v5925_v53  ;;  %v1026_v45 = vmul.f32 %v963_v18, %v5952_v28 }
 0x19f   : > { %v1187_v14 = vpack.c.b16 %v1144_v23, %v1144_v23  ;;  %v1051_v51 = vpack.c.bf16 %v1019_v37, %v1019_v37  ;;  %v6053_v12 = vpop.eup %5382  ;;  %v1052_v41 = vpack.c.bf16 %v1020_v50, %v1020_v50  ;;  %v1053_v10 = vpack.c.bf16 %v1021_v26, %v1021_v26 }
 0x1a0   : > { %v1054_v48 = vpack.c.bf16 %v1022_v21, %v1022_v21  ;;  %v1055_v27 = vpack.c.bf16 %v1023_v3, %v1023_v3  ;;  %v1056_v16 = vpack.c.bf16 %v1024_v62, %v1024_v62  ;;  %v1057_v43 = vpack.c.bf16 %v1025_v31, %v1025_v31 }
 0x1a1   : > { %1199 = vst [vmem:[%s6055_s26] sm:$0xf] %v1187_v14  ;;  %v1058_v17 = vpack.c.bf16 %v1026_v45, %v1026_v45  ;;  %v1116_v36 = vunpack.c.l.b16 %v1052_v41  ;;  %v1117_v4 = vunpack.c.l.b16 %v1053_v10  ;;  %v910_v28 = vmul.f32 %v5381_v32, %v6029_v61 }
 0x1a2   : > { %v1118_v30 = vunpack.c.l.b16 %v1054_v48  ;;  %v1119_v53 = vunpack.c.l.b16 %v1055_v27  ;;  %v1115_v29 = vunpack.c.l.b16 %v1051_v51  ;;  %v1120_v0 = vunpack.c.l.b16 %v1056_v16 }
 0x1a3   : > { %v1159_v34 = vrot.slane %v1116_v36, 7  ;;  %v1161_v1 = vrot.slane %v1117_v4, 6  ;;  %v1121_v47 = vunpack.c.l.b16 %v1057_v43  ;;  %v911_v57 = vmul.f32 %v5381_v32, %v910_v28 }
 0x1a4   : > { %v1122_v40 = vunpack.c.l.b16 %v1058_v17  ;;  %v1163_v22 = vrot.slane %v1118_v30, 5  ;;  %v930_v39 = vmul.f32 %v6053_v12, %v6031_v49  ;;  %v1165_v24 = vrot.slane %v1119_v53, 4 }
 0x1a5   : > { %v1160_v7 = vsel %vm848_vm0, %v1159_v34, %v1115_v29  ;;  %v912_v8 = vmul.f32 0.5, %v911_v57  ;;  %v1167_v13 = vrot.slane %v1120_v0, 3  ;;  %v1169_v63 = vrot.slane %v1121_v47, 2 }
 0x1a6   : > { %v1162_v33 = vsel %vm850_vm1, %v1161_v1, %v1160_v7  ;;  %v931_v15 = vmul.f32 %v6053_v12, %v930_v39  ;;  %vm916_vm13 = vweird.f32 %v5381_v32  ;;  %v1171_v56 = vrot.slane %v1122_v40, 1 }
 0x1a7   : > { %v1164_v5 = vsel %vm852_vm2, %v1163_v22, %v1162_v33  ;;  %v913_v2 = vsub.f32 1.5, %v912_v8  ;;  %vm917_vm15 = vmor %vm915_vm14, %vm916_vm13  ;;  %vm936_vm8 = vweird.f32 %v6053_v12 }
 0x1a8   : > { %v1166_v9 = vsel %vm854_vm3, %v1165_v24, %v1164_v5  ;;  %v932_v23 = vmul.f32 0.5, %v931_v15  ;;  %vm937_vm9 = vmor %vm935_vm7, %vm936_vm8 }
 0x1a9   : > { %v1168_v59 = vsel %vm856_vm4, %v1167_v13, %v1166_v9  ;;  %v914_v37 = vmul.f32 %v5381_v32, %v913_v2 }
 0x1aa   : > { %v1170_v18 = vsel %vm858_vm5, %v1169_v63, %v1168_v59  ;;  %v933_v21 = vsub.f32 1.5, %v932_v23 }
 0x1ab   : > { %v1172_v50 = vsel %vm860_vm6, %v1171_v56, %v1170_v18  ;;  %v918_v26 = vsel %vm917_vm15, %v5381_v32, %v914_v37 }
 0x1ac   : > { %v1189_v14 = vpack.c.b16 %v1172_v50, %v1172_v50  ;;  %v950_v3 = vrot.slane %v918_v26, 1  ;;  %v951_v62 = vrot.slane %v918_v26, 2  ;;  %v952_v31 = vrot.slane %v918_v26, 3 }
 0x1ad   : > { %v953_v45 = vrot.slane %v918_v26, 4  ;;  %v954_v51 = vrot.slane %v918_v26, 5  ;;  %v955_v41 = vrot.slane %v918_v26, 6  ;;  %v956_v10 = vrot.slane %v918_v26, 7 }
 0x1ae   : > { %1201 = vst [vmem:[%s6055_s26 + $0x8] sm:$0xf] %v1189_v14  ;;  %v1011_v61 = vmul.f32 %v918_v26, %v5790_v19  ;;  %v1012_v48 = vmul.f32 %v950_v3, %v5808_v55  ;;  %v1013_v27 = vmul.f32 %v951_v62, %v5841_v38  ;;  %v1014_v32 = vmul.f32 %v952_v31, %v5878_v52 }
 0x1af   : > { %v1015_v16 = vmul.f32 %v953_v45, %v5894_v42  ;;  %v1016_v43 = vmul.f32 %v954_v51, %v5947_v58  ;;  %v1017_v17 = vmul.f32 %v955_v41, %v5949_v54  ;;  %v1018_v36 = vmul.f32 %v956_v10, %v5963_v46 }
 0x1b0   : > { %v1043_v4 = vpack.c.bf16 %v1011_v61, %v1011_v61  ;;  %v1044_v30 = vpack.c.bf16 %v1012_v48, %v1012_v48  ;;  %v1045_v53 = vpack.c.bf16 %v1013_v27, %v1013_v27  ;;  %v1046_v28 = vpack.c.bf16 %v1014_v32, %v1014_v32 }
 0x1b1   : > { %v1047_v29 = vpack.c.bf16 %v1015_v16, %v1015_v16  ;;  %v1048_v19 = vpack.c.bf16 %v1016_v43, %v1016_v43  ;;  %v1049_v0 = vpack.c.bf16 %v1017_v17, %v1017_v17  ;;  %v1050_v55 = vpack.c.bf16 %v1018_v36, %v1018_v36 }
 0x1b2   : > { %v1107_v34 = vunpack.c.l.b16 %v1043_v4  ;;  %v1108_v38 = vunpack.c.l.b16 %v1044_v30  ;;  %v1109_v1 = vunpack.c.l.b16 %v1045_v53  ;;  %v1110_v52 = vunpack.c.l.b16 %v1046_v28 }
 0x1b3   : > { %v1111_v47 = vunpack.c.l.b16 %v1047_v29  ;;  %v1112_v42 = vunpack.c.l.b16 %v1048_v19  ;;  %v1113_v57 = vunpack.c.l.b16 %v1049_v0  ;;  %v1114_v58 = vunpack.c.l.b16 %v1050_v55 }
 0x1b4   : > { %v934_v54 = vmul.f32 %v6053_v12, %v933_v21  ;;  %v1145_v40 = vrot.slane %v1108_v38, 7  ;;  %v1147_v46 = vrot.slane %v1109_v1, 6  ;;  %v1149_v7 = vrot.slane %v1110_v52, 5 }
 0x1b5   : > { %v1151_v22 = vrot.slane %v1111_v47, 4  ;;  %v1153_v39 = vrot.slane %v1112_v42, 3  ;;  %v1155_v33 = vrot.slane %v1113_v57, 2  ;;  %v1157_v24 = vrot.slane %v1114_v58, 1 }
 0x1b6   : > { %v938_v8 = vsel %vm937_vm9, %v6053_v12, %v934_v54  ;;  %v1146_v5 = vsel %vm848_vm0, %v1145_v40, %v1107_v34  ;;  %v8221_v12 = vld [vmem:[#allocation3_spill] sm:$0xff] }
 0x1b7   : > { %v964_v13 = vrot.slane %v938_v8, 1  ;;  %v965_v15 = vrot.slane %v938_v8, 2  ;;  %v966_v9 = vrot.slane %v938_v8, 3  ;;  %v1148_v63 = vsel %vm850_vm1, %v1147_v46, %v1146_v5 }
 0x1b8   : > { %v967_v2 = vrot.slane %v938_v8, 4  ;;  %v968_v59 = vrot.slane %v938_v8, 5  ;;  %v969_v56 = vrot.slane %v938_v8, 6  ;;  %v1150_v23 = vsel %vm852_vm2, %v1149_v7, %v1148_v63 }
 0x1b9   : > { %v970_v18 = vrot.slane %v938_v8, 7  ;;  %v1027_v49 = vmul.f32 %v938_v8, %v5804_v44  ;;  %v1028_v37 = vmul.f32 %v964_v13, %v5832_v11  ;;  %v1152_v50 = vsel %vm854_vm3, %v1151_v22, %v1150_v23 }
 0x1ba   : > { %v1029_v14 = vmul.f32 %v965_v15, %v8221_v12  ;;  %v1030_v26 = vmul.f32 %v966_v9, %v5892_v35  ;;  %v1031_v21 = vmul.f32 %v967_v2, %v5898_v25  ;;  %v1154_v3 = vsel %vm856_vm4, %v1153_v39, %v1152_v50 }
 0x1bb   : > { %v1032_v62 = vmul.f32 %v968_v59, %v5965_v20  ;;  %v1033_v31 = vmul.f32 %v969_v56, %v5977_v6  ;;  %v1034_v45 = vmul.f32 %v970_v18, %v5993_v60  ;;  %v1156_v44 = vsel %vm858_vm5, %v1155_v33, %v1154_v3 }
 0x1bc   : > { %v1059_v11 = vpack.c.bf16 %v1027_v49, %v1027_v49  ;;  %v1060_v51 = vpack.c.bf16 %v1028_v37, %v1028_v37  ;;  %v1061_v41 = vpack.c.bf16 %v1029_v14, %v1029_v14  ;;  %v1158_v10 = vsel %vm860_vm6, %v1157_v24, %v1156_v44 }
 0x1bd   : > { %v1062_v61 = vpack.c.bf16 %v1030_v26, %v1030_v26  ;;  %v1063_v35 = vpack.c.bf16 %v1031_v21, %v1031_v21  ;;  %v1064_v48 = vpack.c.bf16 %v1032_v62, %v1032_v62  ;;  %v1188_v25 = vpack.c.b16 %v1158_v10, %v1158_v10 }
 0x1be   : > { %v1065_v27 = vpack.c.bf16 %v1033_v31, %v1033_v31  ;;  %v1066_v32 = vpack.c.bf16 %v1034_v45, %v1034_v45  ;;  %v1124_v16 = vunpack.c.l.b16 %v1060_v51  ;;  %v1125_v20 = vunpack.c.l.b16 %v1061_v41 }
 0x1bf   : > { %v1126_v43 = vunpack.c.l.b16 %v1062_v61  ;;  %1200 = vst [vmem:[%s6055_s26 + $0x4] sm:$0xf] %v1188_v25  ;;  %v1127_v6 = vunpack.c.l.b16 %v1063_v35  ;;  %v1123_v17 = vunpack.c.l.b16 %v1059_v11  ;;  %v1128_v60 = vunpack.c.l.b16 %v1064_v48 }
 0x1c0   : > { %v1173_v36 = vrot.slane %v1124_v16, 7  ;;  %v1175_v4 = vrot.slane %v1125_v20, 6  ;;  %v1129_v30 = vunpack.c.l.b16 %v1065_v27  ;;  %v1130_v53 = vunpack.c.l.b16 %v1066_v32 }
 0x1c1   : > { %v1177_v29 = vrot.slane %v1126_v43, 5  ;;  %v1179_v0 = vrot.slane %v1127_v6, 4  ;;  %v1181_v34 = vrot.slane %v1128_v60, 3 }
 0x1c2   : > { %v1174_v28 = vsel %vm848_vm0, %v1173_v36, %v1123_v17  ;;  %v1183_v1 = vrot.slane %v1129_v30, 2  ;;  %v1185_v47 = vrot.slane %v1130_v53, 1 }
 0x1c3   : > { %v1176_v19 = vsel %vm850_vm1, %v1175_v4, %v1174_v28 }
 0x1c4   : > { %v1178_v55 = vsel %vm852_vm2, %v1177_v29, %v1176_v19 }
 0x1c5   : > { %v1180_v38 = vsel %vm854_vm3, %v1179_v0, %v1178_v55 }
 0x1c6   : > { %v1182_v52 = vsel %vm856_vm4, %v1181_v34, %v1180_v38 }
 0x1c7   : > { %v1184_v42 = vsel %vm858_vm5, %v1183_v1, %v1182_v52 }
 0x1c8   : > { %v1186_v57 = vsel %vm860_vm6, %v1185_v47, %v1184_v42 }
 0x1c9   : > { %v1190_v58 = vpack.c.b16 %v1186_v57, %v1186_v57 }
 0x1cb   : > { %1202 = vst [vmem:[%s6055_s26 + $0xc] sm:$0xf] %v1190_v58 }
 0x1cc PF: > { %p4858_p8 = scmp.lt.s32.totalorder %s5714_s16, 1 }
 0x1ce   : > { %1206 = sbr.rel (%p4858_p8) target bundleno = 1434 (0x59a), region = 44 }
 0x1d3   : > { %v5252_v54 = vld [vmem:[%s8071_s2 + $0x38] sm:$0xff]  ;;  %v5251_v40 = vld [vmem:[%s8071_s2 + $0x30] sm:$0xff]  ;;  %v5250_v46 = vld [vmem:[%s8071_s2 + $0x28] sm:$0xff]  ;;  %vm3268_vm0 = vcmask 1041409   ;;  %vm3270_vm1 = vcmask 1042434   ;;  %vm3272_vm2 = vcmask 1043459  }
 0x1d4   : > { %1787 = vmatpush.bf16.msra.mxu0 %v5252_v54  ;;  %5279 = vmatpush.bf16.msra.mxu1 %v5252_v54  ;;  %v5249_v7 = vld [vmem:[%s8071_s2 + $0x20] sm:$0xff]  ;;  %v5248_v22 = vld [vmem:[%s8071_s2 + $0x18] sm:$0xff]  ;;  %v5247_v39 = vld [vmem:[%s8071_s2 + $0x10] sm:$0xff]  ;;  %vm3274_vm3 = vcmask 1044484   ;;  %vm3276_vm4 = vcmask 1045509   ;;  %vm3278_vm5 = vcmask 1046534  }
 0x1d5   : > { %5280 = vmatpush.bf16.msra.mxu2 %v5252_v54  ;;  %5281 = vmatpush.bf16.msra.mxu3 %v5252_v54  ;;  %v5246_v33 = vld [vmem:[%s8071_s2 + $0x8] sm:$0xff]  ;;  %v5245_v24 = vld [vmem:[%s8071_s2] sm:$0xff]  ;;  %v5211_v13 = vld [vmem:[%s5729_s28 + $0xf0] sm:$0xff]  ;;  %vm3280_vm6 = vcmask 1047559  }
 0x1d6   : > { %v5181_v8 = vld [vmem:[%s5729_s28] sm:$0xff]  ;;  %v5198_v5 = vld [vmem:[%s5729_s28 + $0x88] sm:$0xff]  ;;  %v5228_v15 = vld [vmem:[%s5729_s28 + $0x178] sm:$0xff] }
 0x1d7   : > { %v5182_v9 = vld [vmem:[%s5729_s28 + $0x8] sm:$0xff]  ;;  %v5199_v63 = vld [vmem:[%s5729_s28 + $0x90] sm:$0xff]  ;;  %v5212_v2 = vld [vmem:[%s5729_s28 + $0xf8] sm:$0xff] }
 0x1d8   : > { %1788 = vmatpush.bf16.msra.mxu0 %v5251_v40  ;;  %5282 = vmatpush.bf16.msra.mxu1 %v5251_v40  ;;  %v5229_v59 = vld [vmem:[%s5729_s28 + $0x180] sm:$0xff]  ;;  %v5183_v56 = vld [vmem:[%s5729_s28 + $0x10] sm:$0xff]  ;;  %v5200_v23 = vld [vmem:[%s5729_s28 + $0x98] sm:$0xff] }
 0x1d9   : > { %5283 = vmatpush.bf16.msra.mxu2 %v5251_v40  ;;  %5284 = vmatpush.bf16.msra.mxu3 %v5251_v40  ;;  %v5213_v18 = vld [vmem:[%s5729_s28 + $0x100] sm:$0xff]  ;;  %v5230_v49 = vld [vmem:[%s5729_s28 + $0x188] sm:$0xff]  ;;  %v5184_v37 = vld [vmem:[%s5729_s28 + $0x18] sm:$0xff] }
 0x1da   : > { %v5201_v50 = vld [vmem:[%s5729_s28 + $0xa0] sm:$0xff]  ;;  %v5214_v12 = vld [vmem:[%s5729_s28 + $0x108] sm:$0xff]  ;;  %v5231_v14 = vld [vmem:[%s5729_s28 + $0x190] sm:$0xff] }
 0x1db   : > { %v5185_v26 = vld [vmem:[%s5729_s28 + $0x20] sm:$0xff]  ;;  %v5202_v21 = vld [vmem:[%s5729_s28 + $0xa8] sm:$0xff]  ;;  %v5215_v3 = vld [vmem:[%s5729_s28 + $0x110] sm:$0xff] }
 0x1dc   : > { %1789 = vmatpush.bf16.msra.mxu0 %v5250_v46  ;;  %5285 = vmatpush.bf16.msra.mxu1 %v5250_v46  ;;  %v5232_v62 = vld [vmem:[%s5729_s28 + $0x198] sm:$0xff]  ;;  %v5186_v31 = vld [vmem:[%s5729_s28 + $0x28] sm:$0xff]  ;;  %v5203_v45 = vld [vmem:[%s5729_s28 + $0xb0] sm:$0xff] }
 0x1dd   : > { %5286 = vmatpush.bf16.msra.mxu2 %v5250_v46  ;;  %5287 = vmatpush.bf16.msra.mxu3 %v5250_v46  ;;  %v5216_v44 = vld [vmem:[%s5729_s28 + $0x118] sm:$0xff]  ;;  %v5233_v11 = vld [vmem:[%s5729_s28 + $0x1a0] sm:$0xff]  ;;  %v5187_v51 = vld [vmem:[%s5729_s28 + $0x30] sm:$0xff] }
 0x1de   : > { %v5204_v41 = vld [vmem:[%s5729_s28 + $0xb8] sm:$0xff]  ;;  %v5217_v10 = vld [vmem:[%s5729_s28 + $0x120] sm:$0xff]  ;;  %v5234_v61 = vld [vmem:[%s5729_s28 + $0x1a8] sm:$0xff] }
 0x1df   : > { %v5188_v35 = vld [vmem:[%s5729_s28 + $0x38] sm:$0xff]  ;;  %v5205_v48 = vld [vmem:[%s5729_s28 + $0xc0] sm:$0xff]  ;;  %v5218_v25 = vld [vmem:[%s5729_s28 + $0x128] sm:$0xff] }
 0x1e0   : > { %1790 = vmatpush.bf16.msra.mxu0 %v5249_v7  ;;  %5288 = vmatpush.bf16.msra.mxu1 %v5249_v7  ;;  %v5235_v27 = vld [vmem:[%s5729_s28 + $0x1b0] sm:$0xff]  ;;  %v5189_v32 = vld [vmem:[%s5729_s28 + $0x40] sm:$0xff]  ;;  %v5206_v16 = vld [vmem:[%s5729_s28 + $0xc8] sm:$0xff] }
 0x1e1   : > { %5289 = vmatpush.bf16.msra.mxu2 %v5249_v7  ;;  %5290 = vmatpush.bf16.msra.mxu3 %v5249_v7  ;;  %v5219_v6 = vld [vmem:[%s5729_s28 + $0x130] sm:$0xff]  ;;  %v5236_v17 = vld [vmem:[%s5729_s28 + $0x1b8] sm:$0xff]  ;;  %v6175_v60 = vld [vmem:[%s8072_s3] ss:$0 sm:$0xff] }
 0x1e2   : > { %v5190_v55 = vld [vmem:[%s5729_s28 + $0x48] sm:$0xff]  ;;  %v5207_v34 = vld [vmem:[%s5729_s28 + $0xd0] sm:$0xff]  ;;  %v5220_v52 = vld [vmem:[%s5729_s28 + $0x138] sm:$0xff] }
 0x1e3   : > { %v5237_v47 = vld [vmem:[%s5729_s28 + $0x1c0] sm:$0xff] }
 0x1e4   : > { %1791 = vmatpush.bf16.msra.mxu0 %v5248_v22  ;;  %5291 = vmatpush.bf16.msra.mxu1 %v5248_v22 }
 0x1e5   : > { %5292 = vmatpush.bf16.msra.mxu2 %v5248_v22  ;;  %5293 = vmatpush.bf16.msra.mxu3 %v5248_v22 }
 0x1e8   : > { %1792 = vmatpush.bf16.msra.mxu0 %v5247_v39  ;;  %5294 = vmatpush.bf16.msra.mxu1 %v5247_v39 }
 0x1e9   : > { %5295 = vmatpush.bf16.msra.mxu2 %v5247_v39  ;;  %5296 = vmatpush.bf16.msra.mxu3 %v5247_v39 }
 0x1ec   : > { %1793 = vmatpush.bf16.msra.mxu0 %v5246_v33  ;;  %5297 = vmatpush.bf16.msra.mxu1 %v5246_v33 }
 0x1ed   : > { %5298 = vmatpush.bf16.msra.mxu2 %v5246_v33  ;;  %5299 = vmatpush.bf16.msra.mxu3 %v5246_v33 }
 0x1f0   : > { %1794 = vmatpush.bf16.msra.mxu0 %v5245_v24  ;;  %5300 = vmatpush.bf16.msra.mxu1 %v5245_v24 }
 0x1f1   : > { %5301 = vmatpush.bf16.msra.mxu2 %v5245_v24  ;;  %5302 = vmatpush.bf16.msra.mxu3 %v5245_v24 }
 0x1f3   : > { %1795 = vmatmul.bf16.vlgmr.msra.gmra.mxu0 %v5181_v8  ;;  %1880 = vmatmul.bf16.vlgmr.msra.gmra.mxu1 %v5198_v5 }
 0x1f4   : > { %1945 = vmatmul.bf16.vlgmr.msra.gmra.mxu2 %v5211_v13  ;;  %2030 = vmatmul.bf16.vlgmr.msra.gmra.mxu3 %v5228_v15 }
 0x203   : > { %1800 = vmatmul.bf16.gmra.mxu0 %v5182_v9  ;;  %1885 = vmatmul.bf16.gmra.mxu1 %v5199_v63 }
 0x204   : > { %1950 = vmatmul.bf16.gmra.mxu2 %v5212_v2  ;;  %2035 = vmatmul.bf16.gmra.mxu3 %v5229_v59 }
 0x213   : > { %1805 = vmatmul.bf16.gmra.mxu0 %v5183_v56  ;;  %1890 = vmatmul.bf16.gmra.mxu1 %v5200_v23 }
 0x214   : > { %1955 = vmatmul.bf16.gmra.mxu2 %v5213_v18  ;;  %2040 = vmatmul.bf16.gmra.mxu3 %v5230_v49 }
 0x223   : > { %1810 = vmatmul.bf16.gmra.mxu0 %v5184_v37  ;;  %1895 = vmatmul.bf16.gmra.mxu1 %v5201_v50  ;;  %v5191_v50 = vld [vmem:[%s5729_s28 + $0x50] sm:$0xff] }
 0x224   : > { %1960 = vmatmul.bf16.gmra.mxu2 %v5214_v12  ;;  %2045 = vmatmul.bf16.gmra.mxu3 %v5231_v14  ;;  %v5208_v12 = vld [vmem:[%s5729_s28 + $0xd8] sm:$0xff] }
 0x233   : > { %1815 = vmatmul.bf16.gmra.mxu0 %v5185_v26  ;;  %1900 = vmatmul.bf16.gmra.mxu1 %v5202_v21 }
 0x234   : > { %1965 = vmatmul.bf16.gmra.mxu2 %v5215_v3  ;;  %2050 = vmatmul.bf16.gmra.mxu3 %v5232_v62  ;;  %v5221_v3 = vld [vmem:[%s5729_s28 + $0x140] sm:$0xff]  ;;  %v5238_v62 = vld [vmem:[%s5729_s28 + $0x1c8] sm:$0xff] }
 0x243   : > { %1820 = vmatmul.bf16.gmra.mxu0 %v5186_v31  ;;  %1905 = vmatmul.bf16.gmra.mxu1 %v5203_v45 }
 0x244   : > { %1970 = vmatmul.bf16.gmra.mxu2 %v5216_v44  ;;  %2055 = vmatmul.bf16.gmra.mxu3 %v5233_v11 }
 0x253   : > { %1825 = vmatmul.bf16.gmra.mxu0 %v5187_v51  ;;  %1910 = vmatmul.bf16.gmra.mxu1 %v5204_v41 }
 0x254   : > { %1975 = vmatmul.bf16.gmra.mxu2 %v5217_v10  ;;  %2060 = vmatmul.bf16.gmra.mxu3 %v5234_v61 }
 0x263   : > { %1830 = vmatmul.bf16.gmra.mxu0 %v5188_v35  ;;  %1915 = vmatmul.bf16.gmra.mxu1 %v5205_v48 }
 0x264   : > { %1980 = vmatmul.bf16.gmra.mxu2 %v5218_v25  ;;  %2065 = vmatmul.bf16.gmra.mxu3 %v5235_v27 }
 0x270   : > { %v1796_v20 = vpop.f32.mrf.mxu0  ;;  %v1881_v43 = vpop.f32.mrf.mxu1 }
 0x271   : > { %v1797_v30 = vadd.f32 %v6175_v60, %v1796_v20  ;;  %v1882_v29 = vadd.f32 %v6175_v60, %v1881_v43 }
 0x273   : > { %1835 = vmatmul.bf16.gmra.mxu0 %v5189_v32  ;;  %1920 = vmatmul.bf16.gmra.mxu1 %v5206_v16  ;;  %5385 = vtanh.f32 %v1797_v30 }
 0x274   : > { %1985 = vmatmul.bf16.gmra.mxu2 %v5219_v6  ;;  %2070 = vmatmul.bf16.gmra.mxu3 %v5236_v17  ;;  %5387 = vtanh.f32 %v1882_v29 }
 0x277   : > { %v1946_v36 = vpop.f32.mrf.mxu2  ;;  %v2031_v4 = vpop.f32.mrf.mxu3 }
 0x278   : > { %v1798_v53 = vpop.f32.mrf.mxu0  ;;  %v1883_v28 = vpop.f32.mrf.mxu1  ;;  %v1947_v54 = vadd.f32 %v6175_v60, %v1946_v36  ;;  %v2032_v22 = vadd.f32 %v6175_v60, %v2031_v4 }
 0x279   : > { %v5386_v42 = vpop.eup %5385  ;;  %v1799_v58 = vadd.f32 %v6175_v60, %v1798_v53  ;;  %v1884_v46 = vadd.f32 %v6175_v60, %v1883_v28 }
 0x27a   : > { %v5388_v57 = vpop.eup %5387  ;;  %v2244_v40 = vrot.slane %v5386_v42, 4 }
 0x27b   : > { %v2448_v7 = vrot.slane %v5388_v57, 4  ;;  %5389 = vtanh.f32 %v1799_v58 }
 0x27c   : > { %5391 = vtanh.f32 %v1947_v54  ;;  %v2245_v5 = vadd.f32 %v5386_v42, %v2244_v40 }
 0x27d   : > { %5393 = vtanh.f32 %v1884_v46  ;;  %v2449_v15 = vadd.f32 %v5388_v57, %v2448_v7 }
 0x27e   : > { %5395 = vtanh.f32 %v2032_v22  ;;  %v2246_v59 = vrot.slane %v2245_v5, 2 }
 0x27f   : > { %v1948_v19 = vpop.f32.mrf.mxu2  ;;  %v2033_v0 = vpop.f32.mrf.mxu3  ;;  %v2450_v23 = vrot.slane %v2449_v15, 2 }
 0x280   : > { %v1801_v38 = vpop.f32.mrf.mxu0  ;;  %v1886_v1 = vpop.f32.mrf.mxu1  ;;  %v1949_v63 = vadd.f32 %v6175_v60, %v1948_v19  ;;  %v2247_v45 = vadd.f32 %v2246_v59, %v2245_v5  ;;  %v2034_v11 = vadd.f32 %v6175_v60, %v2033_v0 }
 0x281   : > { %v1802_v13 = vadd.f32 %v6175_v60, %v1801_v38  ;;  %v1887_v9 = vadd.f32 %v6175_v60, %v1886_v1  ;;  %v5390_v2 = vpop.eup %5389  ;;  %v2451_v51 = vadd.f32 %v2450_v23, %v2449_v15 }
 0x282   : > { %v5392_v56 = vpop.eup %5391  ;;  %v2250_v14 = vrot.slane %v5390_v2, 4  ;;  %v2248_v20 = vrot.slane %v2247_v45, 1 }
 0x283   : > { %1840 = vmatmul.bf16.gmra.mxu0 %v5190_v55  ;;  %1925 = vmatmul.bf16.gmra.mxu1 %v5207_v34  ;;  %5397 = vtanh.f32 %v1802_v13  ;;  %v5394_v18 = vpop.eup %5393  ;;  %v2604_v44 = vrot.slane %v5392_v56, 4  ;;  %v2452_v17 = vrot.slane %v2451_v51, 1 }
 0x284   : > { %1990 = vmatmul.bf16.gmra.mxu2 %v5220_v52  ;;  %2075 = vmatmul.bf16.gmra.mxu3 %v5237_v47  ;;  %5399 = vtanh.f32 %v1887_v9  ;;  %v5396_v31 = vpop.eup %5395  ;;  %v2454_v41 = vrot.slane %v5394_v18, 4  ;;  %v2251_v27 = vadd.f32 %v5390_v2, %v2250_v14  ;;  %v6208_v1 = vadd.f32 %v2248_v20, %v2247_v45 }
 0x285   : > { %5401 = vtanh.f32 %v1949_v63  ;;  %v2808_v25 = vrot.slane %v5396_v31, 4  ;;  %v2605_v43 = vadd.f32 %v5392_v56, %v2604_v44  ;;  %v6210_v47 = vadd.f32 %v2452_v17, %v2451_v51  ;;  %v5222_v44 = vld [vmem:[%s5729_s28 + $0x148] sm:$0xff] }
 0x286   : > { %5403 = vtanh.f32 %v2034_v11  ;;  %v2455_v36 = vadd.f32 %v5394_v18, %v2454_v41  ;;  %v2252_v0 = vrot.slane %v2251_v27, 2  ;;  %8222 = vst [vmem:[#allocation4_spill] sm:$0xff] %v6208_v1  ;;  %v5239_v11 = vld [vmem:[%s5729_s28 + $0x1d0] sm:$0xff] }
 0x287   : > { %v1951_v39 = vpop.f32.mrf.mxu2  ;;  %v2036_v33 = vpop.f32.mrf.mxu3  ;;  %v2809_v19 = vadd.f32 %v5396_v31, %v2808_v25  ;;  %v2606_v52 = vrot.slane %v2605_v43, 2  ;;  %8223 = vst [vmem:[#allocation5_spill] sm:$0xff] %v6210_v47  ;;  %v6221_v13 = vmul.f32 %v6210_v47, %v6210_v47 }
 0x288   : > { %v1803_v24 = vpop.f32.mrf.mxu0  ;;  %v1888_v8 = vpop.f32.mrf.mxu1  ;;  %v2037_v10 = vadd.f32 %v6175_v60, %v2036_v33  ;;  %v1952_v6 = vadd.f32 %v6175_v60, %v1951_v39  ;;  %v2456_v42 = vrot.slane %v2455_v36, 2  ;;  %v2253_v22 = vadd.f32 %v2252_v0, %v2251_v27 }
 0x289   : > { %v5398_v61 = vpop.eup %5397  ;;  %v1804_v35 = vadd.f32 %v6175_v60, %v1803_v24  ;;  %v1889_v53 = vadd.f32 %v6175_v60, %v1888_v8  ;;  %v2810_v7 = vrot.slane %v2809_v19, 2  ;;  %v6217_v24 = vmul.f32 %v6208_v1, %v6208_v1 }
 0x28a   : > { %v5400_v48 = vpop.eup %5399  ;;  %v2256_v4 = vrot.slane %v5398_v61, 4  ;;  %5405 = vtanh.f32 %v2037_v10  ;;  %v2607_v8 = vadd.f32 %v2606_v52, %v2605_v43  ;;  %v2457_v15 = vadd.f32 %v2456_v42, %v2455_v36 }
 0x28b   : > { %v5402_v16 = vpop.eup %5401  ;;  %v2460_v30 = vrot.slane %v5400_v48, 4  ;;  %5407 = vtanh.f32 %v1804_v35  ;;  %8224 = vst [vmem:[#allocation6_spill] sm:$0xff] %v6217_v24  ;;  %v6230_v14 = vadd.f32 %v2810_v7, %v2809_v19  ;;  %v5227_v24 = vld [vmem:[%s5729_s28 + $0x170] sm:$0xff] }
 0x28c   : > { %v2610_v55 = vrot.slane %v5402_v16, 4  ;;  %v2257_v57 = vadd.f32 %v5398_v61, %v2256_v4  ;;  %v6212_v58 = vpop.eup %5403  ;;  %v2458_v27 = vrot.slane %v2457_v15, 1 }
 0x28d   : > { %v2461_v54 = vadd.f32 %v5400_v48, %v2460_v30  ;;  %v2814_v35 = vrot.slane %v6212_v58, 4 }
 0x28e   : > { %v2611_v39 = vadd.f32 %v5402_v16, %v2610_v55  ;;  %v2258_v9 = vrot.slane %v2257_v57, 2  ;;  %v6249_v19 = vadd.f32 %v2458_v27, %v2457_v15  ;;  %v5210_v27 = vld [vmem:[%s5729_s28 + $0xe8] sm:$0xff] }
 0x28f   : > { %v6190_v49 = vpop.f32.mrf.mxu2  ;;  %v2038_v37 = vpop.f32.mrf.mxu3  ;;  %v2462_v59 = vrot.slane %v2461_v54, 2  ;;  %v6252_v0 = vadd.f32 %v6212_v58, %v2814_v35 }
 0x290   : > { %v1806_v26 = vpop.f32.mrf.mxu0  ;;  %v6194_v21 = vpop.f32.mrf.mxu1  ;;  %v2039_v32 = vadd.f32 %v6175_v60, %v2038_v37  ;;  %v1954_v23 = vadd.f32 %v6175_v60, %v6190_v49  ;;  %v2608_v49 = vrot.slane %v2607_v8, 1  ;;  %v2259_v48 = vadd.f32 %v2258_v9, %v2257_v57  ;;  %8227 = vst [vmem:[#allocation9_spill] sm:$0xff] %v6249_v19 }
 0x291   : > { %v1807_v40 = vadd.f32 %v6175_v60, %v1806_v26  ;;  %v5406_v46 = vpop.eup %5405  ;;  %v2254_v26 = vrot.slane %v2253_v22, 1 }
 0x292   : > { %5409 = vtanh.f32 %v2039_v32  ;;  %v5408_v33 = vpop.eup %5407  ;;  %v2820_v56 = vrot.slane %v5406_v46, 4  ;;  %v2463_v32 = vadd.f32 %v2462_v59, %v2461_v54  ;;  %v6245_v30 = vadd.f32 %v2608_v49, %v2607_v8 }
 0x293   : > { %1845 = vmatmul.bf16.gmra.mxu0 %v5191_v50  ;;  %1930 = vmatmul.bf16.gmra.mxu1 %v5208_v12  ;;  %5411 = vtanh.f32 %v1952_v6  ;;  %v5192_v50 = vld [vmem:[%s5729_s28 + $0x58] sm:$0xff]  ;;  %v5209_v12 = vld [vmem:[%s5729_s28 + $0xe0] sm:$0xff]  ;;  %v2262_v41 = vrot.slane %v5408_v33, 4 }
 0x294   : > { %1995 = vmatmul.bf16.gmra.mxu2 %v5221_v3  ;;  %2080 = vmatmul.bf16.gmra.mxu3 %v5238_v62  ;;  %5413 = vtanh.f32 %v1889_v53  ;;  %v2612_v3 = vrot.slane %v2611_v39, 2  ;;  %v1892_v62 = vadd.f32 %v6175_v60, %v6194_v21  ;;  %v2821_v16 = vadd.f32 %v5406_v46, %v2820_v56  ;;  %8226 = vst [vmem:[#allocation8_spill] sm:$0xff] %v6245_v30  ;;  %v5241_v46 = vld [vmem:[%s5729_s28 + $0x1e0] sm:$0xff] }
 0x295   : > { %5415 = vtanh.f32 %v1807_v40  ;;  %v6240_v21 = vadd.f32 %v2254_v26, %v2253_v22  ;;  %v2263_v17 = vadd.f32 %v5408_v33, %v2262_v41  ;;  %v2260_v53 = vrot.slane %v2259_v48, 1 }
 0x296   : > { %v6242_v20 = vadd.f32 %v2612_v3, %v2611_v39  ;;  %v2464_v55 = vrot.slane %v2463_v32, 1  ;;  %v2822_v52 = vrot.slane %v2821_v16, 2 }
 0x297   : > { %v1956_v28 = vpop.f32.mrf.mxu2  ;;  %v2041_v29 = vpop.f32.mrf.mxu3  ;;  %8225 = vst [vmem:[#allocation7_spill] sm:$0xff] %v6240_v21  ;;  %v6256_v40 = vmul.f32 %v6240_v21, %v6240_v21  ;;  %v2264_v8 = vrot.slane %v2263_v17, 2  ;;  %v6263_v9 = vadd.f32 %v2260_v53, %v2259_v48 }
 0x298   : > { %v6204_v34 = vpop.f32.mrf.mxu0  ;;  %v6206_v38 = vpop.f32.mrf.mxu1  ;;  %v1957_v63 = vadd.f32 %v6175_v60, %v1956_v28  ;;  %v2042_v61 = vadd.f32 %v6175_v60, %v2041_v29  ;;  %v6267_v56 = vadd.f32 %v2464_v55, %v2463_v32 }
 0x299   : > { %v5410_v5 = vpop.eup %5409  ;;  %v1809_v29 = vadd.f32 %v6175_v60, %v6204_v34  ;;  %8228 = vst [vmem:[#allocation10_spill] sm:$0xff] %v6256_v40  ;;  %v5195_v40 = vld [vmem:[%s5729_s28 + $0x70] sm:$0xff] }
 0x29a   : > { %v5412_v2 = vpop.eup %5411  ;;  %v2826_v10 = vrot.slane %v5410_v5, 4  ;;  %5417 = vtanh.f32 %v1957_v63  ;;  %8229 = vst [vmem:[#allocation11_spill] sm:$0xff] %v6263_v9 }
 0x29b   : > { %v5414_v51 = vpop.eup %5413  ;;  %v2616_v25 = vrot.slane %v5412_v2, 4  ;;  %5419 = vtanh.f32 %v1954_v23  ;;  %8230 = vst [vmem:[#allocation12_spill] sm:$0xff] %v6267_v56  ;;  %v2823_v23 = vadd.f32 %v2822_v52, %v2821_v16 }
 0x29c   : > { %v2466_v43 = vrot.slane %v5414_v51, 4  ;;  %5421 = vtanh.f32 %v1892_v62  ;;  %v5416_v6 = vpop.eup %5415  ;;  %v2827_v36 = vadd.f32 %v5410_v5, %v2826_v10  ;;  %v1894_v5 = vadd.f32 %v6175_v60, %v6206_v38 }
 0x29d   : > { %5423 = vtanh.f32 %v2042_v61  ;;  %v2617_v28 = vadd.f32 %v5412_v2, %v2616_v25  ;;  %v2268_v22 = vrot.slane %v5416_v6, 4  ;;  %v6271_v62 = vadd.f32 %v2264_v8, %v2263_v17  ;;  %v5193_v25 = vld [vmem:[%s5729_s28 + $0x60] sm:$0xff] }
 0x29e   : > { %v2467_v7 = vadd.f32 %v5414_v51, %v2466_v43  ;;  %v2828_v58 = vrot.slane %v2827_v36, 2  ;;  %v2824_v16 = vrot.slane %v2823_v23, 1 }
 0x29f   : > { %v1958_v18 = vpop.f32.mrf.mxu2  ;;  %v6226_v37 = vpop.f32.mrf.mxu3  ;;  %v2618_v63 = vrot.slane %v2617_v28, 2  ;;  %v2269_v3 = vadd.f32 %v5416_v6, %v2268_v22  ;;  %v2266_v53 = vrot.slane %v6271_v62, 1 }
 0x2a0   : > { %v6234_v31 = vpop.f32.mrf.mxu0  ;;  %v1896_v45 = vpop.f32.mrf.mxu1  ;;  %v1959_v4 = vadd.f32 %v6175_v60, %v1958_v18  ;;  %v2044_v2 = vadd.f32 %v6175_v60, %v6226_v37  ;;  %v6275_v37 = vmul.f32 %v6263_v9, %v6263_v9 }
 0x2a1   : > { %v5418_v54 = vpop.eup %5417  ;;  %v6279_v41 = vadd.f32 %v2618_v63, %v2617_v28  ;;  %v2270_v6 = vrot.slane %v2269_v3, 2 }
 0x2a2   : > { %v5420_v33 = vpop.eup %5419  ;;  %5425 = vtanh.f32 %v1959_v4  ;;  %v2628_v18 = vrot.slane %v5418_v54, 4  ;;  %8231 = vst [vmem:[#allocation13_spill] sm:$0xff] %v6275_v37  ;;  %v5240_v4 = vld [vmem:[%s5729_s28 + $0x1d8] sm:$0xff] }
 0x2a3   : > { %1850 = vmatmul.bf16.gmra.mxu0 %v5192_v50  ;;  %1935 = vmatmul.bf16.gmra.mxu1 %v5209_v12  ;;  %v5422_v15 = vpop.eup %5421  ;;  %5427 = vtanh.f32 %v1809_v29  ;;  %v1897_v50 = vadd.f32 %v6175_v60, %v1896_v45  ;;  %v2468_v12 = vrot.slane %v2467_v7, 2  ;;  %v2622_v26 = vrot.slane %v5420_v33, 4 }
 0x2a4   : > { %2000 = vmatmul.bf16.gmra.mxu2 %v5222_v44  ;;  %2085 = vmatmul.bf16.gmra.mxu3 %v5239_v11  ;;  %v5424_v59 = vpop.eup %5423  ;;  %v2829_v44 = vadd.f32 %v2828_v58, %v2827_v36  ;;  %v2472_v11 = vrot.slane %v5422_v15, 4  ;;  %5429 = vtanh.f32 %v1894_v5  ;;  %v1812_v45 = vadd.f32 %v6175_v60, %v6234_v31  ;;  %v5223_v36 = vld [vmem:[%s5729_s28 + $0x150] sm:$0xff] }
 0x2a5   : > { %v2832_v51 = vrot.slane %v5424_v59, 4  ;;  %5431 = vtanh.f32 %v2044_v2  ;;  %v2629_v10 = vadd.f32 %v5418_v54, %v2628_v18  ;;  %v6284_v43 = vadd.f32 %v2468_v12, %v2467_v7 }
 0x2a6   : > { %5433 = vtanh.f32 %v1897_v50  ;;  %v6289_v28 = vadd.f32 %v5420_v33, %v2622_v26  ;;  %v2830_v29 = vrot.slane %v2829_v44, 1  ;;  %v2473_v55 = vadd.f32 %v5422_v15, %v2472_v11 }
 0x2a7   : > { %v1961_v42 = vpop.f32.mrf.mxu2  ;;  %v2046_v57 = vpop.f32.mrf.mxu3  ;;  %v2833_v52 = vadd.f32 %v5424_v59, %v2832_v51  ;;  %v2630_v7 = vrot.slane %v2629_v10, 2  ;;  %v6293_v5 = vadd.f32 %v2824_v16, %v2823_v23  ;;  %v2271_v33 = vadd.f32 %v2270_v6, %v2269_v3 }
 0x2a8   : > { %v6259_v39 = vpop.f32.mrf.mxu0  ;;  %v1898_v34 = vpop.f32.mrf.mxu1  ;;  %v1962_v38 = vadd.f32 %v6175_v60, %v1961_v42  ;;  %v2047_v54 = vadd.f32 %v6175_v60, %v2046_v57  ;;  %v6297_v2 = vadd.f32 %v2830_v29, %v2829_v44  ;;  %v2474_v59 = vrot.slane %v2473_v55, 2 }
 0x2a9   : > { %v5426_v49 = vpop.eup %5425  ;;  %v1899_v61 = vadd.f32 %v6175_v60, %v1898_v34  ;;  %8232 = vst [vmem:[#allocation14_spill] sm:$0xff] %v6293_v5  ;;  %v2834_v12 = vrot.slane %v2833_v52, 2  ;;  %v2631_v3 = vadd.f32 %v2630_v7, %v2629_v10  ;;  %v3108_v44 = vmul.f32 %v6293_v5, %v6293_v5 }
 0x2aa   : > { %v5428_v32 = vpop.eup %5427  ;;  %5435 = vtanh.f32 %v1962_v38  ;;  %v2634_v42 = vrot.slane %v5426_v49, 4  ;;  %8233 = vst [vmem:[#allocation15_spill] sm:$0xff] %v6297_v2  ;;  %v3109_v6 = vmul.f32 %v6297_v2, %v6297_v2 }
 0x2ab   : > { %5437 = vtanh.f32 %v1812_v45  ;;  %v5430_v22 = vpop.eup %5429  ;;  %v2274_v34 = vrot.slane %v5428_v32, 4 }
 0x2ac   : > { %5439 = vtanh.f32 %v1899_v61  ;;  %v5432_v58 = vpop.eup %5431  ;;  %v2635_v26 = vadd.f32 %v5426_v49, %v2634_v42  ;;  %v2478_v16 = vrot.slane %v5430_v22, 4 }
 0x2ad   : > { %v5434_v15 = vpop.eup %5433  ;;  %5441 = vtanh.f32 %v2047_v54  ;;  %v2275_v38 = vadd.f32 %v5428_v32, %v2274_v34  ;;  %v2838_v11 = vrot.slane %v5432_v58, 4 }
 0x2ae   : > { %v2484_v10 = vrot.slane %v5434_v15, 4 }
 0x2af   : > { %v1963_v35 = vpop.f32.mrf.mxu2  ;;  %v2048_v48 = vpop.f32.mrf.mxu3 }
 0x2b0   : > { %v1816_v31 = vpop.f32.mrf.mxu0  ;;  %v1901_v17 = vpop.f32.mrf.mxu1  ;;  %v1964_v8 = vadd.f32 %v6175_v60, %v1963_v35  ;;  %v2049_v63 = vadd.f32 %v6175_v60, %v2048_v48  ;;  %v6304_v35 = vadd.f32 %v2266_v53, %v6271_v62  ;;  %v2272_v48 = vrot.slane %v2271_v33, 1 }
 0x2b1   : > { %v1817_v18 = vadd.f32 %v6175_v60, %v1816_v31  ;;  %v5436_v50 = vpop.eup %5435  ;;  %v1902_v23 = vadd.f32 %v6175_v60, %v1901_v17  ;;  %v2835_v31 = vadd.f32 %v2834_v12, %v2833_v52  ;;  %v2636_v17 = vrot.slane %v2635_v26, 2 }
 0x2b2   : > { %5443 = vtanh.f32 %v1964_v8  ;;  %v5438_v61 = vpop.eup %5437  ;;  %8234 = vst [vmem:[#allocation16_spill] sm:$0xff] %v6304_v35  ;;  %v2640_v32 = vrot.slane %v5436_v50, 4  ;;  %v2632_v62 = vrot.slane %v2631_v3, 1  ;;  %v2839_v53 = vadd.f32 %v5432_v58, %v2838_v11 }
 0x2b3   : > { %1855 = vmatmul.bf16.gmra.mxu0 %v5193_v25  ;;  %1940 = vmatmul.bf16.gmra.mxu1 %v5210_v27  ;;  %5445 = vtanh.f32 %v2049_v63  ;;  %v5440_v27 = vpop.eup %5439  ;;  %v6312_v42 = vadd.f32 %v2272_v48, %v2271_v33  ;;  %v2280_v54 = vrot.slane %v5438_v61, 4  ;;  %v6315_v63 = vadd.f32 %v5430_v22, %v2478_v16  ;;  %v5194_v16 = vld [vmem:[%s5729_s28 + $0x68] sm:$0xff] }
 0x2b4   : > { %2005 = vmatmul.bf16.gmra.mxu2 %v5223_v36  ;;  %2090 = vmatmul.bf16.gmra.mxu3 %v5240_v4  ;;  %5447 = vtanh.f32 %v1817_v18  ;;  %v6310_v36 = vadd.f32 %v2474_v59, %v2473_v55  ;;  %v2276_v4 = vrot.slane %v2275_v38, 2  ;;  %v5442_v29 = vpop.eup %5441  ;;  %v2490_v7 = vrot.slane %v5440_v27, 4 }
 0x2b5   : > { %5449 = vtanh.f32 %v1902_v23  ;;  %8235 = vst [vmem:[#allocation17_spill] sm:$0xff] %v6312_v42  ;;  %v2485_v18 = vadd.f32 %v5434_v15, %v2484_v10  ;;  %v2641_v52 = vadd.f32 %v5436_v50, %v2640_v32  ;;  %v2836_v59 = vrot.slane %v2835_v31, 1 }
 0x2b6   : > { %v2637_v23 = vadd.f32 %v2636_v17, %v2635_v26  ;;  %v1814_v58 = vadd.f32 %v6175_v60, %v6259_v39  ;;  %v6321_v33 = vsel %vm3268_vm0, %v3109_v6, %v3108_v44  ;;  %v6325_v22 = vadd.f32 %v2276_v4, %v2275_v38  ;;  %v5224_v17 = vld [vmem:[%s5729_s28 + $0x158] sm:$0xff] }
 0x2b7   : > { %v1966_v51 = vpop.f32.mrf.mxu2  ;;  %v2051_v45 = vpop.f32.mrf.mxu3  ;;  %v2840_v15 = vrot.slane %v2839_v53, 2  ;;  %v2844_v50 = vrot.slane %v5442_v29, 4  ;;  %v2281_v26 = vadd.f32 %v5438_v61, %v2280_v54  ;;  %v2491_v32 = vadd.f32 %v5440_v27, %v2490_v7 }
 0x2b8   : > { %v1818_v25 = vpop.f32.mrf.mxu0  ;;  %v6306_v49 = vpop.f32.mrf.mxu1  ;;  %v2052_v34 = vadd.f32 %v6175_v60, %v2051_v45  ;;  %v1967_v12 = vadd.f32 %v6175_v60, %v1966_v51  ;;  %v6323_v45 = vadd.f32 %v2632_v62, %v2631_v3  ;;  %8237 = vst [vmem:[#allocation19_spill] sm:$0xff] %v6325_v22  ;;  %v2486_v3 = vrot.slane %v2485_v18, 2 }
 0x2b9   : > { %v5444_v8 = vpop.eup %5443  ;;  %v1819_v39 = vadd.f32 %v6175_v60, %v1818_v25  ;;  %v2642_v62 = vrot.slane %v2641_v52, 2  ;;  %v6333_v4 = vadd.f32 %v2836_v59, %v2835_v31  ;;  %v2638_v57 = vrot.slane %v2637_v23, 1 }
 0x2ba   : > { %v5446_v55 = vpop.eup %5445  ;;  %8236 = vst [vmem:[#allocation18_spill] sm:$0xff] %v6323_v45  ;;  %5451 = vtanh.f32 %v2052_v34  ;;  %v2646_v38 = vrot.slane %v5444_v8, 4  ;;  %v2845_v9 = vadd.f32 %v5442_v29, %v2844_v50  ;;  %v2841_v25 = vadd.f32 %v2840_v15, %v2839_v53 }
 0x2bb   : > { %v5448_v11 = vpop.eup %5447  ;;  %5453 = vtanh.f32 %v1967_v12  ;;  %8238 = vst [vmem:[#allocation20_spill] sm:$0xff] %v6333_v4  ;;  %v2850_v61 = vrot.slane %v5446_v55, 4  ;;  %v2282_v7 = vrot.slane %v2281_v26, 2  ;;  %v2492_v34 = vrot.slane %v2491_v32, 2 }
 0x2bc   : > { %v5450_v10 = vpop.eup %5449  ;;  %5455 = vtanh.f32 %v1814_v58  ;;  %v2292_v1 = vrot.slane %v5448_v11, 4  ;;  %v6338_v12 = vmul.f32 %v6323_v45, %v6323_v45  ;;  %v2487_v31 = vadd.f32 %v2486_v3, %v2485_v18 }
 0x2bd   : > { %v2496_v27 = vrot.slane %v5450_v10, 4  ;;  %5457 = vtanh.f32 %v1819_v39  ;;  %v2643_v59 = vadd.f32 %v2642_v62, %v2641_v52  ;;  %v2647_v58 = vadd.f32 %v5444_v8, %v2646_v38 }
 0x2be   : > { %v6342_v29 = vmul.f32 %v6333_v4, %v6333_v4  ;;  %v2293_v53 = vadd.f32 %v5448_v11, %v2292_v1  ;;  %v1904_v15 = vadd.f32 %v6175_v60, %v6306_v49  ;;  %v6349_v52 = vadd.f32 %v2638_v57, %v2637_v23 }
 0x2bf   : > { %v1968_v48 = vpop.f32.mrf.mxu2  ;;  %v2053_v51 = vpop.f32.mrf.mxu3  ;;  %v2497_v39 = vadd.f32 %v5450_v10, %v2496_v27  ;;  %v2842_v3 = vrot.slane %v2841_v25, 1  ;;  %v6351_v62 = vadd.f32 %v2282_v7, %v2281_v26  ;;  %v2493_v38 = vadd.f32 %v2492_v34, %v2491_v32 }
 0x2c0   : > { %v1821_v44 = vpop.f32.mrf.mxu0  ;;  %v6329_v6 = vpop.f32.mrf.mxu1  ;;  %v2054_v54 = vadd.f32 %v6175_v60, %v2053_v51  ;;  %8239 = vst [vmem:[#allocation21_spill] sm:$0xff] %v6349_v52  ;;  %v2488_v49 = vrot.slane %v2487_v31, 1  ;;  %v2644_v11 = vrot.slane %v2643_v59, 1  ;;  %v2648_v47 = vrot.slane %v2647_v58, 2 }
 0x2c1   : > { %v5452_v21 = vpop.eup %5451  ;;  %8240 = vst [vmem:[#allocation22_spill] sm:$0xff] %v6351_v62  ;;  %v2498_v45 = vrot.slane %v2497_v39, 2  ;;  %v1822_v26 = vadd.f32 %v6175_v60, %v1821_v44  ;;  %v6361_v32 = vmul.f32 %v6349_v52, %v6349_v52  ;;  %v6363_v7 = vadd.f32 %v2842_v3, %v2841_v25 }
 0x2c2   : > { %v5454_v51 = vpop.eup %5453  ;;  %5459 = vtanh.f32 %v2054_v54  ;;  %v1969_v54 = vadd.f32 %v6175_v60, %v1968_v48  ;;  %v2494_v5 = vrot.slane %v2493_v38, 1  ;;  %v6365_v2 = vadd.f32 %v2488_v49, %v2487_v31 }
 0x2c3   : > { %1860 = vmatmul.bf16.gmra.mxu0 %v5194_v16  ;;  %v2851_v16 = vadd.f32 %v5446_v55, %v2850_v61  ;;  %v5456_v8 = vpop.eup %5455  ;;  %v2856_v55 = vrot.slane %v5452_v21, 4  ;;  %v2294_v61 = vrot.slane %v2293_v53, 2  ;;  %v2652_v27 = vrot.slane %v5454_v51, 4  ;;  %8241 = vst [vmem:[#allocation23_spill] sm:$0xff] %v6363_v7 }
 0x2c4   : > { %2010 = vmatmul.bf16.gmra.mxu2 %v5224_v17  ;;  %2095 = vmatmul.bf16.gmra.mxu3 %v5241_v46  ;;  %v2846_v46 = vrot.slane %v2845_v9, 2  ;;  %v5458_v10 = vpop.eup %5457  ;;  %5461 = vtanh.f32 %v1904_v15  ;;  %v2286_v34 = vrot.slane %v5456_v8, 4  ;;  %8242 = vst [vmem:[#allocation24_spill] sm:$0xff] %v6365_v2  ;;  %v6367_v15 = vadd.f32 %v2644_v11, %v2643_v59 }
 0x2c5   : > { %v2852_v23 = vrot.slane %v2851_v16, 2  ;;  %v2857_v48 = vadd.f32 %v5452_v21, %v2856_v55  ;;  %v2295_v42 = vadd.f32 %v2294_v61, %v2293_v53  ;;  %v2653_v37 = vadd.f32 %v5454_v51, %v2652_v27  ;;  %v5225_v51 = vld [vmem:[%s5729_s28 + $0x160] sm:$0xff] }
 0x2c6   : > { %v2847_v57 = vadd.f32 %v2846_v46, %v2845_v9  ;;  %8243 = vst [vmem:[#allocation25_spill] sm:$0xff] %v6367_v15  ;;  %v2298_v9 = vrot.slane %v5458_v10, 4  ;;  %v2649_v46 = vadd.f32 %v2648_v47, %v2647_v58  ;;  %5463 = vtanh.f32 %v1969_v54 }
 0x2c7   : > { %v6347_v17 = vpop.f32.mrf.mxu2  ;;  %v2056_v18 = vpop.f32.mrf.mxu3  ;;  %v2853_v52 = vadd.f32 %v2852_v23, %v2851_v16  ;;  %v2499_v25 = vadd.f32 %v2498_v45, %v2497_v39  ;;  %5465 = vtanh.f32 %v1822_v26  ;;  %v6372_v49 = vadd.f32 %v5456_v8, %v2286_v34  ;;  %v5242_v45 = vld [vmem:[%s5729_s28 + $0x1e8] sm:$0xff] }
 0x2c8   : > { %v6353_v50 = vpop.f32.mrf.mxu0  ;;  %v6355_v1 = vpop.f32.mrf.mxu1  ;;  %v2848_v44 = vrot.slane %v2847_v57, 1  ;;  %v6374_v59 = vadd.f32 %v2494_v5, %v2493_v38  ;;  %v1907_v47 = vadd.f32 %v6175_v60, %v6329_v6  ;;  %v6386_v16 = vmul.f32 %v6365_v2, %v6365_v2 }
 0x2c9   : > { %v5460_v4 = vpop.eup %5459  ;;  %8244 = vst [vmem:[#allocation26_spill] sm:$0xff] %v6372_v49  ;;  %v2858_v39 = vrot.slane %v2857_v48, 2  ;;  %v2299_v11 = vadd.f32 %v5458_v10, %v2298_v9  ;;  %v2057_v8 = vadd.f32 %v6175_v60, %v2056_v18  ;;  %v6391_v5 = vmul.f32 %v6367_v15, %v6367_v15  ;;  %v5244_v49 = vld [vmem:[%s5729_s28 + $0x1f8] sm:$0xff] }
 0x2ca   : > { %v5462_v31 = vpop.eup %5461  ;;  %8245 = vst [vmem:[#allocation27_spill] sm:$0xff] %v6374_v59  ;;  %v2862_v21 = vrot.slane %v5460_v4, 4  ;;  %v2650_v38 = vrot.slane %v2649_v46, 1  ;;  %v2296_v6 = vrot.slane %v2295_v42, 1  ;;  %v2654_v55 = vrot.slane %v2653_v37, 2 }
 0x2cb   : > { %8246 = vst [vmem:[#allocation28_spill] sm:$0xff] %v6386_v16  ;;  %v6393_v61 = vadd.f32 %v2848_v44, %v2847_v57  ;;  %v2500_v27 = vrot.slane %v2499_v25, 1  ;;  %v2502_v54 = vrot.slane %v5462_v31, 4  ;;  %v2854_v23 = vrot.slane %v2853_v52, 1 }
 0x2cc   : > { %8247 = vst [vmem:[#allocation29_spill] sm:$0xff] %v6391_v5  ;;  %v5464_v26 = vpop.eup %5463  ;;  %v6397_v34 = vmul.f32 %v6374_v59, %v6374_v59  ;;  %v2863_v10 = vadd.f32 %v5460_v4, %v2862_v21  ;;  %5467 = vtanh.f32 %v1907_v47  ;;  %v6401_v18 = vmul.f32 %v6363_v7, %v6363_v7 }
 0x2cd   : > { %8248 = vst [vmem:[#allocation30_spill] sm:$0xff] %v6393_v61  ;;  %v5466_v9 = vpop.eup %5465  ;;  %v2859_v57 = vadd.f32 %v2858_v39, %v2857_v48  ;;  %v2300_v44 = vrot.slane %v2299_v11, 2  ;;  %5469 = vtanh.f32 %v2057_v8  ;;  %v6405_v2 = vadd.f32 %v2650_v38, %v2649_v46 }
 0x2ce   : > { %8249 = vst [vmem:[#allocation31_spill] sm:$0xff] %v6397_v34  ;;  %v6407_v15 = vadd.f32 %v2296_v6, %v2295_v42  ;;  %v2655_v59 = vadd.f32 %v2654_v55, %v2653_v37  ;;  %v1824_v4 = vadd.f32 %v6175_v60, %v6353_v50  ;;  %v6411_v21 = vadd.f32 %v2500_v27, %v2499_v25 }
 0x2cf   : > { %v6369_v3 = vpop.f32.mrf.mxu2  ;;  %v2058_v35 = vpop.f32.mrf.mxu3  ;;  %8250 = vst [vmem:[#allocation32_spill] sm:$0xff] %v6405_v2  ;;  %v2503_v47 = vadd.f32 %v5462_v31, %v2502_v54  ;;  %v6413_v48 = vadd.f32 %v2854_v23, %v2853_v52  ;;  %v2304_v39 = vrot.slane %v5466_v9, 4  ;;  %v2864_v8 = vrot.slane %v2863_v10, 2 }
 0x2d0   : > { %v6378_v58 = vpop.f32.mrf.mxu0  ;;  %v6380_v53 = vpop.f32.mrf.mxu1  ;;  %8251 = vst [vmem:[#allocation33_spill] sm:$0xff] %v6407_v15  ;;  %v6418_v42 = vmul.f32 %v6393_v61, %v6393_v61  ;;  %v2301_v46 = vadd.f32 %v2300_v44, %v2299_v11  ;;  %v2860_v31 = vrot.slane %v2859_v57, 1  ;;  %v2656_v38 = vrot.slane %v2655_v59, 1 }
 0x2d1   : > { %8252 = vst [vmem:[#allocation34_spill] sm:$0xff] %v6411_v21  ;;  %v6432_v27 = vmul.f32 %v6411_v21, %v6411_v21  ;;  %v2504_v11 = vrot.slane %v2503_v47, 2  ;;  %v1909_v23 = vadd.f32 %v6175_v60, %v6355_v1  ;;  %v2305_v44 = vadd.f32 %v5466_v9, %v2304_v39 }
 0x2d2   : > { %8253 = vst [vmem:[#allocation35_spill] sm:$0xff] %v6413_v48  ;;  %v5468_v52 = vpop.eup %5467  ;;  %v6440_v21 = vadd.f32 %v2656_v38, %v2655_v59 }
 0x2d3   : > { %1865 = vmatmul.bf16.gmra.mxu0 %v5195_v40  ;;  %v1972_v40 = vadd.f32 %v6175_v60, %v6347_v17  ;;  %v2059_v17 = vadd.f32 %v6175_v60, %v2058_v35  ;;  %v6427_v35 = vmul.f32 %v6407_v15, %v6407_v15  ;;  %v5470_v55 = vpop.eup %5469  ;;  %8255 = vst [vmem:[#allocation37_spill] sm:$0xff] %v6432_v27  ;;  %v2306_v59 = vrot.slane %v2305_v44, 2 }
 0x2d4   : > { %2015 = vmatmul.bf16.gmra.mxu2 %v5225_v51  ;;  %2100 = vmatmul.bf16.gmra.mxu3 %v5242_v45  ;;  %v2658_v51 = vrot.slane %v5464_v26, 4  ;;  %v6438_v15 = vadd.f32 %v2860_v31, %v2859_v57  ;;  %8257 = vst [vmem:[#allocation39_spill] sm:$0xff] %v6440_v21  ;;  %v5196_v57 = vld [vmem:[%s5729_s28 + $0x78] sm:$0xff]  ;;  %v3113_v31 = vmul.f32 %v6413_v48, %v6413_v48 }
 0x2d5   : > { %5471 = vtanh.f32 %v1972_v40  ;;  %8254 = vst [vmem:[#allocation36_spill] sm:$0xff] %v6427_v35  ;;  %v1827_v40 = vadd.f32 %v6175_v60, %v6378_v58  ;;  %v1974_v58 = vadd.f32 %v6175_v60, %v6369_v3 }
 0x2d6   : > { %5473 = vtanh.f32 %v1824_v4  ;;  %v2659_v54 = vadd.f32 %v5464_v26, %v2658_v51  ;;  %v2865_v4 = vadd.f32 %v2864_v8, %v2863_v10  ;;  %8256 = vst [vmem:[#allocation38_spill] sm:$0xff] %v6438_v15  ;;  %v2868_v26 = vrot.slane %v5470_v55, 4 }
 0x2d7   : > { %v1976_v45 = vpop.f32.mrf.mxu2  ;;  %v2061_v7 = vpop.f32.mrf.mxu3  ;;  %5475 = vtanh.f32 %v2059_v17  ;;  %v2505_v51 = vadd.f32 %v2504_v11, %v2503_v47 }
 0x2d8   : > { %v6420_v37 = vpop.f32.mrf.mxu0  ;;  %v6422_v50 = vpop.f32.mrf.mxu1  ;;  %v1977_v25 = vadd.f32 %v6175_v60, %v1976_v45  ;;  %v2062_v6 = vadd.f32 %v6175_v60, %v2061_v7  ;;  %v2302_v7 = vrot.slane %v2301_v46, 1  ;;  %v2508_v45 = vrot.slane %v5468_v52, 4 }
 0x2d9   : > { %v2866_v1 = vrot.slane %v2865_v4, 1  ;;  %v2660_v39 = vrot.slane %v2659_v54, 2  ;;  %v2869_v35 = vadd.f32 %v5470_v55, %v2868_v26  ;;  %v2307_v55 = vadd.f32 %v2306_v59, %v2305_v44  ;;  %v6486_v59 = vld [vmem:[%s8072_s3] ss:$0 sm:$0xff] }
 0x2da   : > { %5477 = vtanh.f32 %v1977_v25  ;;  %v6458_v3 = vadd.f32 %v2302_v7, %v2301_v46  ;;  %v2509_v11 = vadd.f32 %v5468_v52, %v2508_v45  ;;  %v1912_v52 = vadd.f32 %v6175_v60, %v6380_v53 }
 0x2db   : > { %5479 = vtanh.f32 %v2062_v6  ;;  %v5472_v9 = vpop.eup %5471  ;;  %v6449_v25 = vadd.f32 %v2866_v1, %v2865_v4  ;;  %v5226_v6 = vld [vmem:[%s5729_s28 + $0x168] sm:$0xff]  ;;  %v5243_v4 = vld [vmem:[%s5729_s28 + $0x1f0] sm:$0xff] }
 0x2dc   : > { %5481 = vtanh.f32 %v1909_v23  ;;  %v5474_v8 = vpop.eup %5473  ;;  %8259 = vst [vmem:[#allocation41_spill] sm:$0xff] %v6458_v3  ;;  %v3114_v23 = vmul.f32 %v6438_v15, %v6438_v15  ;;  %v2664_v61 = vrot.slane %v5472_v9, 4  ;;  %v6474_v15 = vadd.f32 %v2660_v39, %v2659_v54 }
 0x2dd   : > { %5483 = vtanh.f32 %v1827_v40  ;;  %8258 = vst [vmem:[#allocation40_spill] sm:$0xff] %v6449_v25  ;;  %v3360_v40 = vsel %vm3270_vm1, %v6342_v29, %v6321_v33  ;;  %v5476_v1 = vpop.eup %5475  ;;  %v3115_v48 = vmul.f32 %v6449_v25, %v6449_v25  ;;  %v2310_v7 = vrot.slane %v5474_v8, 4 }
 0x2de   : > { %v3361_v27 = vsel %vm3272_vm2, %v6401_v18, %v3360_v40  ;;  %5485 = vtanh.f32 %v1974_v58  ;;  %v2506_v29 = vrot.slane %v2505_v51, 1  ;;  %8260 = vst [vmem:[#allocation42_spill] sm:$0xff] %v6474_v15  ;;  %v6479_v18 = vmul.f32 %v6458_v3, %v6458_v3 }
 0x2df   : > { %v6444_v10 = vpop.f32.mrf.mxu2  ;;  %v6446_v17 = vpop.f32.mrf.mxu3  ;;  %v3362_v45 = vsel %vm3274_vm3, %v6418_v42, %v3361_v27  ;;  %v2510_v58 = vrot.slane %v2509_v11, 2  ;;  %v2874_v40 = vrot.slane %v5476_v1, 4  ;;  %v2665_v42 = vadd.f32 %v5472_v9, %v2664_v61 }
 0x2e0   : > { %v6453_v47 = vpop.f32.mrf.mxu0  ;;  %v6455_v38 = vpop.f32.mrf.mxu1  ;;  %v3363_v26 = vsel %vm3276_vm4, %v3113_v31, %v3362_v45  ;;  %8261 = vst [vmem:[#allocation43_spill] sm:$0xff] %v6479_v18  ;;  %v2870_v27 = vrot.slane %v2869_v35, 2  ;;  %v2311_v44 = vadd.f32 %v5474_v8, %v2310_v7  ;;  %5487 = vtanh.f32 %v1912_v52 }
 0x2e1   : > { %v5478_v46 = vpop.eup %5477  ;;  %v3364_v60 = vsel %vm3278_vm5, %v3114_v23, %v3363_v26  ;;  %v1829_v31 = vadd.f32 %v6486_v59, %v6420_v37  ;;  %v2308_v9 = vrot.slane %v2307_v55, 1  ;;  %v6495_v45 = vadd.f32 %v2510_v58, %v2509_v11 }
 0x2e2   : > { %v5480_v33 = vpop.eup %5479  ;;  %v3365_v54 = vsel %vm3280_vm6, %v3115_v48, %v3364_v60  ;;  %v2875_v26 = vadd.f32 %v5476_v1, %v2874_v40  ;;  %v2666_v37 = vrot.slane %v2665_v42, 2  ;;  %v2871_v3 = vadd.f32 %v2870_v27, %v2869_v35 }
 0x2e3   : > { %1870 = vmatmul.bf16.gmra.mxu0 %v5196_v57  ;;  %v5482_v25 = vpop.eup %5481  ;;  %v2676_v57 = vrot.slane %v5478_v46, 4  ;;  %v2880_v39 = vrot.slane %v5480_v33, 4  ;;  %3427 = vadd.xlane.f32.xlu1 %v3365_v54  ;;  %v1914_v54 = vadd.f32 %v6486_v59, %v6422_v50  ;;  %5489 = vtanh.f32 %v1829_v31 }
 0x2e4   : > { %2020 = vmatmul.bf16.gmra.mxu2 %v5226_v6  ;;  %2105 = vmatmul.bf16.gmra.mxu3 %v5243_v4  ;;  %v5484_v53 = vpop.eup %5483  ;;  %v6490_v4 = vadd.f32 %v2506_v29, %v2505_v51  ;;  %v2514_v48 = vrot.slane %v5482_v25, 4  ;;  %v1979_v51 = vadd.f32 %v6486_v59, %v6444_v10  ;;  %v2312_v29 = vrot.slane %v2311_v44, 2 }
 0x2e5   : > { %v5486_v52 = vpop.eup %5485  ;;  %v2316_v60 = vrot.slane %v5484_v53, 4  ;;  %v2677_v18 = vadd.f32 %v5478_v46, %v2676_v57  ;;  %v2881_v61 = vadd.f32 %v5480_v33, %v2880_v39  ;;  %v2064_v34 = vadd.f32 %v6486_v59, %v6446_v17 }
 0x2e6   : > { %8262 = vst [vmem:[#allocation44_spill] sm:$0xff] %v6490_v4  ;;  %v6503_v16 = vadd.f32 %v2308_v9, %v2307_v55  ;;  %v2515_v11 = vadd.f32 %v5482_v25, %v2514_v48  ;;  %v2670_v1 = vrot.slane %v5486_v52, 4  ;;  %v1917_v58 = vadd.f32 %v6486_v59, %v6455_v38  ;;  %v5488_v50 = vpop.eup %5487  ;;  %v5197_v4 = vld [vmem:[%s5729_s28 + $0x80] sm:$0xff] }
 0x2e7   : > { %v1981_v6 = vpop.f32.mrf.mxu2  ;;  %v2066_v23 = vpop.f32.mrf.mxu3  ;;  %v2876_v40 = vrot.slane %v2875_v26, 2  ;;  %v2317_v35 = vadd.f32 %v5484_v53, %v2316_v60  ;;  %5491 = vtanh.f32 %v1914_v54  ;;  %v2872_v10 = vrot.slane %v2871_v3, 1 }
 0x2e8   : > { %v6493_v8 = vpop.f32.mrf.mxu0  ;;  %v1918_v7 = vpop.f32.mrf.mxu1  ;;  %8263 = vst [vmem:[#allocation45_spill] sm:$0xff] %v6503_v16  ;;  %v1982_v46 = vadd.f32 %v6486_v59, %v1981_v6  ;;  %v2678_v27 = vrot.slane %v2677_v18, 2  ;;  %5493 = vtanh.f32 %v1979_v51  ;;  %v1832_v33 = vadd.f32 %v6486_v59, %v6453_v47 }
 0x2e9   : > { %v2313_v17 = vadd.f32 %v2312_v29, %v2311_v44  ;;  %v2882_v55 = vrot.slane %v2881_v61, 2  ;;  %5495 = vtanh.f32 %v2064_v34  ;;  %v2067_v25 = vadd.f32 %v6486_v59, %v2066_v23  ;;  %v5490_v48 = vpop.eup %5489 }
 0x2ea   : > { %v2516_v38 = vrot.slane %v2515_v11, 2  ;;  %v2520_v31 = vrot.slane %v5488_v50, 4  ;;  %5497 = vtanh.f32 %v1917_v58  ;;  %v1919_v53 = vadd.f32 %v6486_v59, %v1918_v7 }
 0x2eb   : > { %v2512_v47 = vrot.slane %v6495_v45, 1  ;;  %v2877_v34 = vadd.f32 %v2876_v40, %v2875_v26  ;;  %v2318_v44 = vrot.slane %v2317_v35, 2  ;;  %5499 = vtanh.f32 %v1982_v46 }
 0x2ec   : > { %v6517_v23 = vadd.f32 %v2666_v37, %v2665_v42  ;;  %v6519_v60 = vadd.f32 %v5486_v52, %v2670_v1  ;;  %v2679_v54 = vadd.f32 %v2678_v27, %v2677_v18  ;;  %5501 = vtanh.f32 %v1832_v33 }
 0x2ed   : > { %v6521_v51 = vpop.eup %5491  ;;  %v6523_v7 = vadd.f32 %v2872_v10, %v2871_v3  ;;  %v2314_v29 = vrot.slane %v2313_v17, 1  ;;  %v2883_v58 = vadd.f32 %v2882_v55, %v2881_v61  ;;  %5503 = vtanh.f32 %v2067_v25 }
 0x2ee   : > { %8264 = vst [vmem:[#allocation46_spill] sm:$0xff] %v6517_v23  ;;  %v5494_v5 = vpop.eup %5493  ;;  %v6528_v26 = vadd.f32 %v2516_v38, %v2515_v11  ;;  %v2521_v40 = vadd.f32 %v5488_v50, %v2520_v31  ;;  %v2322_v42 = vrot.slane %v5490_v48, 4  ;;  %5505 = vtanh.f32 %v1919_v53 }
 0x2ef   : > { %v1983_v57 = vpop.f32.mrf.mxu2  ;;  %v6511_v39 = vpop.f32.mrf.mxu3  ;;  %8265 = vst [vmem:[#allocation47_spill] sm:$0xff] %v6519_v60  ;;  %v6532_v18 = vmul.f32 %v6503_v16, %v6503_v16  ;;  %v2878_v37 = vrot.slane %v2877_v34, 1  ;;  %v2319_v3 = vadd.f32 %v2318_v44, %v2317_v35  ;;  %v6536_v46 = vadd.f32 %v2512_v47, %v6495_v45 }
 0x2f0   : > { %v1836_v6 = vpop.f32.mrf.mxu0  ;;  %v6514_v9 = vpop.f32.mrf.mxu1  ;;  %8266 = vst [vmem:[#allocation48_spill] sm:$0xff] %v6523_v7  ;;  %v2680_v50 = vrot.slane %v2679_v54, 1  ;;  %v1984_v10 = vadd.f32 %v6486_v59, %v1983_v57  ;;  %v6542_v33 = vmul.f32 %v6523_v7, %v6523_v7  ;;  %v6544_v35 = vadd.f32 %v2314_v29, %v2313_v17 }
 0x2f1   : > { %8267 = vst [vmem:[#allocation49_spill] sm:$0xff] %v6528_v26  ;;  %v5496_v52 = vpop.eup %5495  ;;  %v1837_v1 = vadd.f32 %v6486_v59, %v1836_v6  ;;  %v2884_v55 = vrot.slane %v2883_v58, 1  ;;  %v2522_v31 = vrot.slane %v2521_v40, 2  ;;  %v2323_v53 = vadd.f32 %v5490_v48, %v2322_v42 }
 0x2f2   : > { %8268 = vst [vmem:[#allocation50_spill] sm:$0xff] %v6532_v18  ;;  %v5498_v61 = vpop.eup %5497  ;;  %v2682_v57 = vrot.slane %v5494_v5, 4  ;;  %v6549_v44 = vadd.f32 %v2878_v37, %v2877_v34  ;;  %v2320_v11 = vrot.slane %v2319_v3, 1  ;;  %v6551_v16 = vadd.f32 %v2680_v50, %v2679_v54 }
 0x2f3   : > { %1875 = vmatmul.bf16.gmra.mxu0 %v5197_v4  ;;  %8269 = vst [vmem:[#allocation51_spill] sm:$0xff] %v6536_v46  ;;  %v5500_v27 = vpop.eup %5499  ;;  %v2532_v17 = vrot.slane %v5498_v61, 4  ;;  %5507 = vtanh.f32 %v1837_v1  ;;  %v6553_v18 = vadd.f32 %v2884_v55, %v2883_v58  ;;  %v2526_v38 = vrot.slane %v6521_v51, 4 }
 0x2f4   : > { %2025 = vmatmul.bf16.gmra.mxu2 %v5227_v24  ;;  %2110 = vmatmul.bf16.gmra.mxu3 %v5244_v49  ;;  %8270 = vst [vmem:[#allocation52_spill] sm:$0xff] %v6544_v35  ;;  %v1834_v24 = vadd.f32 %v6486_v59, %v6493_v8  ;;  %v5502_v25 = vpop.eup %5501  ;;  %v2886_v8 = vrot.slane %v5496_v52, 4  ;;  %v2688_v7 = vrot.slane %v5500_v27, 4  ;;  %5509 = vtanh.f32 %v1984_v10 }
 0x2f5   : > { %v5504_v47 = vpop.eup %5503  ;;  %8271 = vst [vmem:[#allocation53_spill] sm:$0xff] %v6549_v44  ;;  %v2069_v48 = vadd.f32 %v6486_v59, %v6511_v39  ;;  %v6558_v42 = vadd.f32 %v2522_v31, %v2521_v40  ;;  %v2324_v34 = vrot.slane %v2323_v53, 2  ;;  %v2683_v37 = vadd.f32 %v5494_v5, %v2682_v57 }
 0x2f6   : > { %v5506_v29 = vpop.eup %5505  ;;  %8272 = vst [vmem:[#allocation54_spill] sm:$0xff] %v6551_v16  ;;  %5511 = vtanh.f32 %v1834_v24  ;;  %v2328_v35 = vrot.slane %v5502_v25, 4  ;;  %v6560_v1 = vadd.f32 %v2320_v11, %v2319_v3  ;;  %v2533_v54 = vadd.f32 %v5498_v61, %v2532_v17 }
 0x2f7   : > { %v1986_v4 = vpop.f32.mrf.mxu2  ;;  %v2071_v45 = vpop.f32.mrf.mxu3  ;;  %8273 = vst [vmem:[#allocation55_spill] sm:$0xff] %v6553_v18  ;;  %v2892_v50 = vrot.slane %v5504_v47, 4  ;;  %v2538_v46 = vrot.slane %v5506_v29, 4  ;;  %v6564_v58 = vmul.f32 %v6549_v44, %v6549_v44  ;;  %v2887_v10 = vadd.f32 %v5496_v52, %v2886_v8 }
 0x2f8   : > { %v1838_v49 = vpop.f32.mrf.mxu0  ;;  %v1923_v6 = vpop.f32.mrf.mxu1  ;;  %8274 = vst [vmem:[#allocation56_spill] sm:$0xff] %v6558_v42  ;;  %v2689_v55 = vadd.f32 %v5500_v27, %v2688_v7  ;;  %v1922_v24 = vadd.f32 %v6486_v59, %v6514_v9  ;;  %v6570_v40 = vmul.f32 %v6551_v16, %v6551_v16  ;;  %v6574_v5 = vmul.f32 %v6553_v18, %v6553_v18 }
 0x2f9   : > { %8275 = vst [vmem:[#allocation57_spill] sm:$0xff] %v6560_v1  ;;  %v5508_v39 = vpop.eup %5507  ;;  %v6577_v3 = vadd.f32 %v6521_v51, %v2526_v38  ;;  %5513 = vtanh.f32 %v2069_v48  ;;  %v6579_v7 = vadd.f32 %v2324_v34, %v2323_v53  ;;  %v2684_v27 = vrot.slane %v2683_v37, 2 }
 0x2fa   : > { %v5510_v52 = vpop.eup %5509  ;;  %v2329_v9 = vadd.f32 %v5502_v25, %v2328_v35  ;;  %5515 = vtanh.f32 %v1922_v24  ;;  %v2534_v8 = vrot.slane %v2533_v54, 2  ;;  %v2893_v16 = vadd.f32 %v5504_v47, %v2892_v50 }
 0x2fb   : > { %8276 = vst [vmem:[#allocation58_spill] sm:$0xff] %v6577_v3  ;;  %v2539_v18 = vadd.f32 %v5506_v29, %v2538_v46  ;;  %v1987_v44 = vadd.f32 %v6486_v59, %v1986_v4  ;;  %v2888_v51 = vrot.slane %v2887_v10, 2  ;;  %v2690_v38 = vrot.slane %v2689_v55, 2 }
 0x2fc   : > { %8277 = vst [vmem:[#allocation59_spill] sm:$0xff] %v6579_v7  ;;  %v5512_v17 = vpop.eup %5511  ;;  %v2340_v48 = vrot.slane %v5508_v39, 4  ;;  %v2072_v1 = vadd.f32 %v6486_v59, %v2071_v45  ;;  %v2694_v34 = vrot.slane %v5510_v52, 4  ;;  %v1839_v35 = vadd.f32 %v6486_v59, %v1838_v49 }
 0x2fd   : > { %5517 = vtanh.f32 %v1987_v44  ;;  %v2685_v24 = vadd.f32 %v2684_v27, %v2683_v37  ;;  %v2330_v42 = vrot.slane %v2329_v9, 2  ;;  %v2334_v26 = vrot.slane %v5512_v17, 4 }
 0x2fe   : > { %v2535_v46 = vadd.f32 %v2534_v8, %v2533_v54  ;;  %v2894_v29 = vrot.slane %v2893_v16, 2  ;;  %v2540_v4 = vrot.slane %v2539_v18, 2  ;;  %v1924_v50 = vadd.f32 %v6486_v59, %v1923_v6 }
 0x2ff   : > { %v1988_v61 = vpop.f32.mrf.mxu2  ;;  %v2073_v11 = vpop.f32.mrf.mxu3  ;;  %v2889_v60 = vadd.f32 %v2888_v51, %v2887_v10  ;;  %v2691_v45 = vadd.f32 %v2690_v38, %v2689_v55  ;;  %v2341_v23 = vadd.f32 %v5508_v39, %v2340_v48  ;;  %5519 = vtanh.f32 %v2072_v1 }
 0x300   : > { %v1841_v31 = vpop.f32.mrf.mxu0  ;;  %v6581_v57 = vpop.f32.mrf.mxu1  ;;  %v2695_v53 = vadd.f32 %v5510_v52, %v2694_v34  ;;  %5521 = vtanh.f32 %v1839_v35  ;;  %v2074_v49 = vadd.f32 %v6486_v59, %v2073_v11  ;;  %v2686_v27 = vrot.slane %v2685_v24, 1 }
 0x301   : > { %v5514_v47 = vpop.eup %5513  ;;  %v6592_v7 = vadd.f32 %v5512_v17, %v2334_v26  ;;  %v1989_v8 = vadd.f32 %v6486_v59, %v1988_v61  ;;  %v2536_v10 = vrot.slane %v2535_v46, 1  ;;  %v2895_v55 = vadd.f32 %v2894_v29, %v2893_v16 }
 0x302   : > { %v5516_v21 = vpop.eup %5515  ;;  %v2898_v54 = vrot.slane %v5514_v47, 4  ;;  %v2541_v39 = vadd.f32 %v2540_v4, %v2539_v18  ;;  %5523 = vtanh.f32 %v1924_v50  ;;  %v2890_v1 = vrot.slane %v2889_v60, 1 }
 0x303   : > { %v2544_v44 = vrot.slane %v5516_v21, 4  ;;  %8278 = vst [vmem:[#allocation60_spill] sm:$0xff] %v6592_v7  ;;  %v5518_v3 = vpop.eup %5517  ;;  %v2692_v52 = vrot.slane %v2691_v45, 1  ;;  %v2342_v51 = vrot.slane %v2341_v23, 2  ;;  %v2696_v48 = vrot.slane %v2695_v53, 2 }
 0x304   : > { %v2700_v34 = vrot.slane %v5518_v3, 4  ;;  %5525 = vtanh.f32 %v2074_v49  ;;  %v1842_v26 = vadd.f32 %v6486_v59, %v1841_v31  ;;  %v6598_v35 = vadd.f32 %v2686_v27, %v2685_v24 }
 0x305   : > { %v2545_v38 = vadd.f32 %v5516_v21, %v2544_v44  ;;  %v5520_v17 = vpop.eup %5519  ;;  %v6600_v61 = vadd.f32 %v2330_v42, %v2329_v9  ;;  %v2899_v15 = vadd.f32 %v5514_v47, %v2898_v54  ;;  %5527 = vtanh.f32 %v1989_v8 }
 0x306   : > { %8279 = vst [vmem:[#allocation61_spill] sm:$0xff] %v6598_v35  ;;  %v5522_v16 = vpop.eup %5521  ;;  %v6602_v18 = vadd.f32 %v2536_v10, %v2535_v46  ;;  %v2896_v29 = vrot.slane %v2895_v55, 1  ;;  %v2542_v4 = vrot.slane %v2541_v39, 1  ;;  %v6605_v50 = vadd.f32 %v2890_v1, %v2889_v60 }
 0x307   : > { %v6590_v25 = vpop.f32.mrf.mxu2  ;;  %v2076_v37 = vpop.f32.mrf.mxu3  ;;  %8280 = vst [vmem:[#allocation62_spill] sm:$0xff] %v6600_v61  ;;  %v6607_v44 = vadd.f32 %v2692_v52, %v2691_v45  ;;  %v2343_v49 = vadd.f32 %v2342_v51, %v2341_v23  ;;  %v2546_v31 = vrot.slane %v2545_v38, 2  ;;  %v2697_v24 = vadd.f32 %v2696_v48, %v2695_v53 }
 0x308   : > { %v1843_v6 = vpop.f32.mrf.mxu0  ;;  %v6595_v11 = vpop.f32.mrf.mxu1  ;;  %8281 = vst [vmem:[#allocation63_spill] sm:$0xff] %v6602_v18  ;;  %v2701_v27 = vadd.f32 %v5518_v3, %v2700_v34  ;;  %v2904_v42 = vrot.slane %v5520_v17, 4  ;;  %5529 = vtanh.f32 %v1842_v26  ;;  %v6613_v46 = vmul.f32 %v6598_v35, %v6598_v35 }
 0x309   : > { %8282 = vst [vmem:[#allocation64_spill] sm:$0xff] %v6605_v50  ;;  %v5524_v22 = vpop.eup %5523  ;;  %v2900_v54 = vrot.slane %v2899_v15, 2  ;;  %v2346_v8 = vrot.slane %v5522_v16, 4  ;;  %v2077_v60 = vadd.f32 %v6486_v59, %v2076_v37  ;;  %v6620_v53 = vmul.f32 %v6602_v18, %v6602_v18 }
 0x30a   : > { %8283 = vst [vmem:[#allocation65_spill] sm:$0xff] %v6607_v44  ;;  %v5526_v23 = vpop.eup %5525  ;;  %v6622_v3 = vadd.f32 %v2896_v29, %v2895_v55  ;;  %v6624_v10 = vadd.f32 %v2542_v4, %v2541_v39  ;;  %v1927_v1 = vadd.f32 %v6486_v59, %v6581_v57  ;;  %v6630_v51 = vmul.f32 %v6607_v44, %v6607_v44 }
 0x30b   : > { %8284 = vst [vmem:[#allocation66_spill] sm:$0xff] %v6620_v53  ;;  %v5528_v52 = vpop.eup %5527  ;;  %v2344_v37 = vrot.slane %v2343_v49, 1  ;;  %v2547_v48 = vadd.f32 %v2546_v31, %v2545_v38  ;;  %v2550_v34 = vrot.slane %v5524_v22, 4  ;;  %v2698_v26 = vrot.slane %v2697_v24, 1 }
 0x30c   : > { %8285 = vst [vmem:[#allocation67_spill] sm:$0xff] %v6622_v3  ;;  %v2702_v21 = vrot.slane %v2701_v27, 2  ;;  %v2905_v35 = vadd.f32 %v5520_v17, %v2904_v42  ;;  %v1844_v18 = vadd.f32 %v6486_v59, %v1843_v6  ;;  %v2901_v55 = vadd.f32 %v2900_v54, %v2899_v15 }
 0x30d   : > { %8286 = vst [vmem:[#allocation68_spill] sm:$0xff] %v6624_v10  ;;  %v2347_v29 = vadd.f32 %v5522_v16, %v2346_v8  ;;  %v2910_v39 = vrot.slane %v5526_v23, 4  ;;  %5531 = vtanh.f32 %v2077_v60  ;;  %v6637_v7 = vmul.f32 %v6624_v10, %v6624_v10 }
 0x30e   : > { %v5530_v57 = vpop.eup %5529  ;;  %v2706_v44 = vrot.slane %v5528_v52, 4  ;;  %5533 = vtanh.f32 %v1927_v1  ;;  %v3366_v38 = vsel %vm3268_vm0, %v6564_v58, %v6542_v33  ;;  %v6642_v17 = vadd.f32 %v2344_v37, %v2343_v49 }
 0x30f   : > { %v6609_v9 = vpop.f32.mrf.mxu2  ;;  %v2078_v47 = vpop.f32.mrf.mxu3  ;;  %8287 = vst [vmem:[#allocation69_spill] sm:$0xff] %v6637_v7  ;;  %v2548_v6 = vrot.slane %v2547_v48, 1  ;;  %v2551_v15 = vadd.f32 %v5524_v22, %v2550_v34  ;;  %v1992_v16 = vadd.f32 %v6486_v59, %v6590_v25  ;;  %v2703_v31 = vadd.f32 %v2702_v21, %v2701_v27 }
 0x310   : > { %v6616_v45 = vpop.f32.mrf.mxu0  ;;  %v6633_v4 = vpop.f32.mrf.mxu1  ;;  %8288 = vst [vmem:[#allocation70_spill] sm:$0xff] %v6642_v17  ;;  %v2906_v42 = vrot.slane %v2905_v35, 2  ;;  %5535 = vtanh.f32 %v1844_v18  ;;  %v3119_v60 = vmul.f32 %v6605_v50, %v6605_v50  ;;  %v2348_v1 = vrot.slane %v2347_v29, 2 }
 0x311   : > { %v2911_v10 = vadd.f32 %v5526_v23, %v2910_v39  ;;  %v2352_v33 = vrot.slane %v5530_v57, 4  ;;  %v1929_v58 = vadd.f32 %v6486_v59, %v6595_v11  ;;  %v6656_v49 = vadd.f32 %v2698_v26, %v2697_v24 }
 0x312   : > { %v2902_v25 = vrot.slane %v2901_v55, 1  ;;  %v2707_v21 = vadd.f32 %v5528_v52, %v2706_v44  ;;  %v3367_v18 = vsel %vm3270_vm1, %v6574_v5, %v3366_v38  ;;  %v6660_v37 = vadd.f32 %v2548_v6, %v2547_v48 }
 0x313   : > { %8289 = vst [vmem:[#allocation71_spill] sm:$0xff] %v6656_v49  ;;  %v5532_v27 = vpop.eup %5531  ;;  %v2552_v34 = vrot.slane %v2551_v15, 2  ;;  %5537 = vtanh.f32 %v1992_v16  ;;  %v2079_v23 = vadd.f32 %v6486_v59, %v2078_v47  ;;  %v6665_v11 = vmul.f32 %v6642_v17, %v6642_v17 }
 0x314   : > { %8290 = vst [vmem:[#allocation72_spill] sm:$0xff] %v6660_v37  ;;  %v5534_v39 = vpop.eup %5533  ;;  %v2704_v50 = vrot.slane %v2703_v31, 1  ;;  %v2907_v24 = vadd.f32 %v2906_v42, %v2905_v35  ;;  %v3368_v26 = vsel %vm3272_vm2, %v3119_v60, %v3367_v18  ;;  %v2349_v44 = vadd.f32 %v2348_v1, %v2347_v29 }
 0x315   : > { %8291 = vst [vmem:[#allocation73_spill] sm:$0xff] %v6665_v11  ;;  %v2912_v52 = vrot.slane %v2911_v10, 2  ;;  %v2353_v61 = vadd.f32 %v5530_v57, %v2352_v33  ;;  %5539 = vtanh.f32 %v1929_v58  ;;  %v2708_v48 = vrot.slane %v2707_v21, 2 }
 0x316   : > { %v5536_v5 = vpop.eup %5535  ;;  %v2916_v38 = vrot.slane %v5532_v27, 4  ;;  %5541 = vtanh.f32 %v2079_v23  ;;  %v6671_v47 = vsel %vm3268_vm0, %v6613_v46, %v6570_v40  ;;  %v6675_v6 = vmul.f32 %v6660_v37, %v6660_v37 }
 0x317   : > { %v6646_v54 = vpop.f32.mrf.mxu2  ;;  %v6648_v8 = vpop.f32.mrf.mxu3  ;;  %v6677_v35 = vadd.f32 %v2552_v34, %v2551_v15  ;;  %v2556_v16 = vrot.slane %v5534_v39, 4  ;;  %v1994_v29 = vadd.f32 %v6486_v59, %v6609_v9  ;;  %v6683_v42 = vadd.f32 %v2704_v50, %v2703_v31 }
 0x318   : > { %v6654_v22 = vpop.f32.mrf.mxu0  ;;  %8292 = vst [vmem:[#allocation74_spill] sm:$0xff] %v6675_v6  ;;  %v6681_v57 = vpop.f32.mrf.mxu1  ;;  %v1847_v60 = vadd.f32 %v6486_v59, %v6616_v45  ;;  %v6687_v1 = vadd.f32 %v2902_v25, %v2901_v55  ;;  %v2908_v40 = vrot.slane %v2907_v24, 1  ;;  %v2350_v15 = vrot.slane %v2349_v44, 1 }
 0x319   : > { %8293 = vst [vmem:[#allocation75_spill] sm:$0xff] %v6683_v42  ;;  %v5538_v58 = vpop.eup %5537  ;;  %v2354_v18 = vrot.slane %v2353_v61, 2  ;;  %v2358_v34 = vrot.slane %v5536_v5, 4  ;;  %v2913_v23 = vadd.f32 %v2912_v52, %v2911_v10  ;;  %v6693_v9 = vadd.f32 %v2708_v48, %v2707_v21 }
 0x31a   : > { %8294 = vst [vmem:[#allocation76_spill] sm:$0xff] %v6687_v1  ;;  %v2917_v50 = vadd.f32 %v5532_v27, %v2916_v38  ;;  %v6695_v31 = vadd.f32 %v2908_v40, %v2907_v24  ;;  %v3120_v45 = vmul.f32 %v6622_v3, %v6622_v3  ;;  %5543 = vtanh.f32 %v1994_v29 }
 0x31b   : > { %v5540_v55 = vpop.eup %5539  ;;  %v1932_v25 = vadd.f32 %v6486_v59, %v6633_v4  ;;  %v2914_v37 = vrot.slane %v2913_v23, 1  ;;  %v3121_v11 = vmul.f32 %v6687_v1, %v6687_v1  ;;  %v2557_v52 = vadd.f32 %v5534_v39, %v2556_v16 }
 0x31c   : > { %8295 = vst [vmem:[#allocation77_spill] sm:$0xff] %v6695_v31  ;;  %v5542_v10 = vpop.eup %5541  ;;  %v2712_v6 = vrot.slane %v5538_v58, 4  ;;  %5545 = vtanh.f32 %v1847_v60  ;;  %v3122_v21 = vmul.f32 %v6695_v31, %v6695_v31  ;;  %v2355_v27 = vadd.f32 %v2354_v18, %v2353_v61 }
 0x31d   : > { %v2359_v24 = vadd.f32 %v5536_v5, %v2358_v34  ;;  %v1997_v48 = vadd.f32 %v6486_v59, %v6646_v54  ;;  %v6707_v38 = vadd.f32 %v2914_v37, %v2913_v23  ;;  %v2918_v29 = vrot.slane %v2917_v50, 2 }
 0x31e   : > { %v2562_v4 = vrot.slane %v5540_v55, 4  ;;  %v2082_v40 = vadd.f32 %v6486_v59, %v6648_v8  ;;  %v3369_v1 = vsel %vm3274_vm3, %v3120_v45, %v3368_v26  ;;  %v2922_v39 = vrot.slane %v5542_v10, 4 }
 0x31f   : > { %v1998_v46 = vpop.f32.mrf.mxu2  ;;  %v6689_v33 = vpop.f32.mrf.mxu3  ;;  %8296 = vst [vmem:[#allocation78_spill] sm:$0xff] %v6707_v38  ;;  %5547 = vtanh.f32 %v1932_v25  ;;  %v3123_v16 = vmul.f32 %v6707_v38, %v6707_v38  ;;  %v3370_v61 = vsel %vm3276_vm4, %v3121_v11, %v3369_v1  ;;  %v6715_v5 = vadd.f32 %v2350_v15, %v2349_v44 }
 0x320   : > { %v6691_v17 = vpop.f32.mrf.mxu0  ;;  %v2554_v54 = vrot.slane %v6677_v35, 1  ;;  %v3371_v60 = vsel %vm3278_vm5, %v3122_v21, %v3370_v61  ;;  %v5544_v18 = vpop.eup %5543  ;;  %v2558_v34 = vrot.slane %v2557_v52, 2  ;;  %v2360_v8 = vrot.slane %v2359_v24, 2 }
 0x321   : > { %8297 = vst [vmem:[#allocation79_spill] sm:$0xff] %v6715_v5  ;;  %5549 = vtanh.f32 %v1997_v48  ;;  %v3372_v26 = vsel %vm3280_vm6, %v3123_v16, %v3371_v60  ;;  %v2713_v38 = vadd.f32 %v5538_v58, %v2712_v6  ;;  %v2919_v31 = vadd.f32 %v2918_v29, %v2917_v50  ;;  %v1936_v1 = vpop.f32.mrf.mxu1 }
 0x322   : > { %v5546_v25 = vpop.eup %5545  ;;  %v2563_v11 = vadd.f32 %v5540_v55, %v2562_v4  ;;  %3429 = vadd.xlane.f32.xlu1 %v3372_v26  ;;  %v1999_v44 = vadd.f32 %v6486_v59, %v1998_v46  ;;  %v2356_v37 = vrot.slane %v2355_v27, 1  ;;  %v2923_v21 = vadd.f32 %v5542_v10, %v2922_v39 }
 0x323   : > { %5551 = vtanh.f32 %v2082_v40  ;;  %v1937_v61 = vadd.f32 %v6486_v59, %v1936_v1  ;;  %v6727_v48 = vmul.f32 %v6715_v5, %v6715_v5  ;;  %v6730_v16 = vadd.f32 %v2554_v54, %v6677_v35 }
 0x324   : > { %v2718_v6 = vrot.slane %v5544_v18, 4  ;;  %v2559_v46 = vadd.f32 %v2558_v34, %v2557_v52  ;;  %v2361_v55 = vadd.f32 %v2360_v8, %v2359_v24  ;;  %v2364_v29 = vrot.slane %v5546_v25, 4 }
 0x325   : > { %8298 = vst [vmem:[#allocation80_spill] sm:$0xff] %v6727_v48  ;;  %v5548_v50 = vpop.eup %5547  ;;  %v1849_v10 = vadd.f32 %v6486_v59, %v6654_v22  ;;  %v2920_v4 = vrot.slane %v2919_v31, 1  ;;  %v2564_v40 = vrot.slane %v2563_v11, 2  ;;  %5553 = vtanh.f32 %v1999_v44 }
 0x326   : > { %8299 = vst [vmem:[#allocation81_spill] sm:$0xff] %v6730_v16  ;;  %v2084_v39 = vadd.f32 %v6486_v59, %v6689_v33  ;;  %v6737_v26 = vadd.f32 %v2356_v37, %v2355_v27  ;;  %v2714_v35 = vrot.slane %v2713_v38, 2  ;;  %v2924_v54 = vrot.slane %v2923_v21, 2 }
 0x327   : > { %v2001_v23 = vpop.f32.mrf.mxu2  ;;  %v2086_v45 = vpop.f32.mrf.mxu3  ;;  %5555 = vtanh.f32 %v1937_v61  ;;  %v2568_v1 = vrot.slane %v5548_v50, 4  ;;  %v1934_v52 = vadd.f32 %v6486_v59, %v6681_v57  ;;  %v2560_v22 = vrot.slane %v2559_v46, 1 }
 0x328   : > { %v6722_v15 = vpop.f32.mrf.mxu0  ;;  %v2002_v58 = vadd.f32 %v6486_v59, %v2001_v23  ;;  %v5550_v60 = vpop.eup %5549  ;;  %8300 = vst [vmem:[#allocation82_spill] sm:$0xff] %v6737_v26  ;;  %v2719_v23 = vadd.f32 %v5544_v18, %v2718_v6  ;;  %v2362_v34 = vrot.slane %v2361_v55, 1  ;;  %v2365_v8 = vadd.f32 %v5546_v25, %v2364_v29 }
 0x329   : > { %v5552_v24 = vpop.eup %5551  ;;  %v6741_v44 = vadd.f32 %v2920_v4, %v2919_v31  ;;  %v6743_v33 = vadd.f32 %v2564_v40, %v2563_v11  ;;  %v2724_v27 = vrot.slane %v5550_v60, 4  ;;  %v2715_v37 = vadd.f32 %v2714_v35, %v2713_v38 }
 0x32a   : > { %5557 = vtanh.f32 %v2002_v58  ;;  %v2925_v5 = vadd.f32 %v2924_v54, %v2923_v21  ;;  %v1852_v18 = vadd.f32 %v6486_v59, %v6691_v17  ;;  %v2087_v61 = vadd.f32 %v6486_v59, %v2086_v45 }
 0x32b   : > { %5559 = vtanh.f32 %v1849_v10  ;;  %8301 = vst [vmem:[#allocation83_spill] sm:$0xff] %v6741_v44  ;;  %v5554_v58 = vpop.eup %5553  ;;  %v2720_v25 = vrot.slane %v2719_v23, 2  ;;  %v2569_v29 = vadd.f32 %v5548_v50, %v2568_v1  ;;  %v2928_v31 = vrot.slane %v5552_v24, 4 }
 0x32c   : > { %8302 = vst [vmem:[#allocation84_spill] sm:$0xff] %v6743_v33  ;;  %5561 = vtanh.f32 %v2084_v39  ;;  %v6756_v38 = vmul.f32 %v6737_v26, %v6737_v26  ;;  %v6758_v21 = vadd.f32 %v2560_v22, %v2559_v46  ;;  %v2366_v17 = vrot.slane %v2365_v8, 2 }
 0x32d   : > { %5563 = vtanh.f32 %v1934_v52  ;;  %v5556_v10 = vpop.eup %5555  ;;  %v6762_v4 = vmul.f32 %v6741_v44, %v6741_v44  ;;  %v6764_v40 = vadd.f32 %v2362_v34, %v2361_v55  ;;  %v2725_v39 = vadd.f32 %v5550_v60, %v2724_v27 }
 0x32e   : > { %8303 = vst [vmem:[#allocation85_spill] sm:$0xff] %v6756_v38  ;;  %5565 = vtanh.f32 %v2087_v61  ;;  %v2926_v54 = vrot.slane %v2925_v5, 1  ;;  %v2730_v1 = vrot.slane %v5554_v58, 4  ;;  %v2716_v52 = vrot.slane %v2715_v37, 1 }
 0x32f   : > { %v6748_v57 = vpop.f32.mrf.mxu2  ;;  %v6750_v6 = vpop.f32.mrf.mxu3  ;;  %8304 = vst [vmem:[#allocation86_spill] sm:$0xff] %v6758_v21  ;;  %5567 = vtanh.f32 %v1852_v18  ;;  %v2570_v46 = vrot.slane %v2569_v29, 2  ;;  %v2929_v22 = vadd.f32 %v5552_v24, %v2928_v31  ;;  %v8306_v61 = vrot.slane %v6693_v9, 1 }
 0x330   : > { %v6752_v11 = vpop.f32.mrf.mxu0  ;;  %v5558_v45 = vpop.eup %5557  ;;  %8305 = vst [vmem:[#allocation87_spill] sm:$0xff] %v6764_v40  ;;  %v2721_v44 = vadd.f32 %v2720_v25, %v2719_v23  ;;  %v6772_v38 = vadd.f32 %v2366_v17, %v2365_v8  ;;  %v2580_v55 = vrot.slane %v5556_v10, 4  ;;  %v6774_v50 = vadd.f32 %v2716_v52, %v2715_v37 }
 0x331   : > { %v5560_v35 = vpop.eup %5559  ;;  %v6770_v3 = vadd.f32 %v8306_v61, %v6693_v9  ;;  %v2736_v34 = vrot.slane %v5558_v45, 4  ;;  %v2726_v27 = vrot.slane %v2725_v39, 2  ;;  %v3087_v24 = vmul.f32 %v6656_v49, %v6656_v49  ;;  %v1938_v31 = vpop.f32.mrf.mxu1 }
 0x332   : > { %v5562_v26 = vpop.eup %5561  ;;  %8308 = vst [vmem:[#allocation89_spill] sm:$0xff] %v6774_v50  ;;  %v2370_v18 = vrot.slane %v5560_v35, 4  ;;  %v2722_v48 = vrot.slane %v2721_v44, 1  ;;  %v6780_v7 = vadd.f32 %v2926_v54, %v2925_v5  ;;  %v2731_v9 = vadd.f32 %v5554_v58, %v2730_v1 }
 0x333   : > { %8307 = vst [vmem:[#allocation88_spill] sm:$0xff] %v6770_v3  ;;  %v6776_v60 = vpop.eup %5563  ;;  %v2934_v23 = vrot.slane %v5562_v26, 4  ;;  %v3088_v8 = vmul.f32 %v6683_v42, %v6683_v42  ;;  %v6784_v17 = vadd.f32 %v2570_v46, %v2569_v29  ;;  %v2930_v52 = vrot.slane %v2929_v22, 2 }
 0x334   : > { %v5566_v40 = vpop.eup %5565  ;;  %8309 = vst [vmem:[#allocation90_spill] sm:$0xff] %v6780_v7  ;;  %v6786_v61 = vadd.f32 %v2722_v48, %v2721_v44  ;;  %v3089_v53 = vmul.f32 %v6770_v3, %v6770_v3  ;;  %v2581_v5 = vadd.f32 %v5556_v10, %v2580_v55  ;;  %v2737_v54 = vadd.f32 %v5558_v45, %v2736_v34 }
 0x335   : > { %8310 = vst [vmem:[#allocation91_spill] sm:$0xff] %v6784_v17  ;;  %v5568_v21 = vpop.eup %5567  ;;  %v3090_v58 = vmul.f32 %v6774_v50, %v6774_v50  ;;  %v3339_v1 = vsel %vm3270_vm1, %v6630_v51, %v6671_v47  ;;  %v2574_v29 = vrot.slane %v6776_v60, 4  ;;  %v2940_v46 = vrot.slane %v5566_v40, 4 }
 0x336   : > { %8311 = vst [vmem:[#allocation92_spill] sm:$0xff] %v6786_v61  ;;  %v3091_v48 = vmul.f32 %v6786_v61, %v6786_v61  ;;  %v3340_v44 = vsel %vm3272_vm2, %v3087_v24, %v3339_v1  ;;  %v2732_v3 = vrot.slane %v2731_v9, 2  ;;  %v2935_v42 = vadd.f32 %v5562_v26, %v2934_v23 }
 0x337   : > { %v2006_v25 = vpop.f32.mrf.mxu2  ;;  %v2091_v37 = vpop.f32.mrf.mxu3  ;;  %v3341_v10 = vsel %vm3274_vm3, %v3088_v8, %v3340_v44  ;;  %v1939_v45 = vadd.f32 %v6486_v59, %v1938_v31  ;;  %v2727_v55 = vadd.f32 %v2726_v27, %v2725_v39  ;;  %v2371_v34 = vadd.f32 %v5560_v35, %v2370_v18 }
 0x338   : > { %v6790_v49 = vpop.f32.mrf.mxu0  ;;  %v3342_v50 = vsel %vm3276_vm4, %v3089_v53, %v3341_v10  ;;  %v2004_v51 = vadd.f32 %v6486_v59, %v6748_v57  ;;  %v2931_v47 = vadd.f32 %v2930_v52, %v2929_v22  ;;  %v2582_v16 = vrot.slane %v2581_v5, 2 }
 0x339   : > { %v2738_v17 = vrot.slane %v2737_v54, 2  ;;  %v3343_v61 = vsel %vm3278_vm5, %v3090_v58, %v3342_v50  ;;  %v2376_v33 = vrot.slane %v5568_v21, 4  ;;  %v2941_v24 = vadd.f32 %v5566_v40, %v2940_v46  ;;  %v1941_v50 = vpop.f32.mrf.mxu1 }
 0x33a   : > { %v3344_v26 = vsel %vm3280_vm6, %v3091_v48, %v3343_v61  ;;  %v1854_v23 = vadd.f32 %v6486_v59, %v6722_v15  ;;  %v2733_v31 = vadd.f32 %v2732_v3, %v2731_v9  ;;  %v2936_v39 = vrot.slane %v2935_v42, 2 }
 0x33b   : > { %3421 = vadd.xlane.f32.xlu1 %v3344_v26  ;;  %5569 = vtanh.f32 %v1939_v45  ;;  %v1857_v53 = vadd.f32 %v6486_v59, %v6752_v11  ;;  %v2728_v22 = vrot.slane %v2727_v55, 1  ;;  %v2372_v27 = vrot.slane %v2371_v34, 2 }
 0x33c   : > { %5571 = vtanh.f32 %v2004_v51  ;;  %v2089_v40 = vadd.f32 %v6486_v59, %v6750_v6  ;;  %v2932_v8 = vrot.slane %v2931_v47, 1  ;;  %v2583_v15 = vadd.f32 %v2582_v16, %v2581_v5 }
 0x33d   : > { %v2739_v3 = vadd.f32 %v2738_v17, %v2737_v54  ;;  %v1942_v9 = vadd.f32 %v6486_v59, %v1941_v50  ;;  %v2377_v52 = vadd.f32 %v5568_v21, %v2376_v33  ;;  %v2942_v61 = vrot.slane %v2941_v24, 2 }
 0x33e   : > { %5573 = vtanh.f32 %v1854_v23  ;;  %v2092_v11 = vadd.f32 %v6486_v59, %v2091_v37  ;;  %v2734_v58 = vrot.slane %v2733_v31, 1  ;;  %v2937_v1 = vadd.f32 %v2936_v39, %v2935_v42 }
 0x33f   : > { %v6812_v57 = vpop.f32.mrf.mxu2  ;;  %v2093_v35 = vpop.f32.mrf.mxu3  ;;  %5575 = vtanh.f32 %v1857_v53  ;;  %v2007_v46 = vadd.f32 %v6486_v59, %v2006_v25  ;;  %v2368_v48 = vrot.slane %v6772_v38, 1  ;;  %v6821_v6 = vadd.f32 %v6776_v60, %v2574_v29 }
 0x340   : > { %v1861_v18 = vpop.f32.mrf.mxu0  ;;  %5577 = vtanh.f32 %v2089_v40  ;;  %v2094_v16 = vadd.f32 %v6486_v59, %v2093_v35  ;;  %v6824_v5 = vadd.f32 %v2728_v22, %v2727_v55  ;;  %v2584_v33 = vrot.slane %v2583_v15, 1 }
 0x341   : > { %8312 = vst [vmem:[#allocation93_spill] sm:$0xff] %v6821_v6  ;;  %v5570_v17 = vpop.eup %5569  ;;  %v2740_v21 = vrot.slane %v2739_v3, 1  ;;  %5579 = vtanh.f32 %v1942_v9  ;;  %v6826_v54 = vadd.f32 %v2932_v8, %v2931_v47  ;;  %v6828_v42 = vadd.f32 %v2372_v27, %v2371_v34 }
 0x342   : > { %8313 = vst [vmem:[#allocation94_spill] sm:$0xff] %v6824_v5  ;;  %v5572_v37 = vpop.eup %5571  ;;  %v2943_v25 = vadd.f32 %v2942_v61, %v2941_v24  ;;  %5581 = vtanh.f32 %v2092_v11  ;;  %v6830_v44 = vadd.f32 %v2734_v58, %v2733_v31  ;;  %v2938_v60 = vrot.slane %v2937_v1, 1  ;;  %v6866_v58 = vld [vmem:[%s8072_s3] ss:$0 sm:$0xff] }
 0x343   : > { %8314 = vst [vmem:[#allocation95_spill] sm:$0xff] %v6826_v54  ;;  %v2378_v29 = vrot.slane %v2377_v52, 2  ;;  %5583 = vtanh.f32 %v2007_v46  ;;  %v3125_v51 = vmul.f32 %v6780_v7, %v6780_v7  ;;  %v2586_v26 = vrot.slane %v5570_v17, 4 }
 0x344   : > { %8315 = vst [vmem:[#allocation96_spill] sm:$0xff] %v6828_v42  ;;  %v5574_v55 = vpop.eup %5573  ;;  %v1859_v47 = vadd.f32 %v6486_v59, %v6790_v49  ;;  %5585 = vtanh.f32 %v2094_v16  ;;  %v6839_v24 = vadd.f32 %v2368_v48, %v6772_v38  ;;  %v6841_v23 = vadd.f32 %v2584_v33, %v2583_v15  ;;  %v1943_v49 = vpop.f32.mrf.mxu1 }
 0x345   : > { %8316 = vst [vmem:[#allocation97_spill] sm:$0xff] %v6830_v44  ;;  %v5576_v34 = vpop.eup %5575  ;;  %v6843_v31 = vadd.f32 %v2740_v21, %v2739_v3  ;;  %v2742_v39 = vrot.slane %v5572_v37, 4  ;;  %v6847_v35 = vmul.f32 %v6824_v5, %v6824_v5  ;;  %v2944_v59 = vrot.slane %v2943_v25, 1 }
 0x346   : > { %8317 = vst [vmem:[#allocation98_spill] sm:$0xff] %v6839_v24  ;;  %v5578_v53 = vpop.eup %5577  ;;  %v6853_v38 = vmul.f32 %v6826_v54, %v6826_v54  ;;  %v6857_v8 = vmul.f32 %v6830_v44, %v6830_v44  ;;  %v6859_v15 = vadd.f32 %v2938_v60, %v2937_v1  ;;  %v6861_v3 = vadd.f32 %v2378_v29, %v2377_v52 }
 0x347   : > { %v2011_v10 = vpop.f32.mrf.mxu2  ;;  %v6832_v45 = vpop.f32.mrf.mxu3  ;;  %8318 = vst [vmem:[#allocation99_spill] sm:$0xff] %v6841_v23  ;;  %v2587_v61 = vadd.f32 %v5570_v17, %v2586_v26  ;;  %v2388_v11 = vrot.slane %v5576_v34, 4  ;;  %5587 = vtanh.f32 %v1859_v47  ;;  %v1862_v46 = vadd.f32 %v6866_v58, %v1861_v18 }
 0x348   : > { %8319 = vst [vmem:[#allocation100_spill] sm:$0xff] %v6843_v31  ;;  %v1863_v40 = vpop.f32.mrf.mxu0  ;;  %v5580_v50 = vpop.eup %5579  ;;  %v6871_v16 = vmul.f32 %v6841_v23, %v6841_v23  ;;  %v6875_v52 = vmul.f32 %v6843_v31, %v6843_v31  ;;  %v2743_v1 = vadd.f32 %v5572_v37, %v2742_v39  ;;  %v1944_v17 = vadd.f32 %v6866_v58, %v1943_v49 }
 0x349   : > { %8320 = vst [vmem:[#allocation101_spill] sm:$0xff] %v6861_v3  ;;  %v5582_v9 = vpop.eup %5581  ;;  %v6878_v21 = vadd.f32 %v2944_v59, %v2943_v25  ;;  %v2946_v60 = vrot.slane %v5578_v53, 4  ;;  %v2592_v29 = vrot.slane %v5580_v50, 4  ;;  %v2009_v18 = vadd.f32 %v6866_v58, %v6812_v57 }
 0x34a   : > { %v5584_v48 = vpop.eup %5583  ;;  %8321 = vst [vmem:[#allocation102_spill] sm:$0xff] %v6871_v16  ;;  %v2382_v26 = vrot.slane %v5574_v55, 4  ;;  %v2952_v47 = vrot.slane %v5582_v9, 4  ;;  %v6884_v23 = vsel %vm3268_vm0, %v3125_v51, %v6762_v4  ;;  %v2476_v37 = vrot.slane %v6310_v36, 1 }
 0x34b   : > { %v5586_v33 = vpop.eup %5585  ;;  %8322 = vst [vmem:[#allocation103_spill] sm:$0xff] %v6878_v21  ;;  %v2588_v39 = vrot.slane %v2587_v61, 2  ;;  %v2389_v49 = vadd.f32 %v5576_v34, %v2388_v11  ;;  %5589 = vtanh.f32 %v1862_v46  ;;  %v8323_v25 = vrot.slane %v6284_v43, 1 }
 0x34c   : > { %v2744_v5 = vrot.slane %v2743_v1, 2  ;;  %v2748_v57 = vrot.slane %v5584_v48, 4  ;;  %5591 = vtanh.f32 %v1944_v17  ;;  %v2958_v31 = vrot.slane %v5586_v33, 4 }
 0x34d   : > { %v6890_v59 = vadd.f32 %v8323_v25, %v6284_v43  ;;  %v5588_v44 = vpop.eup %5587  ;;  %v2947_v54 = vadd.f32 %v5578_v53, %v2946_v60  ;;  %v2593_v7 = vadd.f32 %v5580_v50, %v2592_v29  ;;  %5593 = vtanh.f32 %v2009_v18 }
 0x34e   : > { %v2012_v4 = vadd.f32 %v6866_v58, %v2011_v10  ;;  %v6893_v24 = vadd.f32 %v5574_v55, %v2382_v26  ;;  %v2953_v34 = vadd.f32 %v5582_v9, %v2952_v47  ;;  %v6896_v11 = vadd.f32 %v2476_v37, %v6310_v36 }
 0x34f   : > { %v2013_v22 = vpop.f32.mrf.mxu2  ;;  %v2098_v27 = vpop.f32.mrf.mxu3  ;;  %8324 = vst [vmem:[#allocation104_spill] sm:$0xff] %v6890_v59  ;;  %v2480_v43 = vrot.slane %v6315_v63, 2  ;;  %v2589_v46 = vadd.f32 %v2588_v39, %v2587_v61  ;;  %v2390_v25 = vrot.slane %v2389_v49, 2  ;;  %v2959_v3 = vadd.f32 %v5586_v33, %v2958_v31 }
 0x350   : > { %v1866_v51 = vpop.f32.mrf.mxu0  ;;  %8325 = vst [vmem:[#allocation105_spill] sm:$0xff] %v6893_v24  ;;  %v2745_v42 = vadd.f32 %v2744_v5, %v2743_v1  ;;  %v2749_v53 = vadd.f32 %v5584_v48, %v2748_v57  ;;  %v2394_v50 = vrot.slane %v5588_v44, 4  ;;  %v2097_v10 = vadd.f32 %v6866_v58, %v6832_v45 }
 0x351   : > { %8326 = vst [vmem:[#allocation106_spill] sm:$0xff] %v6896_v11  ;;  %v5590_v60 = vpop.eup %5589  ;;  %v2948_v55 = vrot.slane %v2947_v54, 2  ;;  %v2594_v29 = vrot.slane %v2593_v7, 2  ;;  %5595 = vtanh.f32 %v2012_v4  ;;  %v1864_v36 = vadd.f32 %v6866_v58, %v1863_v40 }
 0x352   : > { %v5592_v9 = vpop.eup %5591  ;;  %v2954_v61 = vrot.slane %v2953_v34, 2  ;;  %5597 = vtanh.f32 %v2097_v10  ;;  %v2099_v31 = vadd.f32 %v6866_v58, %v2098_v27  ;;  %v2590_v48 = vrot.slane %v2589_v46, 1 }
 0x353   : > { %v5594_v5 = vpop.eup %5593  ;;  %v2391_v1 = vadd.f32 %v2390_v25, %v2389_v49  ;;  %v2960_v26 = vrot.slane %v2959_v3, 2  ;;  %v2014_v45 = vadd.f32 %v6866_v58, %v2013_v22  ;;  %v2750_v37 = vrot.slane %v2749_v53, 2 }
 0x354   : > { %v2395_v39 = vadd.f32 %v5588_v44, %v2394_v50  ;;  %v2400_v57 = vrot.slane %v5590_v60, 4  ;;  %5599 = vtanh.f32 %v1864_v36  ;;  %v2746_v40 = vrot.slane %v2745_v42, 1 }
 0x355   : > { %v2949_v4 = vadd.f32 %v2948_v55, %v2947_v54  ;;  %v2595_v17 = vadd.f32 %v2594_v29, %v2593_v7  ;;  %v6909_v10 = vadd.f32 %v2480_v43, %v6315_v63  ;;  %v2955_v27 = vadd.f32 %v2954_v61, %v2953_v34 }
 0x356   : > { %v2598_v24 = vrot.slane %v5592_v9, 4  ;;  %v2754_v16 = vrot.slane %v5594_v5, 4  ;;  %5601 = vtanh.f32 %v2099_v31  ;;  %v2392_v25 = vrot.slane %v2391_v1, 1 }
 0x357   : > { %v2016_v33 = vpop.f32.mrf.mxu2  ;;  %v2101_v47 = vpop.f32.mrf.mxu3  ;;  %5603 = vtanh.f32 %v2014_v45  ;;  %v1867_v22 = vadd.f32 %v6866_v58, %v1866_v51  ;;  %v2961_v44 = vadd.f32 %v2960_v26, %v2959_v3  ;;  %v6912_v36 = vadd.f32 %v2590_v48, %v2589_v46 }
 0x358   : > { %v6906_v18 = vpop.f32.mrf.mxu0  ;;  %v5596_v49 = vpop.eup %5595  ;;  %v2751_v54 = vadd.f32 %v2750_v37, %v2749_v53  ;;  %v2396_v7 = vrot.slane %v2395_v39, 2  ;;  %v2401_v55 = vadd.f32 %v5590_v60, %v2400_v57  ;;  %v6914_v29 = vadd.f32 %v2746_v40, %v2745_v42 }
 0x359   : > { %v5598_v50 = vpop.eup %5597  ;;  %8327 = vst [vmem:[#allocation107_spill] sm:$0xff] %v6912_v36  ;;  %v2950_v63 = vrot.slane %v2949_v4, 1  ;;  %v2596_v43 = vrot.slane %v2595_v17, 1  ;;  %v2599_v6 = vadd.f32 %v5592_v9, %v2598_v24  ;;  %v2755_v31 = vadd.f32 %v5594_v5, %v2754_v16 }
 0x35a   : > { %v2964_v34 = vrot.slane %v5598_v50, 4  ;;  %v5600_v61 = vpop.eup %5599  ;;  %v2017_v2 = vadd.f32 %v6866_v58, %v2016_v33  ;;  %v2956_v45 = vrot.slane %v2955_v27, 1  ;;  %v6919_v3 = vadd.f32 %v2392_v25, %v2391_v1 }
 0x35b   : > { %v2760_v51 = vrot.slane %v5596_v49, 4  ;;  %5605 = vtanh.f32 %v1867_v22  ;;  %v2962_v46 = vrot.slane %v2961_v44, 1  ;;  %v2752_v60 = vrot.slane %v2751_v54, 1 }
 0x35c   : > { %8328 = vst [vmem:[#allocation108_spill] sm:$0xff] %v6919_v3  ;;  %v5602_v53 = vpop.eup %5601  ;;  %v2397_v42 = vadd.f32 %v2396_v7, %v2395_v39  ;;  %v2402_v48 = vrot.slane %v2401_v55, 2  ;;  %v2102_v26 = vadd.f32 %v6866_v58, %v2101_v47  ;;  %v6922_v57 = vadd.f32 %v2596_v43, %v2595_v17 }
 0x35d   : > { %v5604_v37 = vpop.eup %5603  ;;  %v2965_v24 = vadd.f32 %v5598_v50, %v2964_v34  ;;  %v2406_v16 = vrot.slane %v5600_v61, 4  ;;  %v6924_v9 = vadd.f32 %v2950_v63, %v2949_v4  ;;  %v2600_v1 = vrot.slane %v2599_v6, 2 }
 0x35e   : > { %8329 = vst [vmem:[#allocation109_spill] sm:$0xff] %v6922_v57  ;;  %v2756_v40 = vrot.slane %v2755_v31, 2  ;;  %5607 = vtanh.f32 %v2017_v2  ;;  %v6928_v25 = vadd.f32 %v2956_v45, %v2955_v27  ;;  %v2761_v22 = vadd.f32 %v5596_v49, %v2760_v51 }
 0x35f   : > { %v6917_v62 = vpop.f32.mrf.mxu2  ;;  %8330 = vst [vmem:[#allocation110_spill] sm:$0xff] %v6924_v9  ;;  %v2103_v33 = vpop.f32.mrf.mxu3  ;;  %v2970_v39 = vrot.slane %v5602_v53, 4  ;;  %v6930_v7 = vadd.f32 %v2962_v46, %v2961_v44  ;;  %v3127_v17 = vmul.f32 %v6859_v15, %v6859_v15  ;;  %v2403_v47 = vadd.f32 %v2402_v48, %v2401_v55 }
 0x360   : > { %v6926_v5 = vpop.f32.mrf.mxu0  ;;  %8331 = vst [vmem:[#allocation111_spill] sm:$0xff] %v6928_v25  ;;  %v2766_v50 = vrot.slane %v5604_v37, 4  ;;  %5609 = vtanh.f32 %v2102_v26  ;;  %v3128_v4 = vmul.f32 %v6878_v21, %v6878_v21  ;;  %v2398_v43 = vrot.slane %v2397_v42, 1 }
 0x361   : > { %8332 = vst [vmem:[#allocation112_spill] sm:$0xff] %v6930_v7  ;;  %v5606_v63 = vpop.eup %5605  ;;  %v2966_v34 = vrot.slane %v2965_v24, 2  ;;  %v2407_v30 = vadd.f32 %v5600_v61, %v2406_v16  ;;  %v3129_v2 = vmul.f32 %v6924_v9, %v6924_v9  ;;  %v6938_v27 = vadd.f32 %v2600_v1, %v2599_v6 }
 0x362   : > { %v2757_v49 = vadd.f32 %v2756_v40, %v2755_v31  ;;  %v3130_v44 = vmul.f32 %v6928_v25, %v6928_v25  ;;  %v3374_v55 = vsel %vm3270_vm1, %v6853_v38, %v6884_v23  ;;  %v2762_v51 = vrot.slane %v2761_v22, 2 }
 0x363   : > { %v2971_v46 = vadd.f32 %v5602_v53, %v2970_v39  ;;  %v3131_v48 = vmul.f32 %v6930_v7, %v6930_v7  ;;  %v3375_v61 = vsel %vm3272_vm2, %v3127_v17, %v3374_v55  ;;  %v2404_v16 = vrot.slane %v2403_v47, 1 }
 0x364   : > { %v5608_v26 = vpop.eup %5607  ;;  %v2767_v6 = vadd.f32 %v5604_v37, %v2766_v50  ;;  %v2412_v1 = vrot.slane %v5606_v63, 4  ;;  %v3376_v31 = vsel %vm3274_vm3, %v3128_v4, %v3375_v61  ;;  %v6949_v40 = vadd.f32 %v2752_v60, %v2751_v54 }
 0x365   : > { %v6951_v25 = vadd.f32 %v2966_v34, %v2965_v24  ;;  %v2408_v9 = vrot.slane %v2407_v30, 2  ;;  %v3377_v23 = vsel %vm3276_vm4, %v3129_v2, %v3376_v31  ;;  %v6954_v39 = vadd.f32 %v2398_v43, %v2397_v42 }
 0x366   : > { %8333 = vst [vmem:[#allocation113_spill] sm:$0xff] %v6949_v40  ;;  %v5610_v53 = vpop.eup %5609  ;;  %v2758_v17 = vrot.slane %v2757_v49, 1  ;;  %v3378_v55 = vsel %vm3278_vm5, %v3130_v44, %v3377_v23  ;;  %v2763_v37 = vadd.f32 %v2762_v51, %v2761_v22  ;;  %v2972_v50 = vrot.slane %v2971_v46, 2 }
 0x367   : > { %v2021_v45 = vpop.f32.mrf.mxu2  ;;  %v2106_v38 = vpop.f32.mrf.mxu3  ;;  %8334 = vst [vmem:[#allocation114_spill] sm:$0xff] %v6954_v39  ;;  %v2772_v21 = vrot.slane %v5608_v26, 4  ;;  %v3379_v54 = vsel %vm3280_vm6, %v3131_v48, %v3378_v55  ;;  %v6961_v24 = vadd.f32 %v2404_v16, %v2403_v47  ;;  %v2768_v4 = vrot.slane %v2767_v6, 2 }
 0x368   : > { %v6959_v60 = vpop.f32.mrf.mxu0  ;;  %v6963_v34 = vadd.f32 %v5606_v63, %v2412_v1  ;;  %3431 = vadd.xlane.f32.xlu0 %v3379_v54  ;;  %v2019_v42 = vadd.f32 %v6866_v58, %v6917_v62  ;;  %v2968_v43 = vrot.slane %v6951_v25, 1  ;;  %v6968_v2 = vadd.f32 %v2408_v9, %v2407_v30 }
 0x369   : > { %8335 = vst [vmem:[#allocation115_spill] sm:$0xff] %v6961_v24  ;;  %v2976_v22 = vrot.slane %v5610_v53, 4  ;;  %v2104_v44 = vadd.f32 %v6866_v58, %v2103_v33  ;;  %v2022_v51 = vadd.f32 %v6866_v58, %v2021_v45  ;;  %v2107_v47 = vadd.f32 %v6866_v58, %v2106_v38 }
 0x36a   : > { %5611 = vtanh.f32 %v2019_v42  ;;  %v6973_v48 = vadd.f32 %v2758_v17, %v2757_v49  ;;  %v6975_v61 = vadd.f32 %v2972_v50, %v2971_v46  ;;  %v2773_v16 = vadd.f32 %v5608_v26, %v2772_v21 }
 0x36b   : > { %5613 = vtanh.f32 %v2104_v44  ;;  %v2764_v62 = vrot.slane %v2763_v37, 1  ;;  %v2414_v1 = vrot.slane %v6963_v34, 2  ;;  %v1869_v30 = vadd.f32 %v6866_v58, %v6906_v18 }
 0x36c   : > { %8336 = vst [vmem:[#allocation116_spill] sm:$0xff] %v6973_v48  ;;  %v2769_v9 = vadd.f32 %v2768_v4, %v2767_v6  ;;  %v3095_v33 = vmul.f32 %v6914_v29, %v6914_v29  ;;  %v2977_v45 = vadd.f32 %v5610_v53, %v2976_v22  ;;  %5615 = vtanh.f32 %v2022_v51 }
 0x36d   : > { %v6982_v31 = vadd.f32 %v2764_v62, %v2763_v37  ;;  %v3096_v49 = vmul.f32 %v6949_v40, %v6949_v40  ;;  %5617 = vtanh.f32 %v2107_v47  ;;  %v3097_v26 = vmul.f32 %v6973_v48, %v6973_v48 }
 0x36e   : > { %v2770_v21 = vrot.slane %v2769_v9, 1  ;;  %v3345_v18 = vsel %vm3268_vm0, %v6857_v8, %v6847_v35  ;;  %v2774_v6 = vrot.slane %v2773_v16, 2  ;;  %5619 = vtanh.f32 %v1869_v30 }
 0x36f   : > { %v2023_v63 = vpop.f32.mrf.mxu2  ;;  %8337 = vst [vmem:[#allocation117_spill] sm:$0xff] %v6982_v31  ;;  %v2108_v46 = vpop.f32.mrf.mxu3  ;;  %v3098_v23 = vmul.f32 %v6982_v31, %v6982_v31  ;;  %v3346_v38 = vsel %vm3270_vm1, %v6875_v52, %v3345_v18  ;;  %v2978_v4 = vrot.slane %v2977_v45, 2  ;;  %v1872_v30 = vadd.f32 %v6866_v58, %v6926_v5 }
 0x370   : > { %v2024_v53 = vadd.f32 %v6866_v58, %v2023_v63  ;;  %v5612_v17 = vpop.eup %5611  ;;  %v6996_v55 = vadd.f32 %v2770_v21, %v2769_v9  ;;  %v3347_v37 = vsel %vm3272_vm2, %v3095_v33, %v3346_v38  ;;  %v2109_v50 = vadd.f32 %v6866_v58, %v2108_v46  ;;  %v1876_v42 = vpop.f32.mrf.mxu0 }
 0x371   : > { %v5614_v54 = vpop.eup %5613  ;;  %v2778_v35 = vrot.slane %v5612_v17, 4  ;;  %v3348_v8 = vsel %vm3274_vm3, %v3096_v49, %v3347_v37  ;;  %v2775_v63 = vadd.f32 %v2774_v6, %v2773_v16  ;;  %v1877_v18 = vadd.f32 %v6866_v58, %v1876_v42 }
 0x372   : > { %8338 = vst [vmem:[#allocation118_spill] sm:$0xff] %v6996_v55  ;;  %5621 = vtanh.f32 %v2024_v53  ;;  %v2982_v22 = vrot.slane %v5614_v54, 4  ;;  %v3099_v52 = vmul.f32 %v6996_v55, %v6996_v55  ;;  %v3349_v44 = vsel %vm3276_vm4, %v3097_v26, %v3348_v8  ;;  %v5616_v47 = vpop.eup %5615 }
 0x373   : > { %5623 = vtanh.f32 %v2109_v50  ;;  %v2779_v62 = vadd.f32 %v5612_v17, %v2778_v35  ;;  %v3350_v9 = vsel %vm3278_vm5, %v3098_v23, %v3349_v44  ;;  %v5618_v33 = vpop.eup %5617  ;;  %v2784_v46 = vrot.slane %v5616_v47, 4 }
 0x374   : > { %v2983_v49 = vadd.f32 %v5614_v54, %v2982_v22  ;;  %v3351_v21 = vsel %vm3280_vm6, %v3099_v52, %v3350_v9  ;;  %v7010_v38 = vadd.f32 %v2968_v43, %v6951_v25  ;;  %v2979_v26 = vadd.f32 %v2978_v4, %v2977_v45  ;;  %v5620_v6 = vpop.eup %5619 }
 0x375   : > { %v2780_v53 = vrot.slane %v2779_v62, 2  ;;  %v2988_v37 = vrot.slane %v5618_v33, 4  ;;  %3423 = vadd.xlane.f32.xlu2 %v3351_v21  ;;  %v2974_v5 = vrot.slane %v6975_v61, 1  ;;  %v7014_v23 = vadd.f32 %v2414_v1, %v6963_v34 }
 0x376   : > { %v2785_v17 = vadd.f32 %v5616_v47, %v2784_v46  ;;  %5625 = vtanh.f32 %v1877_v18  ;;  %v2776_v54 = vrot.slane %v2775_v63, 1  ;;  %v2984_v45 = vrot.slane %v2983_v49, 2 }
 0x377   : > { %v2026_v51 = vpop.f32.mrf.mxu2  ;;  %v2111_v16 = vpop.f32.mrf.mxu3  ;;  %5627 = vtanh.f32 %v1872_v30  ;;  %v2989_v35 = vadd.f32 %v5618_v33, %v2988_v37  ;;  %v1874_v8 = vadd.f32 %v6866_v58, %v6959_v60  ;;  %v2980_v52 = vrot.slane %v2979_v26, 1 }
 0x378   : > { %v5622_v50 = vpop.eup %5621  ;;  %v2027_v25 = vadd.f32 %v6866_v58, %v2026_v51  ;;  %v2786_v4 = vrot.slane %v2785_v17, 2  ;;  %v2781_v34 = vadd.f32 %v2780_v53, %v2779_v62  ;;  %v7022_v44 = vmul.f32 %v7010_v38, %v7010_v38  ;;  %v1878_v60 = vpop.f32.mrf.mxu0 }
 0x379   : > { %v5624_v43 = vpop.eup %5623  ;;  %v2790_v42 = vrot.slane %v5622_v50, 4  ;;  %v2990_v30 = vrot.slane %v2989_v35, 2  ;;  %v7025_v51 = vadd.f32 %v2974_v5, %v6975_v61  ;;  %v2418_v33 = vrot.slane %v5620_v6, 4 }
 0x37a   : > { %v2994_v1 = vrot.slane %v5624_v43, 4  ;;  %v2787_v47 = vadd.f32 %v2786_v4, %v2785_v17  ;;  %5629 = vtanh.f32 %v2027_v25  ;;  %v7028_v37 = vadd.f32 %v2776_v54, %v2775_v63 }
 0x37b   : > { %v2791_v9 = vadd.f32 %v5622_v50, %v2790_v42  ;;  %v2985_v62 = vadd.f32 %v2984_v45, %v2983_v49  ;;  %5631 = vtanh.f32 %v1874_v8  ;;  %v7030_v7 = vadd.f32 %v2980_v52, %v2979_v26 }
 0x37c   : > { %v2995_v46 = vadd.f32 %v5624_v43, %v2994_v1  ;;  %v5626_v21 = vpop.eup %5625  ;;  %8339 = vst [vmem:[#allocation119_spill] sm:$0xff] %v7028_v37  ;;  %v2782_v17 = vrot.slane %v2781_v34, 1  ;;  %v2788_v5 = vrot.slane %v2787_v47, 1  ;;  %v2991_v42 = vadd.f32 %v2990_v30, %v2989_v35 }
 0x37d   : > { %v5628_v22 = vpop.eup %5627  ;;  %v2792_v50 = vrot.slane %v2791_v9, 2  ;;  %v2436_v4 = vrot.slane %v5626_v21, 4  ;;  %v2112_v25 = vadd.f32 %v6866_v58, %v2111_v16  ;;  %v1879_v43 = vadd.f32 %v6866_v58, %v1878_v60 }
 0x37e   : > { %v7034_v1 = vadd.f32 %v5620_v6, %v2418_v33  ;;  %v2996_v63 = vrot.slane %v2995_v46, 2  ;;  %v2986_v45 = vrot.slane %v2985_v62, 1  ;;  %v2424_v8 = vrot.slane %v5628_v22, 4 }
 0x37f   : > { %v2028_v53 = vpop.f32.mrf.mxu2  ;;  %v2113_v61 = vpop.f32.mrf.mxu3  ;;  %v2437_v54 = vadd.f32 %v5626_v21, %v2436_v4  ;;  %5633 = vtanh.f32 %v2112_v25  ;;  %v7038_v18 = vadd.f32 %v2782_v17, %v2781_v34  ;;  %v2793_v55 = vadd.f32 %v2792_v50, %v2791_v9 }
 0x380   : > { %v2029_v49 = vadd.f32 %v6866_v58, %v2028_v53  ;;  %v2114_v26 = vadd.f32 %v6866_v58, %v2113_v61  ;;  %v5630_v52 = vpop.eup %5629  ;;  %5635 = vtanh.f32 %v1879_v43  ;;  %v7042_v30 = vadd.f32 %v2788_v5, %v2787_v47 }
 0x381   : > { %8340 = vst [vmem:[#allocation120_spill] sm:$0xff] %v7038_v18  ;;  %v2438_v35 = vrot.slane %v2437_v54, 2  ;;  %v7040_v16 = vpop.eup %5631  ;;  %v2992_v6 = vrot.slane %v2991_v42, 1  ;;  %v2796_v33 = vrot.slane %v5630_v52, 4  ;;  %v3133_v60 = vmul.f32 %v7025_v51, %v7025_v51 }
 0x382   : > { %8341 = vst [vmem:[#allocation121_spill] sm:$0xff] %v7042_v30  ;;  %5637 = vtanh.f32 %v2029_v49  ;;  %v7048_v21 = vmul.f32 %v7028_v37, %v7028_v37  ;;  %v2997_v58 = vadd.f32 %v2996_v63, %v2995_v46  ;;  %v3134_v34 = vmul.f32 %v7030_v7, %v7030_v7 }
 0x383   : > { %5639 = vtanh.f32 %v2114_v26  ;;  %v2439_v53 = vadd.f32 %v2438_v35, %v2437_v54  ;;  %v2797_v47 = vadd.f32 %v5630_v52, %v2796_v33  ;;  %v7053_v17 = vadd.f32 %v2986_v45, %v2985_v62 }
 0x384   : > { %v7055_v50 = vadd.f32 %v5628_v22, %v2424_v8  ;;  %v2794_v61 = vrot.slane %v2793_v55, 1  ;;  %v3101_v25 = vmul.f32 %v7038_v18, %v7038_v18  ;;  %v3102_v46 = vmul.f32 %v7042_v30, %v7042_v30 }
 0x385   : > { %v5634_v5 = vpop.eup %5633  ;;  %v7062_v43 = vadd.f32 %v2992_v6, %v2991_v42  ;;  %v2798_v63 = vrot.slane %v2797_v47, 2  ;;  %v2998_v54 = vrot.slane %v2997_v58, 1  ;;  %v2482_v62 = vrot.slane %v6909_v10, 1 }
 0x386   : > { %v5636_v49 = vpop.eup %5635  ;;  %v3000_v26 = vrot.slane %v5634_v5, 4  ;;  %v2816_v22 = vrot.slane %v6252_v0, 2  ;;  %v2440_v8 = vrot.slane %v2439_v53, 1  ;;  %v3380_v33 = vsel %vm3268_vm0, %v3133_v60, %v7022_v44 }
 0x387   : > { %v2799_v52 = vadd.f32 %v2798_v63, %v2797_v47  ;;  %v2442_v35 = vrot.slane %v5636_v49, 4  ;;  %v7068_v9 = vadd.f32 %v2794_v61, %v2793_v55  ;;  %v3047_v37 = vmul.f32 %v6249_v19, %v6249_v19 }
 0x388   : > { %v5638_v45 = vpop.eup %5637  ;;  %v3001_v42 = vadd.f32 %v5634_v5, %v3000_v26  ;;  %v3048_v40 = vmul.f32 %v6267_v56, %v6267_v56  ;;  %v7075_v63 = vadd.f32 %v2482_v62, %v6909_v10  ;;  %v2817_v44 = vadd.f32 %v2816_v22, %v6252_v0 }
 0x389   : > { %v5640_v4 = vpop.eup %5639  ;;  %v2802_v6 = vrot.slane %v5638_v45, 4  ;;  %v2800_v30 = vrot.slane %v2799_v52, 1  ;;  %v2443_v31 = vadd.f32 %v5636_v49, %v2442_v35  ;;  %v7078_v55 = vadd.f32 %v2440_v8, %v2439_v53 }
 0x38a   : > { %v3006_v48 = vrot.slane %v5640_v4, 4  ;;  %v3002_v18 = vrot.slane %v3001_v42, 2  ;;  %8342 = vst [vmem:[#allocation122_spill] sm:$0xff] %v7075_v63  ;;  %v3049_v5 = vmul.f32 %v6890_v59, %v6890_v59  ;;  %v7082_v35 = vadd.f32 %v2998_v54, %v2997_v58 }
 0x38b   : > { %v2803_v47 = vadd.f32 %v5638_v45, %v2802_v6  ;;  %8343 = vst [vmem:[#allocation123_spill] sm:$0xff] %v7078_v55  ;;  %v2444_v60 = vrot.slane %v2443_v31, 2  ;;  %v8344_v56 = vrot.slane %v6230_v14, 1  ;;  %v7089_v10 = vadd.f32 %v2800_v30, %v2799_v52 }
 0x38c   : > { %v3007_v61 = vadd.f32 %v5640_v4, %v3006_v48  ;;  %v3003_v26 = vadd.f32 %v3002_v18, %v3001_v42  ;;  %v3135_v53 = vmul.f32 %v7053_v17, %v7053_v17  ;;  %v3381_v22 = vsel %vm3270_vm1, %v3134_v34, %v3380_v33 }
 0x38d   : > { %v2804_v49 = vrot.slane %v2803_v47, 2  ;;  %v7087_v45 = vadd.f32 %v8344_v56, %v6230_v14  ;;  %v2445_v62 = vadd.f32 %v2444_v60, %v2443_v31  ;;  %v2818_v18 = vrot.slane %v2817_v44, 1 }
 0x38e   : > { %v3008_v0 = vrot.slane %v3007_v61, 2  ;;  %v3004_v4 = vrot.slane %v3003_v26, 1  ;;  %v3044_v58 = vmul.f32 %v7078_v55, %v7078_v55  ;;  %v3136_v14 = vmul.f32 %v7062_v43, %v7062_v43 }
 0x38f   : > { %v2805_v48 = vadd.f32 %v2804_v49, %v2803_v47  ;;  %v2446_v54 = vrot.slane %v2445_v62, 1  ;;  %v3137_v31 = vmul.f32 %v7082_v35, %v7082_v35  ;;  %v3103_v52 = vmul.f32 %v7068_v9, %v7068_v9 }
 0x390   : > { %v3009_v8 = vadd.f32 %v3008_v0, %v3007_v61  ;;  %v7098_v30 = vadd.f32 %v3004_v4, %v3003_v26  ;;  %v3382_v33 = vsel %vm3272_vm2, %v3135_v53, %v3381_v22  ;;  %v3104_v6 = vmul.f32 %v7089_v10, %v7089_v10 }
 0x391   : > { %v2806_v56 = vrot.slane %v2805_v48, 1  ;;  %v7104_v42 = vadd.f32 %v2446_v54, %v2445_v62  ;;  %v7113_v61 = vadd.f32 %v2818_v18, %v2817_v44  ;;  %v3352_v26 = vsel %vm3268_vm0, %v3101_v25, %v7048_v21 }
 0x392   : > { %v3010_v34 = vrot.slane %v3009_v8, 1  ;;  %v3138_v47 = vmul.f32 %v7098_v30, %v7098_v30  ;;  %v3383_v0 = vsel %vm3274_vm3, %v3136_v14, %v3382_v33  ;;  %v3353_v53 = vsel %vm3270_vm1, %v3102_v46, %v3352_v26 }
 0x393   : > { %8345 = vst [vmem:[#allocation124_spill] sm:$0xff] %v7104_v42  ;;  %v7111_v60 = vadd.f32 %v2806_v56, %v2805_v48  ;;  %v3045_v49 = vmul.f32 %v7104_v42, %v7104_v42  ;;  %v3384_v4 = vsel %vm3276_vm4, %v3137_v31, %v3383_v0  ;;  %v3106_v44 = vmul.f32 %v7087_v45, %v7087_v45 }
 0x394   : > { %v7119_v62 = vadd.f32 %v3010_v34, %v3009_v8  ;;  %v3354_v22 = vsel %vm3272_vm2, %v3103_v52, %v3353_v53  ;;  %v2624_v54 = vrot.slane %v6289_v28, 2  ;;  %v3385_v46 = vsel %vm3278_vm5, %v3138_v47, %v3384_v4 }
 0x395   : > { %v3105_v48 = vmul.f32 %v7111_v60, %v7111_v60  ;;  %v3303_v25 = vsel %vm3268_vm0, %v3045_v49, %v3044_v58  ;;  %v3355_v18 = vsel %vm3274_vm3, %v3104_v6, %v3354_v22  ;;  %v3107_v14 = vmul.f32 %v7113_v61, %v7113_v61 }
 0x396   : > { %v3139_v21 = vmul.f32 %v7119_v62, %v7119_v62  ;;  %v3304_v8 = vsel %vm3270_vm1, %v6221_v13, %v3303_v25  ;;  %v2620_v34 = vrot.slane %v6279_v41, 1  ;;  %v8346_v33 = vrot.slane %v7034_v1, 2 }
 0x397   : > { %v3356_v56 = vsel %vm3276_vm4, %v3105_v48, %v3355_v18  ;;  %v3305_v52 = vsel %vm3272_vm2, %v3047_v37, %v3304_v8  ;;  %v3050_v13 = vmul.f32 %v6896_v11, %v6896_v11  ;;  %v2426_v49 = vrot.slane %v7055_v50, 2 }
 0x398   : > { %v3386_v31 = vsel %vm3280_vm6, %v3139_v21, %v3385_v46  ;;  %v3357_v58 = vsel %vm3278_vm5, %v3106_v44, %v3356_v56  ;;  %v2421_v6 = vadd.f32 %v8346_v33, %v7034_v1  ;;  %v3306_v47 = vsel %vm3274_vm3, %v3048_v40, %v3305_v52 }
 0x399   : > { %3433 = vadd.xlane.f32.xlu0 %v3386_v31  ;;  %v3358_v26 = vsel %vm3280_vm6, %v3107_v14, %v3357_v58  ;;  %v3051_v37 = vmul.f32 %v7075_v63, %v7075_v63  ;;  %v3307_v0 = vsel %vm3276_vm4, %v3049_v5, %v3306_v47  ;;  %v2625_v53 = vadd.f32 %v2624_v54, %v6289_v28  ;;  %v8359_v47 = vld [vmem:[#allocation32_spill] sm:$0xff] }
 0x39a   : > { %3425 = vadd.xlane.f32.xlu2 %v3358_v26  ;;  %v7158_v1 = vmul.f32 %v6912_v36, %v6912_v36  ;;  %v3036_v4 = vmul.f32 %v6919_v3, %v6919_v3  ;;  %v8347_v40 = vrot.slane %v7040_v16, 4  ;;  %v3308_v44 = vsel %vm3278_vm5, %v3050_v13, %v3307_v0 }
 0x39b   : > { %v7168_v22 = vmul.f32 %v6922_v57, %v6922_v57  ;;  %v3309_v5 = vsel %vm3280_vm6, %v3051_v37, %v3308_v44  ;;  %v8348_v28 = vrot.slane %v6242_v20, 1  ;;  %v7177_v25 = vadd.f32 %v2620_v34, %v6279_v41  ;;  %v8357_v34 = vld [vmem:[#allocation8_spill] sm:$0xff]  ;;  %v8363_v37 = vld [vmem:[#allocation42_spill] sm:$0xff] }
 0x39c   : > { %v2431_v48 = vadd.f32 %v7040_v16, %v8347_v40  ;;  %v3037_v18 = vmul.f32 %v6954_v39, %v6954_v39  ;;  %v8351_v16 = vrot.slane %v6938_v27, 1  ;;  %v3038_v46 = vmul.f32 %v6961_v24, %v6961_v24  ;;  %3411 = vadd.xlane.f32.xlu1 %v3309_v5  ;;  %v8365_v44 = vld [vmem:[#allocation46_spill] sm:$0xff]  ;;  %v8369_v24 = vld [vmem:[#allocation29_spill] sm:$0xff] }
 0x39d   : > { %v7174_v21 = vadd.f32 %v8348_v28, %v6242_v20  ;;  %8350 = vst [vmem:[#allocation126_spill] sm:$0xff] %v7177_v25  ;;  %v8353_v8 = vrot.slane %v6968_v2, 1  ;;  %v8355_v20 = vrot.slane %v7014_v23, 1  ;;  %v2422_v56 = vrot.slane %v2421_v6, 1  ;;  %v8366_v28 = vld [vmem:[#allocation47_spill] sm:$0xff] }
 0x39e   : > { %v7184_v54 = vadd.f32 %v8351_v16, %v6938_v27  ;;  %v2427_v31 = vadd.f32 %v2426_v49, %v7055_v50  ;;  %v2626_v52 = vrot.slane %v2625_v53, 1  ;;  %v2432_v27 = vrot.slane %v2431_v48, 2  ;;  %v8360_v49 = vld [vmem:[#allocation19_spill] sm:$0xff] }
 0x39f   : > { %8349 = vst [vmem:[#allocation125_spill] sm:$0xff] %v7174_v21  ;;  %v7191_v14 = vadd.f32 %v8353_v8, %v6968_v2  ;;  %v7196_v41 = vadd.f32 %v8355_v20, %v7014_v23  ;;  %v3331_v58 = vsel %vm3268_vm0, %v6361_v32, %v6338_v12  ;;  %v7204_v33 = vmul.f32 %v8357_v34, %v8357_v34  ;;  %v8358_v2 = vld [vmem:[#allocation22_spill] sm:$0xff]  ;;  %v8368_v20 = vld [vmem:[#allocation39_spill] sm:$0xff] }
 0x3a0   : > { %8352 = vst [vmem:[#allocation127_spill] sm:$0xff] %v7184_v54  ;;  %v2284_v13 = vrot.slane %v8358_v2, 1  ;;  %v3079_v26 = vmul.f32 %v8359_v47, %v8359_v47  ;;  %v7211_v23 = vmul.f32 %v7174_v21, %v7174_v21  ;;  %v7215_v50 = vmul.f32 %v7177_v25, %v7177_v25 }
 0x3a1   : > { %8354 = vst [vmem:[#allocation128_spill] sm:$0xff] %v7191_v14  ;;  %v8361_v12 = vrot.slane %v8360_v49, 1  ;;  %v8364_v0 = vrot.slane %v8363_v37, 1  ;;  %v2668_v5 = vrot.slane %v8365_v44, 1  ;;  %v8367_v16 = vrot.slane %v8366_v28, 2 }
 0x3a2   : > { %8356 = vst [vmem:[#allocation129_spill] sm:$0xff] %v7196_v41  ;;  %v3080_v3 = vmul.f32 %v8368_v20, %v8368_v20  ;;  %v3332_v39 = vsel %vm3270_vm1, %v8369_v24, %v3331_v58  ;;  %v7235_v63 = vadd.f32 %v2422_v56, %v2421_v6  ;;  %v2433_v24 = vadd.f32 %v2432_v27, %v2431_v48  ;;  %v8374_v6 = vld [vmem:[#allocation26_spill] sm:$0xff] }
 0x3a3   : > { %v7220_v32 = vadd.f32 %v8361_v12, %v8360_v49  ;;  %v7225_v40 = vadd.f32 %v8364_v0, %v8363_v37  ;;  %v2673_v8 = vadd.f32 %v8367_v16, %v8366_v28  ;;  %v2428_v49 = vrot.slane %v2427_v31, 1 }
 0x3a4   : > { %8370 = vst [vmem:[#allocation32_spill] sm:$0xff] %v7235_v63  ;;  %v7237_v12 = vadd.f32 %v2626_v52, %v2625_v53  ;;  %v7240_v37 = vadd.f32 %v2668_v5, %v8365_v44  ;;  %v7245_v28 = vadd.f32 %v2284_v13, %v8358_v2  ;;  %v3333_v16 = vsel %vm3272_vm2, %v3079_v26, %v3332_v39  ;;  %v8376_v26 = vld [vmem:[#allocation84_spill] sm:$0xff] }
 0x3a5   : > { %8362 = vst [vmem:[#allocation22_spill] sm:$0xff] %v7220_v32  ;;  %v2674_v0 = vrot.slane %v2673_v8, 1  ;;  %v3081_v11 = vmul.f32 %v7225_v40, %v7225_v40  ;;  %v7248_v59 = vadd.f32 %v2428_v49, %v2427_v31  ;;  %v2288_v56 = vrot.slane %v8374_v6, 2 }
 0x3a6   : > { %8371 = vst [vmem:[#allocation19_spill] sm:$0xff] %v7237_v12  ;;  %v3082_v53 = vmul.f32 %v7240_v37, %v7240_v37  ;;  %v3334_v52 = vsel %vm3274_vm3, %v3080_v3, %v3333_v16  ;;  %v3039_v44 = vmul.f32 %v7191_v14, %v7191_v14  ;;  %v2434_v13 = vrot.slane %v2433_v24, 1  ;;  %v8380_v16 = vld [vmem:[#allocation91_spill] sm:$0xff]  ;;  %v8383_v14 = vld [vmem:[#allocation81_spill] sm:$0xff] }
 0x3a7   : > { %8372 = vst [vmem:[#allocation42_spill] sm:$0xff] %v7245_v28  ;;  %v7251_v58 = vadd.f32 %v2674_v0, %v2673_v8  ;;  %v3335_v2 = vsel %vm3276_vm4, %v3081_v11, %v3334_v52  ;;  %v3040_v39 = vmul.f32 %v7196_v41, %v7196_v41  ;;  %v3041_v48 = vmul.f32 %v7235_v63, %v7235_v63 }
 0x3a8   : > { %8373 = vst [vmem:[#allocation46_spill] sm:$0xff] %v7248_v59  ;;  %v3042_v27 = vmul.f32 %v7248_v59, %v7248_v59  ;;  %v3296_v3 = vsel %vm3268_vm0, %v3037_v18, %v3036_v4  ;;  %v8377_v5 = vrot.slane %v8376_v26, 1  ;;  %v3336_v11 = vsel %vm3278_vm5, %v3082_v53, %v3335_v2  ;;  %v8381_v59 = vld [vmem:[#allocation93_spill] sm:$0xff]  ;;  %v8385_v2 = vld [vmem:[#allocation86_spill] sm:$0xff] }
 0x3a9   : > { %8375 = vst [vmem:[#allocation47_spill] sm:$0xff] %v7251_v58  ;;  %v3083_v31 = vmul.f32 %v7251_v58, %v7251_v58  ;;  %v7274_v49 = vadd.f32 %v2434_v13, %v2433_v24  ;;  %v3297_v0 = vsel %vm3270_vm1, %v3038_v46, %v3296_v3  ;;  %v2572_v52 = vrot.slane %v8380_v16, 1  ;;  %v8386_v3 = vld [vmem:[#allocation66_spill] sm:$0xff] }
 0x3aa   : > { %v7271_v8 = vadd.f32 %v8377_v5, %v8376_v26  ;;  %v3298_v41 = vsel %vm3272_vm2, %v3039_v44, %v3297_v0  ;;  %v8382_v4 = vrot.slane %v8381_v59, 2  ;;  %v3063_v26 = vmul.f32 %v8383_v14, %v8383_v14  ;;  %v8387_v5 = vld [vmem:[#allocation69_spill] sm:$0xff] }
 0x3ab   : > { %8379 = vst [vmem:[#allocation29_spill] sm:$0xff] %v7274_v49  ;;  %v3337_v63 = vsel %vm3280_vm6, %v3083_v31, %v3336_v11  ;;  %v3043_v24 = vmul.f32 %v7274_v49, %v7274_v49  ;;  %v3299_v53 = vsel %vm3274_vm3, %v3040_v39, %v3298_v41  ;;  %v7289_v46 = vadd.f32 %v2572_v52, %v8380_v16  ;;  %v8388_v39 = vld [vmem:[#allocation74_spill] sm:$0xff] }
 0x3ac   : > { %8378 = vst [vmem:[#allocation39_spill] sm:$0xff] %v7271_v8  ;;  %v2577_v18 = vadd.f32 %v8382_v4, %v8381_v59  ;;  %3419 = vadd.xlane.f32.xlu0 %v3337_v63  ;;  %v3064_v13 = vmul.f32 %v8385_v2, %v8385_v2  ;;  %v3300_v44 = vsel %vm3276_vm4, %v3041_v48, %v3299_v53  ;;  %v8390_v53 = vld [vmem:[#allocation102_spill] sm:$0xff] }
 0x3ad   : > { %8384 = vst [vmem:[#allocation26_spill] sm:$0xff] %v7289_v46  ;;  %v3065_v59 = vmul.f32 %v7271_v8, %v7271_v8  ;;  %v3317_v63 = vsel %vm3268_vm0, %v8387_v5, %v8386_v3  ;;  %v3301_v11 = vsel %vm3278_vm5, %v3042_v27, %v3300_v44  ;;  %v3066_v41 = vmul.f32 %v7289_v46, %v7289_v46  ;;  %v8439_v46 = vld [vmem:[#allocation83_spill] sm:$0xff] }
 0x3ae   : > { %v2578_v31 = vrot.slane %v2577_v18, 1  ;;  %v3318_v0 = vsel %vm3270_vm1, %v8388_v39, %v3317_v63  ;;  %v3071_v16 = vmul.f32 %v7184_v54, %v7184_v54  ;;  %v3302_v48 = vsel %vm3280_vm6, %v3043_v24, %v3301_v11  ;;  %v8391_v63 = vld [vmem:[#allocation49_spill] sm:$0xff]  ;;  %v8394_v11 = vld [vmem:[#allocation56_spill] sm:$0xff] }
 0x3af   : > { %v3319_v4 = vsel %vm3272_vm2, %v3063_v26, %v3318_v0  ;;  %v3324_v3 = vsel %vm3268_vm0, %v7158_v1, %v8390_v53  ;;  %3409 = vadd.xlane.f32.xlu1 %v3302_v48  ;;  %v3075_v44 = vmul.f32 %v7237_v12, %v7237_v12  ;;  %v8392_v24 = vrot.slane %v8391_v63, 1  ;;  %v8395_v48 = vld [vmem:[#allocation6_spill] sm:$0xff] }
 0x3b0   : > { %v7307_v52 = vadd.f32 %v2578_v31, %v2577_v18  ;;  %v3320_v27 = vsel %vm3274_vm3, %v3064_v13, %v3319_v4  ;;  %v3325_v5 = vsel %vm3270_vm1, %v7168_v22, %v3324_v3  ;;  %v2524_v13 = vrot.slane %v8394_v11, 1  ;;  %v8396_v4 = vld [vmem:[#allocation10_spill] sm:$0xff] }
 0x3b1   : > { %v7321_v18 = vadd.f32 %v8392_v24, %v8391_v63  ;;  %v3321_v31 = vsel %vm3276_vm4, %v3065_v59, %v3320_v27  ;;  %v3326_v1 = vsel %vm3272_vm2, %v3071_v16, %v3325_v5  ;;  %v2289_v22 = vadd.f32 %v2288_v56, %v8374_v6  ;;  %v8398_v27 = vld [vmem:[#allocation58_spill] sm:$0xff]  ;;  %v8400_v6 = vld [vmem:[#allocation44_spill] sm:$0xff]  ;;  %v8401_v63 = vld [vmem:[#allocation51_spill] sm:$0xff] }
 0x3b2   : > { %8389 = vst [vmem:[#allocation84_spill] sm:$0xff] %v7307_v52  ;;  %v3067_v26 = vmul.f32 %v7307_v52, %v7307_v52  ;;  %v3322_v39 = vsel %vm3278_vm5, %v3066_v41, %v3321_v31  ;;  %v3327_v0 = vsel %vm3274_vm3, %v7204_v33, %v3326_v1  ;;  %v3269_v53 = vsel %vm3268_vm0, %v8396_v4, %v8395_v48  ;;  %v8405_v48 = vld [vmem:[#allocation96_spill] sm:$0xff] }
 0x3b3   : > { %8393 = vst [vmem:[#allocation91_spill] sm:$0xff] %v7321_v18  ;;  %v3328_v59 = vsel %vm3276_vm4, %v7211_v23, %v3327_v0  ;;  %v7339_v16 = vadd.f32 %v2524_v13, %v8394_v11  ;;  %v8399_v41 = vrot.slane %v8398_v27, 2  ;;  %v3055_v56 = vmul.f32 %v8400_v6, %v8400_v6  ;;  %v8402_v11 = vld [vmem:[#allocation28_spill] sm:$0xff]  ;;  %v8403_v13 = vld [vmem:[#allocation31_spill] sm:$0xff] }
 0x3b4   : > { %v3323_v3 = vsel %vm3280_vm6, %v3067_v26, %v3322_v39  ;;  %v3329_v33 = vsel %vm3278_vm5, %v7215_v50, %v3328_v59  ;;  %v3056_v24 = vmul.f32 %v8401_v63, %v8401_v63  ;;  %v3057_v23 = vmul.f32 %v7321_v18, %v7321_v18  ;;  %v8404_v50 = vld [vmem:[#allocation37_spill] sm:$0xff] }
 0x3b5   : > { %8397 = vst [vmem:[#allocation93_spill] sm:$0xff] %v7339_v16  ;;  %v2529_v5 = vadd.f32 %v8399_v41, %v8398_v27  ;;  %3415 = vadd.xlane.f32.xlu2 %v3323_v3  ;;  %v3330_v26 = vsel %vm3280_vm6, %v3075_v44, %v3329_v33  ;;  %v3058_v1 = vmul.f32 %v7339_v16, %v7339_v16  ;;  %v8406_v4 = vrot.slane %v8405_v48, 1  ;;  %v8408_v59 = vld [vmem:[#allocation101_spill] sm:$0xff] }
 0x3b6   : > { %v3310_v39 = vsel %vm3268_vm0, %v8403_v13, %v8402_v11  ;;  %3417 = vadd.xlane.f32.xlu0 %v3330_v26  ;;  %v2380_v27 = vrot.slane %v8408_v59, 1  ;;  %v8409_v44 = vld [vmem:[#allocation105_spill] sm:$0xff]  ;;  %v2290_v11 = vrot.slane %v2289_v22, 1  ;;  %v8412_v26 = vld [vmem:[#allocation16_spill] sm:$0xff] }
 0x3b7   : > { %v2530_v31 = vrot.slane %v2529_v5, 1  ;;  %v3311_v0 = vsel %vm3270_vm1, %v8404_v50, %v3310_v39  ;;  %v7363_v3 = vadd.f32 %v8406_v4, %v8405_v48  ;;  %v8410_v41 = vrot.slane %v8409_v44, 2  ;;  %v8414_v4 = vld [vmem:[#allocation87_spill] sm:$0xff] }
 0x3b8   : > { %v3312_v16 = vsel %vm3272_vm2, %v3055_v56, %v3311_v0  ;;  %v3015_v13 = vmul.f32 %v8412_v26, %v8412_v26  ;;  %v7376_v50 = vadd.f32 %v2380_v27, %v8408_v59  ;;  %v3031_v18 = vmul.f32 %v8414_v4, %v8414_v4  ;;  %v8416_v0 = vld [vmem:[#allocation13_spill] sm:$0xff]  ;;  %v8419_v26 = vld [vmem:[#allocation80_spill] sm:$0xff] }
 0x3b9   : > { %8407 = vst [vmem:[#allocation66_spill] sm:$0xff] %v7363_v3  ;;  %v2385_v33 = vadd.f32 %v8410_v41, %v8409_v44  ;;  %v7369_v49 = vadd.f32 %v2530_v31, %v2529_v5  ;;  %v3313_v39 = vsel %vm3274_vm3, %v3056_v24, %v3312_v16  ;;  %v8415_v31 = vld [vmem:[#allocation98_spill] sm:$0xff]  ;;  %v3271_v41 = vsel %vm3270_vm1, %v8416_v0, %v3269_v53  ;;  %v8418_v27 = vld [vmem:[#allocation73_spill] sm:$0xff] }
 0x3ba   : > { %8413 = vst [vmem:[#allocation74_spill] sm:$0xff] %v7376_v50  ;;  %v3314_v5 = vsel %vm3276_vm4, %v3057_v23, %v3313_v39  ;;  %v3032_v56 = vmul.f32 %v8415_v31, %v8415_v31  ;;  %v3033_v59 = vmul.f32 %v7363_v3, %v7363_v3  ;;  %v3289_v4 = vsel %vm3268_vm0, %v8419_v26, %v8418_v27  ;;  %v8420_v39 = vld [vmem:[#allocation85_spill] sm:$0xff]  ;;  %v8427_v27 = vld [vmem:[#allocation60_spill] sm:$0xff] }
 0x3bb   : > { %8411 = vst [vmem:[#allocation69_spill] sm:$0xff] %v7369_v49  ;;  %v2386_v48 = vrot.slane %v2385_v33, 1  ;;  %v3059_v44 = vmul.f32 %v7369_v49, %v7369_v49  ;;  %v3315_v16 = vsel %vm3278_vm5, %v3058_v1, %v3314_v5  ;;  %v3034_v23 = vmul.f32 %v7376_v50, %v7376_v50 }
 0x3bc   : > { %v3290_v31 = vsel %vm3270_vm1, %v8420_v39, %v3289_v4  ;;  %v7400_v53 = vadd.f32 %v2290_v11, %v2289_v22  ;;  %v3017_v26 = vmul.f32 %v7220_v32, %v7220_v32  ;;  %v3018_v0 = vmul.f32 %v7245_v28, %v7245_v28  ;;  %v8423_v11 = vld [vmem:[#allocation62_spill] sm:$0xff]  ;;  %v8432_v28 = vld [vmem:[#allocation43_spill] sm:$0xff] }
 0x3bd   : > { %v7388_v24 = vadd.f32 %v2386_v48, %v2385_v33  ;;  %v3316_v49 = vsel %vm3280_vm6, %v3059_v44, %v3315_v16  ;;  %v3291_v33 = vsel %vm3272_vm2, %v3031_v18, %v3290_v31  ;;  %v8422_v48 = vld [vmem:[#allocation17_spill] sm:$0xff]  ;;  %v3273_v22 = vsel %vm3272_vm2, %v3015_v13, %v3271_v41  ;;  %v8424_v16 = vld [vmem:[#allocation59_spill] sm:$0xff] }
 0x3be   : > { %8421 = vst [vmem:[#allocation49_spill] sm:$0xff] %v7400_v53  ;;  %3413 = vadd.xlane.f32.xlu2 %v3316_v49  ;;  %v3016_v5 = vmul.f32 %v8422_v48, %v8422_v48  ;;  %v3292_v44 = vsel %vm3274_vm3, %v3032_v56, %v3291_v33  ;;  %v2332_v49 = vrot.slane %v8423_v11, 1  ;;  %v8425_v18 = vrot.slane %v8424_v16, 1  ;;  %v8429_v48 = vld [vmem:[#allocation52_spill] sm:$0xff] }
 0x3bf   : > { %8417 = vst [vmem:[#allocation102_spill] sm:$0xff] %v7388_v24  ;;  %v3035_v1 = vmul.f32 %v7388_v24, %v7388_v24  ;;  %v3293_v4 = vsel %vm3276_vm4, %v3033_v59, %v3292_v44  ;;  %v8428_v39 = vrot.slane %v8427_v27, 2  ;;  %v3023_v56 = vmul.f32 %v8429_v48, %v8429_v48  ;;  %v8433_v48 = vld [vmem:[#allocation57_spill] sm:$0xff] }
 0x3c0   : > { %v7418_v31 = vadd.f32 %v8425_v18, %v8424_v16  ;;  %v3294_v33 = vsel %vm3278_vm5, %v3034_v23, %v3293_v4  ;;  %v3019_v13 = vmul.f32 %v7400_v53, %v7400_v53  ;;  %v7429_v41 = vadd.f32 %v2332_v49, %v8423_v11  ;;  %v8431_v18 = vld [vmem:[#allocation36_spill] sm:$0xff]  ;;  %v8434_v4 = vld [vmem:[#allocation50_spill] sm:$0xff] }
 0x3c1   : > { %v2337_v32 = vadd.f32 %v8428_v39, %v8427_v27  ;;  %v3295_v59 = vsel %vm3280_vm6, %v3035_v1, %v3294_v33  ;;  %v3275_v44 = vsel %vm3274_vm3, %v3016_v5, %v3273_v22  ;;  %v3282_v27 = vsel %vm3268_vm0, %v8432_v28, %v8431_v18 }
 0x3c2   : > { %8426 = vst [vmem:[#allocation56_spill] sm:$0xff] %v7418_v31  ;;  %3407 = vadd.xlane.f32.xlu0 %v3295_v59  ;;  %v3277_v39 = vsel %vm3276_vm4, %v3017_v26, %v3275_v44  ;;  %v3024_v23 = vmul.f32 %v8433_v48, %v8433_v48  ;;  %v3283_v53 = vsel %vm3270_vm1, %v8434_v4, %v3282_v27  ;;  %v3428_v44 = vpop.xlane.xlu1 %3427 }
 0x3c3   : > { %8430 = vst [vmem:[#allocation6_spill] sm:$0xff] %v7429_v41  ;;  %v2338_v16 = vrot.slane %v2337_v32, 1  ;;  %v3279_v11 = vsel %vm3278_vm5, %v3018_v0, %v3277_v39  ;;  %v3025_v1 = vmul.f32 %v7418_v31, %v7418_v31  ;;  %v3284_v5 = vsel %vm3272_vm2, %v3023_v56, %v3283_v53 }
 0x3c4   : > { %v3281_v28 = vsel %vm3280_vm6, %v3019_v13, %v3279_v11  ;;  %v3026_v26 = vmul.f32 %v7429_v41, %v7429_v41  ;;  %v3285_v33 = vsel %vm3274_vm3, %v3024_v23, %v3284_v5  ;;  %v7456_v56 = vmax.f32 %v3428_v44, 6.4e-23 }
 0x3c5   : > { %v7442_v49 = vadd.f32 %v2338_v16, %v2337_v32  ;;  %v3286_v0 = vsel %vm3276_vm4, %v3025_v1, %v3285_v33 }
 0x3c6   : > { %3403 = vadd.xlane.f32.xlu2 %v3281_v28  ;;  %v3287_v32 = vsel %vm3278_vm5, %v3026_v26, %v3286_v0  ;;  %5641 = vrsqrt.f32 %v7456_v56  ;;  %vm3577_vm12 = vweird.f32 %v7456_v56 }
 0x3c7   : > { %8435 = vst [vmem:[#allocation10_spill] sm:$0xff] %v7442_v49  ;;  %v3027_v22 = vmul.f32 %v7442_v49, %v7442_v49 }
 0x3c9   : > { %v3288_v59 = vsel %vm3280_vm6, %v3027_v22, %v3287_v32 }
 0x3ca   : > { %3405 = vadd.xlane.f32.xlu0 %v3288_v59  ;;  %v3430_v53 = vpop.xlane.xlu1 %3429 }
 0x3cb   : > { %v7458_v16 = vmax.f32 %v3430_v53, 6.4e-23 }
 0x3cc   : > { %v5642_v5 = vpop.eup %5641 }
 0x3cd   : > { %5643 = vrsqrt.f32 %v7458_v16  ;;  %v3572_v0 = vmul.f32 %v5642_v5, %v7456_v56  ;;  %vm3578_vm10 = vweird.f32 %v5642_v5  ;;  %vm3587_vm14 = vweird.f32 %v7458_v16 }
 0x3ce   : > { %vm3579_vm13 = vmor %vm3577_vm12, %vm3578_vm10 }
 0x3d2   : > { %v3422_v27 = vpop.xlane.xlu1 %3421 }
 0x3d3   : > { %v7462_v39 = vmax.f32 %v3422_v27, 6.4e-23  ;;  %v5644_v26 = vpop.eup %5643 }
 0x3d4   : > { %v3582_v59 = vmul.f32 %v5644_v26, %v7458_v16  ;;  %vm3588_vm11 = vweird.f32 %v5644_v26 }
 0x3d5   : > { %5645 = vrsqrt.f32 %v7462_v39  ;;  %vm3589_vm15 = vmor %vm3587_vm14, %vm3588_vm11  ;;  %vm3547_vm9 = vweird.f32 %v7462_v39 }
 0x3d6   : > { %v3583_v27 = vmul.f32 %v5644_v26, %v3582_v59 }
 0x3db   : > { %v3432_v13 = vpop.xlane.xlu0 %3431  ;;  %v7481_v44 = vpop.eup %5645 }
 0x3dc   : > { %v7464_v23 = vmax.f32 %v3432_v13, 6.4e-23  ;;  %v3573_v13 = vmul.f32 %v5642_v5, %v3572_v0  ;;  %v3584_v0 = vmul.f32 0.5, %v3583_v27  ;;  %vm3548_vm7 = vweird.f32 %v7481_v44 }
 0x3dd   : > { %vm3549_vm11 = vmor %vm3547_vm9, %vm3548_vm7 }
 0x3de   : > { %5647 = vrsqrt.f32 %v7464_v23  ;;  %v3574_v41 = vmul.f32 0.5, %v3573_v13  ;;  %v3585_v19 = vsub.f32 1.5, %v3584_v0  ;;  %vm3597_vm12 = vweird.f32 %v7464_v23 }
 0x3e0   : > { %v3575_v63 = vsub.f32 1.5, %v3574_v41 }
 0x3e4   : > { %v7483_v53 = vpop.eup %5647 }
 0x3e5   : > { %vm3598_vm8 = vweird.f32 %v7483_v53 }
 0x3e6   : > { %vm3599_vm14 = vmor %vm3597_vm12, %vm3598_vm8 }
 0x3e8   : > { %v3424_v18 = vpop.xlane.xlu2 %3423 }
 0x3e9   : > { %v7466_v4 = vmax.f32 %v3424_v18, 6.4e-23 }
 0x3eb   : > { %5649 = vrsqrt.f32 %v7466_v4 }
 0x3f1   : > { %v7486_v18 = vpop.eup %5649 }
 0x3f2   : > { %v3552_v31 = vmul.f32 %v7486_v18, %v7466_v4  ;;  %vm3558_vm10 = vweird.f32 %v7486_v18 }
 0x3f4   : > { %v3553_v6 = vmul.f32 %v7486_v18, %v3552_v31  ;;  %v3586_v31 = vmul.f32 %v5644_v26, %v3585_v19 }
 0x3f6   : > { %v3554_v41 = vmul.f32 0.5, %v3553_v6 }
 0x3f8   : > { %v3555_v19 = vsub.f32 1.5, %v3554_v41 }
 0x40c   : > { %v3434_v11 = vpop.xlane.xlu0 %3433 }
 0x40d   : > { %v3426_v1 = vpop.xlane.xlu2 %3425  ;;  %v7469_v28 = vmax.f32 %v3434_v11, 6.4e-23  ;;  %v3542_v11 = vmul.f32 %v7481_v44, %v7462_v39 }
 0x40e   : > { %v7472_v22 = vmax.f32 %v3426_v1, 6.4e-23 }
 0x40f   : > { %v3412_v33 = vpop.xlane.xlu1 %3411  ;;  %5651 = vrsqrt.f32 %v7469_v28  ;;  %v3543_v24 = vmul.f32 %v7481_v44, %v3542_v11  ;;  %vm3607_vm9 = vweird.f32 %v7469_v28 }
 0x410   : > { %v7476_v32 = vmax.f32 %v3412_v33, 6.4e-23  ;;  %5653 = vrsqrt.f32 %v7472_v22  ;;  %v3592_v33 = vmul.f32 %v7483_v53, %v7464_v23  ;;  %vm3567_vm12 = vweird.f32 %v7472_v22 }
 0x411   : > { %v3544_v42 = vmul.f32 0.5, %v3543_v24 }
 0x412   : > { %5655 = vrsqrt.f32 %v7476_v32  ;;  %v3593_v50 = vmul.f32 %v7483_v53, %v3592_v33  ;;  %v3576_v33 = vmul.f32 %v5642_v5, %v3575_v63 }
 0x413   : > { %v3545_v24 = vsub.f32 1.5, %v3544_v42 }
 0x414   : > { %v3594_v12 = vmul.f32 0.5, %v3593_v50  ;;  %v7520_v63 = vsel %vm3579_vm13, %v5642_v5, %v3576_v33  ;;  %v3556_v33 = vmul.f32 %v7486_v18, %v3555_v19  ;;  %vm3557_vm13 = vweird.f32 %v7466_v4 }
 0x415   : > { %v7490_v1 = vpop.eup %5651  ;;  %v3546_v16 = vmul.f32 %v7481_v44, %v3545_v24  ;;  %vm3559_vm7 = vmor %vm3557_vm13, %vm3558_vm10  ;;  %vm3497_vm13 = vweird.f32 %v7476_v32 }
 0x416   : > { %v7494_v49 = vpop.eup %5653  ;;  %v3602_v59 = vmul.f32 %v7490_v1, %v7469_v28 }
 0x417   : > { %v3562_v3 = vmul.f32 %v7494_v49, %v7472_v22  ;;  %vm3568_vm8 = vweird.f32 %v7494_v49 }
 0x418   : > { %v7498_v48 = vpop.eup %5655  ;;  %v3603_v11 = vmul.f32 %v7490_v1, %v3602_v59 }
 0x419   : > { %v3492_v27 = vmul.f32 %v7498_v48, %v7476_v32  ;;  %v3563_v25 = vmul.f32 %v7494_v49, %v3562_v3  ;;  %v3595_v3 = vsub.f32 1.5, %v3594_v12  ;;  %vm3498_vm10 = vweird.f32 %v7498_v48 }
 0x41b   : > { %v3493_v0 = vmul.f32 %v7498_v48, %v3492_v27  ;;  %v3564_v50 = vmul.f32 0.5, %v3563_v25  ;;  %v3596_v27 = vmul.f32 %v7483_v53, %v3595_v3  ;;  %v7555_v3 = vsel %vm3549_vm11, %v7481_v44, %v3546_v16 }
 0x41d   : > { %v3494_v42 = vmul.f32 0.5, %v3493_v0  ;;  %v7558_v23 = vsel %vm3599_vm14, %v7483_v53, %v3596_v27  ;;  %vm3569_vm14 = vmor %vm3567_vm12, %vm3568_vm8 }
 0x41e   : > { %v7657_v8 = vmul.f32 %v7558_v23, %v8439_v46 }
 0x41f   : > { %v3420_v13 = vpop.xlane.xlu0 %3419  ;;  %v3495_v0 = vsub.f32 1.5, %v3494_v42 }
 0x420   : > { %v7509_v55 = vmax.f32 %v3420_v13, 6.4e-23  ;;  %v3604_v13 = vmul.f32 0.5, %v3603_v11  ;;  %v3565_v11 = vsub.f32 1.5, %v3564_v50  ;;  %v7565_v50 = vsel %vm3559_vm7, %v7486_v18, %v3556_v33 }
 0x421   : > { %v3496_v53 = vmul.f32 %v7498_v48, %v3495_v0 }
 0x422   : > { %5657 = vrsqrt.f32 %v7509_v55  ;;  %v3410_v21 = vpop.xlane.xlu1 %3409  ;;  %v3605_v25 = vsub.f32 1.5, %v3604_v13  ;;  %v3566_v4 = vmul.f32 %v7494_v49, %v3565_v11 }
 0x423   : > { %v7515_v34 = vmax.f32 %v3410_v21, 6.4e-23  ;;  %v7524_v21 = vsel %vm3589_vm15, %v5644_v26, %v3586_v31  ;;  %vm3608_vm15 = vweird.f32 %v7490_v1 }
 0x424   : > { %v3606_v39 = vmul.f32 %v7490_v1, %v3605_v25  ;;  %vm3609_vm11 = vmor %vm3607_vm9, %vm3608_vm15  ;;  %vm3537_vm15 = vweird.f32 %v7509_v55 }
 0x425   : > { %5659 = vrsqrt.f32 %v7515_v34  ;;  %vm3499_vm9 = vmor %vm3497_vm13, %vm3498_vm10  ;;  %vm3487_vm8 = vweird.f32 %v7515_v34 }
 0x426   : > { %v7577_v18 = vsel %vm3609_vm11, %v7490_v1, %v3606_v39  ;;  %v7595_v11 = vsel %vm3499_vm9, %v7498_v48, %v3496_v53  ;;  %v3726_v48 = vrot.slane %v7558_v23, 2  ;;  %v3727_v53 = vrot.slane %v7558_v23, 3 }
 0x427   : > { %8436 = vst [vmem:[#allocation58_spill] sm:$0xff] %v7595_v11  ;;  %v3736_v54 = vrot.slane %v7577_v18, 5  ;;  %v3738_v52 = vrot.slane %v7577_v18, 7 }
 0x428   : > { %v3416_v6 = vpop.xlane.xlu2 %3415  ;;  %v7522_v59 = vpop.eup %5657  ;;  %v3982_v46 = vmul.f32 %v3727_v53, %v6859_v15 }
 0x429   : > { %v7527_v56 = vmax.f32 %v3416_v6, 6.4e-23  ;;  %v3532_v12 = vmul.f32 %v7522_v59, %v7509_v55  ;;  %v3418_v5 = vpop.xlane.xlu0 %3417  ;;  %vm3538_vm7 = vweird.f32 %v7522_v59 }
 0x42a   : > { %v7535_v26 = vmax.f32 %v3418_v5, 6.4e-23  ;;  %v7585_v5 = vsel %vm3569_vm14, %v7494_v49, %v3566_v4  ;;  %vm3539_vm10 = vmor %vm3537_vm15, %vm3538_vm7 }
 0x42b   : > { %5661 = vrsqrt.f32 %v7527_v56  ;;  %v3533_v41 = vmul.f32 %v7522_v59, %v3532_v12  ;;  %v7541_v31 = vpop.eup %5659  ;;  %vm3517_vm12 = vweird.f32 %v7527_v56 }
 0x42c   : > { %5663 = vrsqrt.f32 %v7535_v26  ;;  %v3482_v13 = vmul.f32 %v7541_v31, %v7515_v34  ;;  %vm3488_vm11 = vweird.f32 %v7541_v31  ;;  %vm3527_vm14 = vweird.f32 %v7535_v26 }
 0x42d   : > { %v3534_v24 = vmul.f32 0.5, %v3533_v41  ;;  %v3725_v34 = vrot.slane %v7558_v23, 1  ;;  %vm3489_vm9 = vmor %vm3487_vm8, %vm3488_vm11 }
 0x42e   : > { %v3483_v6 = vmul.f32 %v7541_v31, %v3482_v13 }
 0x42f   : > { %v3535_v19 = vsub.f32 1.5, %v3534_v24 }
 0x430   : > { %v3484_v28 = vmul.f32 0.5, %v3483_v6 }
 0x431   : > { %v3414_v44 = vpop.xlane.xlu2 %3413  ;;  %v7569_v42 = vpop.eup %5661  ;;  %v3536_v22 = vmul.f32 %v7522_v59, %v3535_v19 }
 0x432   : > { %v7574_v16 = vmax.f32 %v3414_v44, 6.4e-23  ;;  %v3512_v25 = vmul.f32 %v7569_v42, %v7527_v56  ;;  %v7582_v12 = vpop.eup %5663  ;;  %v3485_v32 = vsub.f32 1.5, %v3484_v28  ;;  %vm3518_vm13 = vweird.f32 %v7569_v42 }
 0x433   : > { %v3522_v27 = vmul.f32 %v7582_v12, %v7535_v26  ;;  %v7613_v24 = vsel %vm3539_vm10, %v7522_v59, %v3536_v22  ;;  %vm3528_vm15 = vweird.f32 %v7582_v12  ;;  %v3728_v22 = vrot.slane %v7558_v23, 4  ;;  %vm3519_vm8 = vmor %vm3517_vm12, %vm3518_vm13 }
 0x434   : > { %5665 = vrsqrt.f32 %v7574_v16  ;;  %v3513_v1 = vmul.f32 %v7569_v42, %v3512_v25  ;;  %v3486_v33 = vmul.f32 %v7541_v31, %v3485_v32  ;;  %v3729_v32 = vrot.slane %v7558_v23, 5  ;;  %vm3529_vm12 = vmor %vm3527_vm14, %vm3528_vm15 }
 0x435   : > { %v3408_v49 = vpop.xlane.xlu0 %3407  ;;  %v3523_v0 = vmul.f32 %v7582_v12, %v3522_v27  ;;  %vm3507_vm7 = vweird.f32 %v7574_v16 }
 0x436   : > { %v3514_v41 = vmul.f32 0.5, %v3513_v1  ;;  %v7602_v39 = vmax.f32 %v3408_v49, 6.4e-23  ;;  %v7619_v55 = vsel %vm3489_vm9, %v7541_v31, %v3486_v33  ;;  %v3730_v31 = vrot.slane %v7558_v23, 6 }
 0x437   : > { %v3524_v4 = vmul.f32 0.5, %v3523_v0  ;;  %8437 = vst [vmem:[#allocation28_spill] sm:$0xff] %v7619_v55  ;;  %v3731_v1 = vrot.slane %v7558_v23, 7  ;;  %v3732_v33 = vrot.slane %v7577_v18, 1 }
 0x438   : > { %v3515_v13 = vsub.f32 1.5, %v3514_v41  ;;  %5667 = vrsqrt.f32 %v7602_v39  ;;  %v3733_v41 = vrot.slane %v7577_v18, 2  ;;  %vm3477_vm10 = vweird.f32 %v7602_v39 }
 0x439   : > { %v3404_v19 = vpop.xlane.xlu2 %3403  ;;  %v3525_v28 = vsub.f32 1.5, %v3524_v4  ;;  %v3734_v4 = vrot.slane %v7577_v18, 3  ;;  %v3988_v15 = vmul.f32 %v3732_v33, %v7025_v51  ;;  %v4107_v33 = vpack.c.bf16 %v7657_v8, %v7657_v8 }
 0x43a   : > { %v7616_v6 = vpop.eup %5665  ;;  %v7622_v44 = vmax.f32 %v3404_v19, 6.4e-23  ;;  %v3516_v59 = vmul.f32 %v7569_v42, %v3515_v13  ;;  %v3735_v19 = vrot.slane %v7577_v18, 4  ;;  %v3989_v53 = vmul.f32 %v3733_v41, %v7030_v7 }
 0x43b   : > { %v3502_v25 = vmul.f32 %v7616_v6, %v7574_v16  ;;  %v3526_v0 = vmul.f32 %v7582_v12, %v3525_v28  ;;  %vm3508_vm11 = vweird.f32 %v7616_v6  ;;  %v3737_v28 = vrot.slane %v7577_v18, 6 }
 0x43c   : > { %5669 = vrsqrt.f32 %v7622_v44  ;;  %v7647_v27 = vsel %vm3519_vm8, %v7569_v42, %v3516_v59  ;;  %v8440_v59 = vld [vmem:[#allocation90_spill] sm:$0xff]  ;;  %vm3457_vm14 = vweird.f32 %v7622_v44  ;;  %vm3509_vm15 = vmor %vm3507_vm7, %vm3508_vm11  ;;  %v3994_v7 = vmul.f32 %v3738_v52, %v7119_v62 }
 0x43d   : > { %v3503_v49 = vmul.f32 %v7616_v6, %v3502_v25  ;;  %v3406_v13 = vpop.xlane.xlu0 %3405  ;;  %8438 = vst [vmem:[#allocation31_spill] sm:$0xff] %v7647_v27  ;;  %v7667_v2 = vsel %vm3529_vm12, %v7582_v12, %v3526_v0  ;;  %v8445_v27 = vld [vmem:[#allocation111_spill] sm:$0xff]  ;;  %v8446_v0 = vld [vmem:[#allocation112_spill] sm:$0xff]  ;;  %v3993_v51 = vmul.f32 %v3737_v28, %v7098_v30  ;;  %v4116_v52 = vpack.c.bf16 %v3988_v15, %v3988_v15 }
 0x43e   : > { %v5668_v25 = vpop.eup %5667  ;;  %v7649_v11 = vmax.f32 %v3406_v13, 6.4e-23  ;;  %v8441_v13 = vld [vmem:[#allocation95_spill] sm:$0xff]  ;;  %8442 = vst [vmem:[#allocation37_spill] sm:$0xff] %v7667_v2  ;;  %v3985_v12 = vmul.f32 %v3730_v31, %v8445_v27  ;;  %v3987_v2 = vmul.f32 %v7577_v18, %v7010_v38  ;;  %v3992_v31 = vmul.f32 %v3736_v54, %v7082_v35 }
 0x43f   : > { %v3504_v55 = vmul.f32 0.5, %v3503_v49  ;;  %v3472_v56 = vmul.f32 %v5668_v25, %v7602_v39  ;;  %v3980_v49 = vmul.f32 %v3725_v34, %v8440_v59  ;;  %v3981_v57 = vmul.f32 %v3726_v48, %v8441_v13  ;;  %v8444_v59 = vld [vmem:[#allocation110_spill] sm:$0xff] }
 0x440   : > { %5671 = vrsqrt.f32 %v7649_v11  ;;  %vm3478_vm13 = vweird.f32 %v5668_v25  ;;  %v3984_v48 = vmul.f32 %v3729_v32, %v8444_v59  ;;  %v3991_v32 = vmul.f32 %v3735_v19, %v7062_v43 }
 0x441   : > { %v3505_v42 = vsub.f32 1.5, %v3504_v55  ;;  %v3473_v14 = vmul.f32 %v5668_v25, %v3472_v56  ;;  %v8443_v55 = vld [vmem:[#allocation103_spill] sm:$0xff]  ;;  %v3986_v56 = vmul.f32 %v3731_v1, %v8446_v0  ;;  %v4109_v43 = vpack.c.bf16 %v3981_v57, %v3981_v57  ;;  %vm3479_vm8 = vmor %vm3477_vm10, %vm3478_vm13 }
 0x442   : > { %v5670_v36 = vpop.eup %5669  ;;  %v3983_v34 = vmul.f32 %v3728_v22, %v8443_v55  ;;  %v4113_v19 = vpack.c.bf16 %v3985_v12, %v3985_v12  ;;  %vm3467_vm11 = vweird.f32 %v7649_v11  ;;  %v4117_v28 = vpack.c.bf16 %v3989_v53, %v3989_v53 }
 0x443   : > { %v3506_v26 = vmul.f32 %v7616_v6, %v3505_v42  ;;  %v3452_v23 = vmul.f32 %v5670_v36, %v7622_v44  ;;  %v3474_v13 = vmul.f32 0.5, %v3473_v14  ;;  %vm3458_vm9 = vweird.f32 %v5670_v36 }
 0x444   : > { %v3990_v14 = vmul.f32 %v3734_v4, %v7053_v17  ;;  %v4108_v17 = vpack.c.bf16 %v3980_v49, %v3980_v49  ;;  %v4110_v4 = vpack.c.bf16 %v3982_v46, %v3982_v46  ;;  %v4111_v35 = vpack.c.bf16 %v3983_v34, %v3983_v34  ;;  %vm3459_vm12 = vmor %vm3457_vm14, %vm3458_vm9 }
 0x445   : > { %v3453_v58 = vmul.f32 %v5670_v36, %v3452_v23  ;;  %v3475_v22 = vsub.f32 1.5, %v3474_v13  ;;  %v7690_v38 = vsel %vm3509_vm15, %v7616_v6, %v3506_v26  ;;  %v4112_v6 = vpack.c.bf16 %v3984_v48, %v3984_v48 }
 0x446   : > { %v5672_v1 = vpop.eup %5671  ;;  %v4114_v62 = vpack.c.bf16 %v3986_v56, %v3986_v56  ;;  %v4118_v42 = vpack.c.bf16 %v3990_v14, %v3990_v14  ;;  %v4119_v46 = vpack.c.bf16 %v3991_v32, %v3991_v32  ;;  %v4380_v39 = vunpack.c.l.b16 %v4108_v17 }
 0x447   : > { %v3454_v18 = vmul.f32 0.5, %v3453_v58  ;;  %v3476_v27 = vmul.f32 %v5668_v25, %v3475_v22  ;;  %v3462_v16 = vmul.f32 %v5672_v1, %v7649_v11  ;;  %vm3468_vm7 = vweird.f32 %v5672_v1 }
 0x448   : > { %v4115_v58 = vpack.c.bf16 %v3987_v2, %v3987_v2  ;;  %v4381_v26 = vunpack.c.l.b16 %v4109_v43  ;;  %v4120_v55 = vpack.c.bf16 %v3992_v31, %v3992_v31  ;;  %v4121_v34 = vpack.c.bf16 %v3993_v51, %v3993_v51  ;;  %vm3469_vm10 = vmor %vm3467_vm11, %vm3468_vm7 }
 0x449   : > { %v3455_v41 = vsub.f32 1.5, %v3454_v18  ;;  %v3463_v54 = vmul.f32 %v5672_v1, %v3462_v16  ;;  %v7701_v8 = vsel %vm3479_vm8, %v5668_v25, %v3476_v27  ;;  %v4122_v59 = vpack.c.bf16 %v3994_v7, %v3994_v7 }
 0x44a   : > { %v4379_v25 = vunpack.c.l.b16 %v4107_v33  ;;  %v4382_v48 = vunpack.c.l.b16 %v4110_v4  ;;  %v4383_v13 = vunpack.c.l.b16 %v4111_v35  ;;  %v4384_v12 = vunpack.c.l.b16 %v4112_v6 }
 0x44b   : > { %v3456_v30 = vmul.f32 %v5670_v36, %v3455_v41  ;;  %v3464_v57 = vmul.f32 0.5, %v3463_v54  ;;  %v4385_v44 = vunpack.c.l.b16 %v4113_v19  ;;  %v4388_v0 = vunpack.c.l.b16 %v4116_v52 }
 0x44c   : > { %v4389_v56 = vunpack.c.l.b16 %v4117_v28  ;;  %v4386_v53 = vunpack.c.l.b16 %v4114_v62  ;;  %v4593_v22 = vrot.slane %v4381_v26, 6  ;;  %v4387_v14 = vunpack.c.l.b16 %v4115_v58 }
 0x44d   : > { %v7706_v49 = vsel %vm3459_vm12, %v5670_v36, %v3456_v30  ;;  %v3465_v23 = vsub.f32 1.5, %v3464_v57  ;;  %v4591_v36 = vrot.slane %v4380_v39, 7  ;;  %v4390_v32 = vunpack.c.l.b16 %v4118_v42 }
 0x44e   : > { %v3627_v2 = vrot.slane %v7706_v49, 1  ;;  %v4391_v18 = vunpack.c.l.b16 %v4119_v46  ;;  %v4392_v27 = vunpack.c.l.b16 %v4120_v55  ;;  %v4393_v31 = vunpack.c.l.b16 %v4121_v34 }
 0x44f   : > { %v3466_v15 = vmul.f32 %v5672_v1, %v3465_v23  ;;  %v4394_v51 = vunpack.c.l.b16 %v4122_v59  ;;  %v4592_v7 = vsel %vm3268_vm0, %v4591_v36, %v4379_v25  ;;  %v4595_v16 = vrot.slane %v4382_v48, 5 }
 0x450   : > { %v4594_v33 = vsel %vm3270_vm1, %v4593_v22, %v4592_v7  ;;  %v4597_v17 = vrot.slane %v4383_v13, 4  ;;  %v4605_v41 = vrot.slane %v4388_v0, 7  ;;  %v4607_v43 = vrot.slane %v4389_v56, 6 }
 0x451   : > { %v7714_v4 = vsel %vm3469_vm10, %v5672_v1, %v3466_v15  ;;  %v4596_v35 = vsel %vm3272_vm2, %v4595_v16, %v4594_v33  ;;  %v4599_v54 = vrot.slane %v4384_v12, 3  ;;  %v4601_v6 = vrot.slane %v4385_v44, 2  ;;  %v8449_v33 = vld [vmem:[#allocation14_spill] sm:$0xff] }
 0x452   : > { %v4598_v19 = vsel %vm3274_vm3, %v4597_v17, %v4596_v35  ;;  %v4603_v30 = vrot.slane %v4386_v53, 1  ;;  %v4606_v62 = vsel %vm3268_vm0, %v4605_v41, %v4387_v14  ;;  %v4609_v58 = vrot.slane %v4390_v32, 5  ;;  %v8450_v41 = vld [vmem:[#allocation23_spill] sm:$0xff]  ;;  %v8451_v35 = vld [vmem:[#allocation30_spill] sm:$0xff] }
 0x453   : > { %v4600_v11 = vsel %vm3276_vm4, %v4599_v54, %v4598_v19  ;;  %v4608_v52 = vsel %vm3270_vm1, %v4607_v43, %v4606_v62  ;;  %v4611_v57 = vrot.slane %v4391_v18, 4  ;;  %v4613_v28 = vrot.slane %v4392_v27, 3  ;;  %v8447_v18 = vld [vmem:[#allocation15_spill] sm:$0xff] }
 0x454   : > { %v4602_v42 = vsel %vm3278_vm5, %v4601_v6, %v4600_v11  ;;  %v4610_v1 = vsel %vm3272_vm2, %v4609_v58, %v4608_v52  ;;  %v4615_v46 = vrot.slane %v4393_v31, 2  ;;  %v4617_v39 = vrot.slane %v4394_v51, 1  ;;  %v8448_v31 = vld [vmem:[#allocation20_spill] sm:$0xff]  ;;  %v8452_v6 = vld [vmem:[#allocation35_spill] sm:$0xff]  ;;  %v8455_v52 = vld [vmem:[#allocation38_spill] sm:$0xff] }
 0x455   : > { %v4612_v26 = vsel %vm3274_vm3, %v4611_v57, %v4610_v1  ;;  %v3711_v23 = vrot.slane %v7520_v63, 1  ;;  %v3712_v55 = vrot.slane %v7520_v63, 2  ;;  %v3713_v34 = vrot.slane %v7520_v63, 3  ;;  %v8454_v58 = vld [vmem:[#allocation55_spill] sm:$0xff]  ;;  %v8457_v1 = vld [vmem:[#allocation48_spill] sm:$0xff] }
 0x456   : > { %v4604_v59 = vsel %vm3280_vm6, %v4603_v30, %v4602_v42  ;;  %v4614_v25 = vsel %vm3276_vm4, %v4613_v28, %v4612_v26  ;;  %v3714_v48 = vrot.slane %v7520_v63, 4  ;;  %v3715_v13 = vrot.slane %v7520_v63, 5  ;;  %v8453_v30 = vld [vmem:[#allocation53_spill] sm:$0xff]  ;;  %v8456_v28 = vld [vmem:[#allocation40_spill] sm:$0xff]  ;;  %v8459_v26 = vld [vmem:[#allocation67_spill] sm:$0xff] }
 0x457   : > { %v4616_v12 = vsel %vm3278_vm5, %v4615_v46, %v4614_v25  ;;  %v3716_v44 = vrot.slane %v7520_v63, 6  ;;  %v3718_v0 = vrot.slane %v7524_v21, 1  ;;  %v3719_v56 = vrot.slane %v7524_v21, 2 }
 0x458   : > { %v4618_v15 = vsel %vm3280_vm6, %v4617_v39, %v4616_v12  ;;  %v3717_v53 = vrot.slane %v7520_v63, 7  ;;  %v3720_v36 = vrot.slane %v7524_v21, 3  ;;  %v3721_v22 = vrot.slane %v7524_v21, 4  ;;  %v8458_v39 = vld [vmem:[#allocation64_spill] sm:$0xff]  ;;  %v8462_v12 = vld [vmem:[#allocation78_spill] sm:$0xff] }
 0x459   : > { %v4626_v14 = vpack.c.b16 %v4618_v15, %v4604_v59  ;;  %v3722_v32 = vrot.slane %v7524_v21, 5  ;;  %v3964_v27 = vmul.f32 %v3711_v23, %v8447_v18  ;;  %v3965_v51 = vmul.f32 %v3712_v55, %v8448_v31  ;;  %v8460_v55 = vld [vmem:[#allocation76_spill] sm:$0xff] }
 0x45a   : > { %v3723_v7 = vrot.slane %v7524_v21, 6  ;;  %v3724_v16 = vrot.slane %v7524_v21, 7  ;;  %v3963_v17 = vmul.f32 %v7520_v63, %v8449_v33  ;;  %v3966_v43 = vmul.f32 %v3713_v34, %v8450_v41 }
 0x45b   : > { %4635 = vmatpush.bf16.xpose.msrb.mxu1 %v4626_v14  ;;  %v3967_v54 = vmul.f32 %v3714_v48, %v8451_v35  ;;  %v3968_v19 = vmul.f32 %v3715_v13, %v8452_v6  ;;  %v3972_v62 = vmul.f32 %v3718_v0, %v8453_v30  ;;  %v3973_v11 = vmul.f32 %v3719_v56, %v8454_v58  ;;  %v8461_v48 = vld [vmem:[#allocation77_spill] sm:$0xff] }
 0x45c   : > { %v3969_v57 = vmul.f32 %v3716_v44, %v8455_v52  ;;  %v3970_v42 = vmul.f32 %v3717_v53, %v8456_v28  ;;  %v3971_v46 = vmul.f32 %v7524_v21, %v8457_v1  ;;  %v3974_v63 = vmul.f32 %v3720_v36, %v8458_v39 }
 0x45d   : > { %v3975_v23 = vmul.f32 %v3721_v22, %v8459_v26  ;;  %v3976_v34 = vmul.f32 %v3722_v32, %v8460_v55  ;;  %v4092_v59 = vpack.c.bf16 %v3964_v27, %v3964_v27  ;;  %v4093_v25 = vpack.c.bf16 %v3965_v51, %v3965_v51 }
 0x45e   : > { %v3977_v13 = vmul.f32 %v3723_v7, %v8461_v48  ;;  %v3978_v0 = vmul.f32 %v3724_v16, %v8462_v12  ;;  %v4091_v56 = vpack.c.bf16 %v3963_v17, %v3963_v17  ;;  %v4094_v15 = vpack.c.bf16 %v3966_v43, %v3966_v43 }
 0x45f   : > { %v4095_v44 = vpack.c.bf16 %v3967_v54, %v3967_v54  ;;  %v4096_v14 = vpack.c.bf16 %v3968_v19, %v3968_v19  ;;  %v4100_v53 = vpack.c.bf16 %v3972_v62, %v3972_v62  ;;  %v4101_v18 = vpack.c.bf16 %v3973_v11, %v3973_v11 }
 0x460   : > { %v4097_v31 = vpack.c.bf16 %v3969_v57, %v3969_v57  ;;  %v4098_v21 = vpack.c.bf16 %v3970_v42, %v3970_v42  ;;  %v4099_v33 = vpack.c.bf16 %v3971_v46, %v3971_v46  ;;  %v4102_v36 = vpack.c.bf16 %v3974_v63, %v3974_v63 }
 0x461   : > { %v4103_v41 = vpack.c.bf16 %v3975_v23, %v3975_v23  ;;  %v4104_v22 = vpack.c.bf16 %v3976_v34, %v3976_v34  ;;  %v4364_v35 = vunpack.c.l.b16 %v4092_v59  ;;  %v4365_v32 = vunpack.c.l.b16 %v4093_v25 }
 0x462   : > { %v4105_v27 = vpack.c.bf16 %v3977_v13, %v3977_v13  ;;  %v4106_v51 = vpack.c.bf16 %v3978_v0, %v3978_v0  ;;  %v4363_v6 = vunpack.c.l.b16 %v4091_v56  ;;  %v4366_v7 = vunpack.c.l.b16 %v4094_v15 }
 0x463   : > { %v4367_v30 = vunpack.c.l.b16 %v4095_v44  ;;  %v4368_v16 = vunpack.c.l.b16 %v4096_v14  ;;  %v4372_v17 = vunpack.c.l.b16 %v4100_v53  ;;  %v4373_v43 = vunpack.c.l.b16 %v4101_v18 }
 0x464   : > { %v4369_v54 = vunpack.c.l.b16 %v4097_v31  ;;  %v4370_v19 = vunpack.c.l.b16 %v4098_v21  ;;  %v4374_v62 = vunpack.c.l.b16 %v4102_v36  ;;  %v4563_v58 = vrot.slane %v4364_v35, 7 }
 0x465   : > { %v4371_v11 = vunpack.c.l.b16 %v4099_v33  ;;  %v4375_v52 = vunpack.c.l.b16 %v4103_v41  ;;  %v4376_v57 = vunpack.c.l.b16 %v4104_v22  ;;  %v4565_v28 = vrot.slane %v4365_v32, 6 }
 0x466   : > { %v4377_v42 = vunpack.c.l.b16 %v4105_v27  ;;  %v4564_v1 = vsel %vm3268_vm0, %v4563_v58, %v4363_v6  ;;  %v4567_v46 = vrot.slane %v4366_v7, 5  ;;  %v4577_v39 = vrot.slane %v4372_v17, 7 }
 0x467   : > { %v4378_v63 = vunpack.c.l.b16 %v4106_v51  ;;  %v4566_v26 = vsel %vm3270_vm1, %v4565_v28, %v4564_v1  ;;  %v4569_v23 = vrot.slane %v4367_v30, 4  ;;  %v4579_v55 = vrot.slane %v4373_v43, 6  ;;  %v8464_v28 = vld [vmem:[#allocation100_spill] sm:$0xff] }
 0x468   : > { %v4568_v34 = vsel %vm3272_vm2, %v4567_v46, %v4566_v26  ;;  %v4571_v59 = vrot.slane %v4368_v16, 3  ;;  %v4578_v25 = vsel %vm3268_vm0, %v4577_v39, %v4371_v11  ;;  %v4581_v48 = vrot.slane %v4374_v62, 5  ;;  %v8463_v62 = vld [vmem:[#allocation97_spill] sm:$0xff]  ;;  %v8465_v46 = vld [vmem:[#allocation94_spill] sm:$0xff]  ;;  %v8466_v26 = vld [vmem:[#allocation120_spill] sm:$0xff] }
 0x469   : > { %v4570_v13 = vsel %vm3274_vm3, %v4569_v23, %v4568_v34  ;;  %v4573_v12 = vrot.slane %v4369_v54, 2  ;;  %v4580_v0 = vsel %vm3270_vm1, %v4579_v55, %v4578_v25  ;;  %v4583_v56 = vrot.slane %v4375_v52, 4  ;;  %v8467_v55 = vld [vmem:[#allocation113_spill] sm:$0xff] }
 0x46a   : > { %v4572_v15 = vsel %vm3276_vm4, %v4571_v59, %v4570_v13  ;;  %v4575_v44 = vrot.slane %v4370_v19, 1  ;;  %v4582_v14 = vsel %vm3272_vm2, %v4581_v48, %v4580_v0  ;;  %v4585_v53 = vrot.slane %v4376_v57, 3  ;;  %v8468_v59 = vld [vmem:[#allocation116_spill] sm:$0xff]  ;;  %v8469_v48 = vld [vmem:[#allocation117_spill] sm:$0xff] }
 0x46b   : > { %v4574_v18 = vsel %vm3278_vm5, %v4573_v12, %v4572_v15  ;;  %v4584_v31 = vsel %vm3274_vm3, %v4583_v56, %v4582_v14  ;;  %v4587_v21 = vrot.slane %v4377_v42, 2  ;;  %v3697_v33 = vrot.slane %v7565_v50, 1  ;;  %v8470_v12 = vld [vmem:[#allocation121_spill] sm:$0xff]  ;;  %v8471_v56 = vld [vmem:[#allocation118_spill] sm:$0xff] }
 0x46c   : > { %v4586_v36 = vsel %vm3276_vm4, %v4585_v53, %v4584_v31  ;;  %v4589_v41 = vrot.slane %v4378_v63, 1  ;;  %v3698_v22 = vrot.slane %v7565_v50, 2  ;;  %v3699_v35 = vrot.slane %v7565_v50, 3 }
 0x46d   : > { %v4588_v32 = vsel %vm3278_vm5, %v4587_v21, %v4586_v36  ;;  %v3700_v27 = vrot.slane %v7565_v50, 4  ;;  %v3701_v51 = vrot.slane %v7565_v50, 5  ;;  %v3704_v6 = vrot.slane %v7585_v5, 1 }
 0x46e   : > { %v4576_v7 = vsel %vm3280_vm6, %v4575_v44, %v4574_v18  ;;  %v4590_v30 = vsel %vm3280_vm6, %v4589_v41, %v4588_v32  ;;  %v3702_v16 = vrot.slane %v7565_v50, 6  ;;  %v3705_v17 = vrot.slane %v7585_v5, 2  ;;  %v8472_v44 = vld [vmem:[#allocation119_spill] sm:$0xff] }
 0x46f   : > { %v4625_v43 = vpack.c.b16 %v4590_v30, %v4576_v7  ;;  %v3703_v54 = vrot.slane %v7565_v50, 7  ;;  %v3706_v19 = vrot.slane %v7585_v5, 3  ;;  %v3948_v58 = vmul.f32 %v3697_v33, %v8463_v62 }
 0x470   : > { %v3707_v11 = vrot.slane %v7585_v5, 4  ;;  %v3708_v52 = vrot.slane %v7585_v5, 5  ;;  %v3709_v57 = vrot.slane %v7585_v5, 6  ;;  %v3949_v42 = vmul.f32 %v3698_v22, %v8464_v28 }
 0x471   : > { %4636 = vmatpush.bf16.xpose.msrb.mxu1 %v4625_v43  ;;  %v3710_v1 = vrot.slane %v7585_v5, 7  ;;  %v3947_v39 = vmul.f32 %v7565_v50, %v8465_v46  ;;  %v3950_v63 = vmul.f32 %v3699_v35, %v6914_v29  ;;  %v3956_v23 = vmul.f32 %v3704_v6, %v8466_v26 }
 0x472   : > { %v3951_v34 = vmul.f32 %v3700_v27, %v8467_v55  ;;  %v3952_v25 = vmul.f32 %v3701_v51, %v8468_v59  ;;  %v3953_v13 = vmul.f32 %v3702_v16, %v8469_v48  ;;  %v3957_v0 = vmul.f32 %v3705_v17, %v8470_v12 }
 0x473   : > { %v3954_v15 = vmul.f32 %v3703_v54, %v8471_v56  ;;  %v3955_v14 = vmul.f32 %v7585_v5, %v8472_v44  ;;  %v3958_v53 = vmul.f32 %v3706_v19, %v7068_v9  ;;  %v4076_v50 = vpack.c.bf16 %v3948_v58, %v3948_v58 }
 0x474   : > { %v3959_v29 = vmul.f32 %v3707_v11, %v7089_v10  ;;  %v3960_v18 = vmul.f32 %v3708_v52, %v7111_v60  ;;  %v3961_v31 = vmul.f32 %v3709_v57, %v7087_v45  ;;  %v4077_v21 = vpack.c.bf16 %v3949_v42, %v3949_v42 }
 0x475   : > { %v3962_v33 = vmul.f32 %v3710_v1, %v7113_v61  ;;  %v4075_v36 = vpack.c.bf16 %v3947_v39, %v3947_v39  ;;  %v4078_v41 = vpack.c.bf16 %v3950_v63, %v3950_v63  ;;  %v4084_v22 = vpack.c.bf16 %v3956_v23, %v3956_v23 }
 0x476   : > { %v4079_v35 = vpack.c.bf16 %v3951_v34, %v3951_v34  ;;  %v4080_v32 = vpack.c.bf16 %v3952_v25, %v3952_v25  ;;  %v4081_v27 = vpack.c.bf16 %v3953_v13, %v3953_v13  ;;  %v4085_v51 = vpack.c.bf16 %v3957_v0, %v3957_v0 }
 0x477   : > { %v4082_v5 = vpack.c.bf16 %v3954_v15, %v3954_v15  ;;  %v4083_v6 = vpack.c.bf16 %v3955_v14, %v3955_v14  ;;  %v4086_v9 = vpack.c.bf16 %v3958_v53, %v3958_v53  ;;  %v4348_v7 = vunpack.c.l.b16 %v4076_v50 }
 0x478   : > { %v4087_v30 = vpack.c.bf16 %v3959_v29, %v3959_v29  ;;  %v4088_v10 = vpack.c.bf16 %v3960_v18, %v3960_v18  ;;  %v4089_v16 = vpack.c.bf16 %v3961_v31, %v3961_v31  ;;  %v4349_v60 = vunpack.c.l.b16 %v4077_v21 }
 0x479   : > { %v4090_v17 = vpack.c.bf16 %v3962_v33, %v3962_v33  ;;  %v4347_v45 = vunpack.c.l.b16 %v4075_v36  ;;  %v4350_v43 = vunpack.c.l.b16 %v4078_v41  ;;  %v4356_v54 = vunpack.c.l.b16 %v4084_v22 }
 0x47a   : > { %v4351_v61 = vunpack.c.l.b16 %v4079_v35  ;;  %v4352_v19 = vunpack.c.l.b16 %v4080_v32  ;;  %v4353_v62 = vunpack.c.l.b16 %v4081_v27  ;;  %v4357_v58 = vunpack.c.l.b16 %v4085_v51 }
 0x47b   : > { %v4354_v11 = vunpack.c.l.b16 %v4082_v5  ;;  %v4358_v52 = vunpack.c.l.b16 %v4086_v9  ;;  %v4535_v57 = vrot.slane %v4348_v7, 7  ;;  %v4537_v28 = vrot.slane %v4349_v60, 6 }
 0x47c   : > { %v4355_v42 = vunpack.c.l.b16 %v4083_v6  ;;  %v4359_v1 = vunpack.c.l.b16 %v4087_v30  ;;  %v4360_v46 = vunpack.c.l.b16 %v4088_v10  ;;  %v4361_v39 = vunpack.c.l.b16 %v4089_v16 }
 0x47d   : > { %v4536_v63 = vsel %vm3268_vm0, %v4535_v57, %v4347_v45  ;;  %v4539_v26 = vrot.slane %v4350_v43, 5  ;;  %v4549_v23 = vrot.slane %v4356_v54, 7  ;;  %v4551_v55 = vrot.slane %v4357_v58, 6  ;;  %v8473_v45 = vld [vmem:[#allocation21_spill] sm:$0xff] }
 0x47e   : > { %v4362_v34 = vunpack.c.l.b16 %v4090_v17  ;;  %v4538_v59 = vsel %vm3270_vm1, %v4537_v28, %v4536_v63  ;;  %v4541_v25 = vrot.slane %v4351_v61, 4  ;;  %v4543_v48 = vrot.slane %v4352_v19, 3  ;;  %v8474_v54 = vld [vmem:[#allocation25_spill] sm:$0xff] }
 0x47f   : > { %v4540_v13 = vsel %vm3272_vm2, %v4539_v26, %v4538_v59  ;;  %v4545_v12 = vrot.slane %v4353_v62, 2  ;;  %v4550_v0 = vsel %vm3268_vm0, %v4549_v23, %v4355_v42  ;;  %v4553_v56 = vrot.slane %v4358_v52, 5  ;;  %v8475_v52 = vld [vmem:[#allocation18_spill] sm:$0xff]  ;;  %v8476_v42 = vld [vmem:[#allocation61_spill] sm:$0xff] }
 0x480   : > { %v4542_v15 = vsel %vm3274_vm3, %v4541_v25, %v4540_v13  ;;  %v4547_v44 = vrot.slane %v4354_v11, 1  ;;  %v4552_v14 = vsel %vm3270_vm1, %v4551_v55, %v4550_v0  ;;  %v4555_v53 = vrot.slane %v4359_v1, 4  ;;  %v8478_v55 = vld [vmem:[#allocation47_spill] sm:$0xff]  ;;  %v8479_v59 = vld [vmem:[#allocation54_spill] sm:$0xff] }
 0x481   : > { %v4544_v50 = vsel %vm3276_vm4, %v4543_v48, %v4542_v15  ;;  %v4554_v29 = vsel %vm3272_vm2, %v4553_v56, %v4552_v14  ;;  %v4557_v18 = vrot.slane %v4360_v46, 3  ;;  %v4559_v31 = vrot.slane %v4361_v39, 2  ;;  %v8477_v46 = vld [vmem:[#allocation65_spill] sm:$0xff]  ;;  %v8480_v48 = vld [vmem:[#allocation71_spill] sm:$0xff]  ;;  %v8482_v56 = vld [vmem:[#allocation88_spill] sm:$0xff] }
 0x482   : > { %v4546_v21 = vsel %vm3278_vm5, %v4545_v12, %v4544_v50  ;;  %v4556_v33 = vsel %vm3274_vm3, %v4555_v53, %v4554_v29  ;;  %v3683_v36 = vrot.slane %v7613_v24, 1  ;;  %v3684_v41 = vrot.slane %v7613_v24, 2 }
 0x483   : > { %v4558_v22 = vsel %vm3276_vm4, %v4557_v18, %v4556_v33  ;;  %v4561_v35 = vrot.slane %v4362_v34, 1  ;;  %v3685_v32 = vrot.slane %v7613_v24, 3  ;;  %v3686_v27 = vrot.slane %v7613_v24, 4 }
 0x484   : > { %v4560_v51 = vsel %vm3278_vm5, %v4559_v31, %v4558_v22  ;;  %v3687_v5 = vrot.slane %v7613_v24, 5  ;;  %v3690_v6 = vrot.slane %v7555_v3, 1  ;;  %v3691_v9 = vrot.slane %v7555_v3, 2 }
 0x485   : > { %v4548_v7 = vsel %vm3280_vm6, %v4547_v44, %v4546_v21  ;;  %v4562_v30 = vsel %vm3280_vm6, %v4561_v35, %v4560_v51  ;;  %v3688_v10 = vrot.slane %v7613_v24, 6  ;;  %v3689_v16 = vrot.slane %v7613_v24, 7  ;;  %v8483_v44 = vld [vmem:[#allocation89_spill] sm:$0xff] }
 0x486   : > { %v4624_v60 = vpack.c.b16 %v4562_v30, %v4548_v7  ;;  %v3692_v17 = vrot.slane %v7555_v3, 3  ;;  %v3932_v43 = vmul.f32 %v3683_v36, %v8473_v45  ;;  %v3933_v61 = vmul.f32 %v3684_v41, %v8474_v54 }
 0x487   : > { %v3693_v19 = vrot.slane %v7555_v3, 4  ;;  %v3694_v62 = vrot.slane %v7555_v3, 5  ;;  %v3695_v58 = vrot.slane %v7555_v3, 6  ;;  %v3696_v11 = vrot.slane %v7555_v3, 7 }
 0x488   : > { %4637 = vmatpush.bf16.xpose.msrb.mxu1 %v4624_v60  ;;  %v3931_v57 = vmul.f32 %v7613_v24, %v8475_v52  ;;  %v3934_v28 = vmul.f32 %v3685_v32, %v8359_v47  ;;  %v3940_v1 = vmul.f32 %v3690_v6, %v8476_v42  ;;  %v3941_v39 = vmul.f32 %v3691_v9, %v8477_v46  ;;  %v8481_v47 = vld [vmem:[#allocation75_spill] sm:$0xff] }
 0x489   : > { %v3935_v63 = vmul.f32 %v3686_v27, %v8368_v20  ;;  %v3936_v26 = vmul.f32 %v3687_v5, %v7225_v40  ;;  %v3937_v23 = vmul.f32 %v3688_v10, %v7240_v37  ;;  %v3938_v34 = vmul.f32 %v3689_v16, %v8478_v55  ;;  %v8484_v20 = vld [vmem:[#allocation92_spill] sm:$0xff] }
 0x48a   : > { %v3939_v25 = vmul.f32 %v7555_v3, %v8479_v59  ;;  %v3942_v13 = vmul.f32 %v3692_v17, %v8480_v48  ;;  %v4060_v24 = vpack.c.bf16 %v3932_v43, %v3932_v43  ;;  %v4061_v12 = vpack.c.bf16 %v3933_v61, %v3933_v61 }
 0x48b   : > { %v3943_v0 = vmul.f32 %v3693_v19, %v8481_v47  ;;  %v3944_v15 = vmul.f32 %v3694_v62, %v8482_v56  ;;  %v3945_v14 = vmul.f32 %v3695_v58, %v8483_v44  ;;  %v3946_v53 = vmul.f32 %v3696_v11, %v8484_v20 }
 0x48c   : > { %v4059_v40 = vpack.c.bf16 %v3931_v57, %v3931_v57  ;;  %v4062_v50 = vpack.c.bf16 %v3934_v28, %v3934_v28  ;;  %v4068_v37 = vpack.c.bf16 %v3940_v1, %v3940_v1  ;;  %v4069_v29 = vpack.c.bf16 %v3941_v39, %v3941_v39 }
 0x48d   : > { %v4063_v18 = vpack.c.bf16 %v3935_v63, %v3935_v63  ;;  %v4064_v31 = vpack.c.bf16 %v3936_v26, %v3936_v26  ;;  %v4065_v21 = vpack.c.bf16 %v3937_v23, %v3937_v23  ;;  %v4066_v3 = vpack.c.bf16 %v3938_v34, %v3938_v34 }
 0x48e   : > { %v4067_v33 = vpack.c.bf16 %v3939_v25, %v3939_v25  ;;  %v4070_v36 = vpack.c.bf16 %v3942_v13, %v3942_v13  ;;  %v4332_v41 = vunpack.c.l.b16 %v4060_v24  ;;  %v4333_v22 = vunpack.c.l.b16 %v4061_v12 }
 0x48f   : > { %v4071_v35 = vpack.c.bf16 %v3943_v0, %v3943_v0  ;;  %v4072_v32 = vpack.c.bf16 %v3944_v15, %v3944_v15  ;;  %v4073_v27 = vpack.c.bf16 %v3945_v14, %v3945_v14  ;;  %v4074_v51 = vpack.c.bf16 %v3946_v53, %v3946_v53  ;;  %v8485_v15 = vld [vmem:[#allocation31_spill] sm:$0xff] }
 0x490   : > { %v4331_v5 = vunpack.c.l.b16 %v4059_v40  ;;  %v4334_v6 = vunpack.c.l.b16 %v4062_v50  ;;  %v4340_v9 = vunpack.c.l.b16 %v4068_v37  ;;  %v4341_v7 = vunpack.c.l.b16 %v4069_v29 }
 0x491   : > { %v4335_v30 = vunpack.c.l.b16 %v4063_v18  ;;  %v4336_v10 = vunpack.c.l.b16 %v4064_v31  ;;  %v4337_v16 = vunpack.c.l.b16 %v4065_v21  ;;  %v4338_v60 = vunpack.c.l.b16 %v4066_v3  ;;  %v8486_v18 = vld [vmem:[#allocation37_spill] sm:$0xff] }
 0x492   : > { %v4339_v17 = vunpack.c.l.b16 %v4067_v33  ;;  %v4342_v45 = vunpack.c.l.b16 %v4070_v36  ;;  %v4507_v43 = vrot.slane %v4332_v41, 7  ;;  %v4509_v54 = vrot.slane %v4333_v22, 6 }
 0x493   : > { %v4343_v61 = vunpack.c.l.b16 %v4071_v35  ;;  %v4344_v19 = vunpack.c.l.b16 %v4072_v32  ;;  %v4345_v62 = vunpack.c.l.b16 %v4073_v27  ;;  %v4346_v58 = vunpack.c.l.b16 %v4074_v51  ;;  %v8487_v32 = vld [vmem:[#allocation68_spill] sm:$0xff] }
 0x494   : > { %v4508_v11 = vsel %vm3268_vm0, %v4507_v43, %v4331_v5  ;;  %v4511_v52 = vrot.slane %v4334_v6, 5  ;;  %v4521_v57 = vrot.slane %v4340_v9, 7  ;;  %v4523_v28 = vrot.slane %v4341_v7, 6  ;;  %v8488_v51 = vld [vmem:[#allocation72_spill] sm:$0xff]  ;;  %v8492_v43 = vld [vmem:[#allocation107_spill] sm:$0xff] }
 0x495   : > { %v4510_v42 = vsel %vm3270_vm1, %v4509_v54, %v4508_v11  ;;  %v4513_v1 = vrot.slane %v4335_v30, 4  ;;  %v4515_v46 = vrot.slane %v4336_v10, 3  ;;  %v4517_v39 = vrot.slane %v4337_v16, 2  ;;  %v8489_v30 = vld [vmem:[#allocation63_spill] sm:$0xff]  ;;  %v8490_v16 = vld [vmem:[#allocation81_spill] sm:$0xff]  ;;  %v8495_v11 = vld [vmem:[#allocation26_spill] sm:$0xff] }
 0x496   : > { %v4512_v63 = vsel %vm3272_vm2, %v4511_v52, %v4510_v42  ;;  %v4519_v26 = vrot.slane %v4338_v60, 1  ;;  %v4522_v23 = vsel %vm3268_vm0, %v4521_v57, %v4339_v17  ;;  %v4525_v55 = vrot.slane %v4342_v45, 5  ;;  %v8491_v17 = vld [vmem:[#allocation86_spill] sm:$0xff]  ;;  %v8496_v57 = vld [vmem:[#allocation84_spill] sm:$0xff]  ;;  %v8497_v42 = vld [vmem:[#allocation127_spill] sm:$0xff] }
 0x497   : > { %v4514_v34 = vsel %vm3274_vm3, %v4513_v1, %v4512_v63  ;;  %v4524_v59 = vsel %vm3270_vm1, %v4523_v28, %v4522_v23  ;;  %v4527_v25 = vrot.slane %v4343_v61, 4  ;;  %v4529_v48 = vrot.slane %v4344_v19, 3  ;;  %v8493_v61 = vld [vmem:[#allocation109_spill] sm:$0xff]  ;;  %v8499_v63 = vld [vmem:[#allocation8_spill] sm:$0xff] }
 0x498   : > { %v4516_v13 = vsel %vm3276_vm4, %v4515_v46, %v4514_v34  ;;  %v4526_v24 = vsel %vm3272_vm2, %v4525_v55, %v4524_v59  ;;  %v4531_v12 = vrot.slane %v4345_v62, 2  ;;  %v4533_v47 = vrot.slane %v4346_v58, 1  ;;  %v8494_v62 = vld [vmem:[#allocation39_spill] sm:$0xff]  ;;  %v8500_v34 = vld [vmem:[#allocation125_spill] sm:$0xff] }
 0x499   : > { %v4518_v0 = vsel %vm3278_vm5, %v4517_v39, %v4516_v13  ;;  %v4528_v56 = vsel %vm3274_vm3, %v4527_v25, %v4526_v24  ;;  %v3669_v44 = vrot.slane %v8485_v15, 1  ;;  %v3670_v14 = vrot.slane %v8485_v15, 2  ;;  %v8498_v46 = vld [vmem:[#allocation99_spill] sm:$0xff]  ;;  %v8501_v25 = vld [vmem:[#allocation126_spill] sm:$0xff] }
 0x49a   : > { %v4520_v20 = vsel %vm3280_vm6, %v4519_v26, %v4518_v0  ;;  %v4530_v53 = vsel %vm3276_vm4, %v4529_v48, %v4528_v56  ;;  %v3671_v40 = vrot.slane %v8485_v15, 3  ;;  %v3672_v50 = vrot.slane %v8485_v15, 4  ;;  %v8502_v13 = vld [vmem:[#allocation19_spill] sm:$0xff] }
 0x49b   : > { %v4532_v37 = vsel %vm3278_vm5, %v4531_v12, %v4530_v53  ;;  %v3673_v29 = vrot.slane %v8485_v15, 5  ;;  %v3676_v31 = vrot.slane %v8486_v18, 1  ;;  %v3677_v21 = vrot.slane %v8486_v18, 2 }
 0x49c   : > { %v4534_v3 = vsel %vm3280_vm6, %v4533_v47, %v4532_v37  ;;  %v3674_v33 = vrot.slane %v8485_v15, 6  ;;  %v3675_v36 = vrot.slane %v8485_v15, 7  ;;  %v3678_v41 = vrot.slane %v8486_v18, 3 }
 0x49d   : > { %v4623_v22 = vpack.c.b16 %v4534_v3, %v4520_v20  ;;  %v3679_v35 = vrot.slane %v8486_v18, 4  ;;  %v3916_v27 = vmul.f32 %v3669_v44, %v8487_v32  ;;  %v3917_v5 = vmul.f32 %v3670_v14, %v8488_v51 }
 0x49e   : > { %v3680_v6 = vrot.slane %v8486_v18, 5  ;;  %v3681_v9 = vrot.slane %v8486_v18, 6  ;;  %v3682_v7 = vrot.slane %v8486_v18, 7  ;;  %v3915_v10 = vmul.f32 %v8485_v15, %v8489_v30 }
 0x49f   : > { %4638 = vmatpush.bf16.xpose.msrb.mxu1 %v4623_v22  ;;  %v3918_v60 = vmul.f32 %v3671_v40, %v8490_v16  ;;  %v3919_v45 = vmul.f32 %v3672_v50, %v8491_v17  ;;  %v3924_v54 = vmul.f32 %v3676_v31, %v8492_v43  ;;  %v3925_v19 = vmul.f32 %v3677_v21, %v8493_v61 }
 0x4a0   : > { %v3920_v58 = vmul.f32 %v3673_v29, %v8494_v62  ;;  %v3921_v52 = vmul.f32 %v3674_v33, %v8495_v11  ;;  %v3922_v28 = vmul.f32 %v3675_v36, %v8496_v57  ;;  %v3926_v1 = vmul.f32 %v3678_v41, %v8497_v42 }
 0x4a1   : > { %v3923_v39 = vmul.f32 %v8486_v18, %v8498_v46  ;;  %v3927_v26 = vmul.f32 %v3679_v35, %v8499_v63  ;;  %v4044_v23 = vpack.c.bf16 %v3916_v27, %v3916_v27  ;;  %v4045_v55 = vpack.c.bf16 %v3917_v5, %v3917_v5 }
 0x4a2   : > { %v3928_v59 = vmul.f32 %v3680_v6, %v8500_v34  ;;  %v3929_v48 = vmul.f32 %v3681_v9, %v8501_v25  ;;  %v3930_v24 = vmul.f32 %v3682_v7, %v8502_v13  ;;  %v4043_v12 = vpack.c.bf16 %v3915_v10, %v3915_v10  ;;  %v8503_v25 = vld [vmem:[#allocation58_spill] sm:$0xff] }
 0x4a3   : > { %v4046_v47 = vpack.c.bf16 %v3918_v60, %v3918_v60  ;;  %v4047_v0 = vpack.c.bf16 %v3919_v45, %v3919_v45  ;;  %v4052_v56 = vpack.c.bf16 %v3924_v54, %v3924_v54  ;;  %v4053_v15 = vpack.c.bf16 %v3925_v19, %v3925_v19 }
 0x4a4   : > { %v4048_v44 = vpack.c.bf16 %v3920_v58, %v3920_v58  ;;  %v4049_v14 = vpack.c.bf16 %v3921_v52, %v3921_v52  ;;  %v4050_v20 = vpack.c.bf16 %v3922_v28, %v3922_v28  ;;  %v4054_v53 = vpack.c.bf16 %v3926_v1, %v3926_v1 }
 0x4a5   : > { %v4051_v40 = vpack.c.bf16 %v3923_v39, %v3923_v39  ;;  %v4055_v50 = vpack.c.bf16 %v3927_v26, %v3927_v26  ;;  %v4316_v37 = vunpack.c.l.b16 %v4044_v23  ;;  %v4317_v29 = vunpack.c.l.b16 %v4045_v55 }
 0x4a6   : > { %v4056_v18 = vpack.c.bf16 %v3928_v59, %v3928_v59  ;;  %v4057_v31 = vpack.c.bf16 %v3929_v48, %v3929_v48  ;;  %v4058_v21 = vpack.c.bf16 %v3930_v24, %v3930_v24  ;;  %v4315_v3 = vunpack.c.l.b16 %v4043_v12 }
 0x4a7   : > { %v4318_v33 = vunpack.c.l.b16 %v4046_v47  ;;  %v4319_v36 = vunpack.c.l.b16 %v4047_v0  ;;  %v4324_v41 = vunpack.c.l.b16 %v4052_v56  ;;  %v4325_v22 = vunpack.c.l.b16 %v4053_v15 }
 0x4a8   : > { %v4320_v35 = vunpack.c.l.b16 %v4048_v44  ;;  %v4321_v32 = vunpack.c.l.b16 %v4049_v14  ;;  %v4322_v27 = vunpack.c.l.b16 %v4050_v20  ;;  %v4326_v51 = vunpack.c.l.b16 %v4054_v53 }
 0x4a9   : > { %v4323_v5 = vunpack.c.l.b16 %v4051_v40  ;;  %v4327_v6 = vunpack.c.l.b16 %v4055_v50  ;;  %v4479_v9 = vrot.slane %v4316_v37, 7  ;;  %v4481_v7 = vrot.slane %v4317_v29, 6 }
 0x4aa   : > { %v4328_v30 = vunpack.c.l.b16 %v4056_v18  ;;  %v4329_v10 = vunpack.c.l.b16 %v4057_v31  ;;  %v4330_v16 = vunpack.c.l.b16 %v4058_v21  ;;  %v4493_v60 = vrot.slane %v4324_v41, 7  ;;  %v8504_v18 = vld [vmem:[#allocation124_spill] sm:$0xff]  ;;  %v8505_v21 = vld [vmem:[#allocation5_spill] sm:$0xff]  ;;  %v8506_v41 = vld [vmem:[#allocation123_spill] sm:$0xff] }
 0x4ab   : > { %v4480_v17 = vsel %vm3268_vm0, %v4479_v9, %v4315_v3  ;;  %v4483_v45 = vrot.slane %v4318_v33, 5  ;;  %v4485_v43 = vrot.slane %v4319_v36, 4  ;;  %v4495_v54 = vrot.slane %v4325_v22, 6  ;;  %v8510_v9 = vld [vmem:[#allocation27_spill] sm:$0xff] }
 0x4ac   : > { %v4482_v61 = vsel %vm3270_vm1, %v4481_v7, %v4480_v17  ;;  %v4487_v19 = vrot.slane %v4320_v35, 3  ;;  %v4494_v62 = vsel %vm3268_vm0, %v4493_v60, %v4323_v5  ;;  %v4497_v58 = vrot.slane %v4326_v51, 5  ;;  %v8507_v35 = vld [vmem:[#allocation9_spill] sm:$0xff]  ;;  %v8509_v5 = vld [vmem:[#allocation104_spill] sm:$0xff]  ;;  %v8513_v17 = vld [vmem:[#allocation122_spill] sm:$0xff] }
 0x4ad   : > { %v4484_v11 = vsel %vm3272_vm2, %v4483_v45, %v4482_v61  ;;  %v4489_v52 = vrot.slane %v4321_v32, 2  ;;  %v4496_v57 = vsel %vm3270_vm1, %v4495_v54, %v4494_v62  ;;  %v4499_v28 = vrot.slane %v4327_v6, 4  ;;  %v8515_v61 = vld [vmem:[#allocation44_spill] sm:$0xff]  ;;  %v8516_v62 = vld [vmem:[#allocation51_spill] sm:$0xff] }
 0x4ae   : > { %v4486_v42 = vsel %vm3274_vm3, %v4485_v43, %v4484_v11  ;;  %v4491_v1 = vrot.slane %v4322_v27, 1  ;;  %v4498_v46 = vsel %vm3272_vm2, %v4497_v58, %v4496_v57  ;;  %v4501_v39 = vrot.slane %v4328_v30, 3  ;;  %v8508_v27 = vld [vmem:[#allocation12_spill] sm:$0xff]  ;;  %v8511_v30 = vld [vmem:[#allocation34_spill] sm:$0xff]  ;;  %v8517_v11 = vld [vmem:[#allocation91_spill] sm:$0xff] }
 0x4af   : > { %v4488_v63 = vsel %vm3276_vm4, %v4487_v19, %v4486_v42  ;;  %v4500_v26 = vsel %vm3274_vm3, %v4499_v28, %v4498_v46  ;;  %v4503_v23 = vrot.slane %v4329_v10, 2  ;;  %v4505_v55 = vrot.slane %v4330_v16, 1  ;;  %v8512_v16 = vld [vmem:[#allocation106_spill] sm:$0xff]  ;;  %v8514_v43 = vld [vmem:[#allocation24_spill] sm:$0xff]  ;;  %v8518_v42 = vld [vmem:[#allocation93_spill] sm:$0xff] }
 0x4b0   : > { %v4490_v34 = vsel %vm3278_vm5, %v4489_v52, %v4488_v63  ;;  %v4502_v59 = vsel %vm3276_vm4, %v4501_v39, %v4500_v26  ;;  %v3655_v48 = vrot.slane %v8503_v25, 1  ;;  %v3656_v13 = vrot.slane %v8503_v25, 2  ;;  %v8519_v46 = vld [vmem:[#allocation69_spill] sm:$0xff] }
 0x4b1   : > { %v4504_v24 = vsel %vm3278_vm5, %v4503_v23, %v4502_v59  ;;  %v3657_v12 = vrot.slane %v8503_v25, 3  ;;  %v3658_v47 = vrot.slane %v8503_v25, 4  ;;  %v3659_v0 = vrot.slane %v8503_v25, 5 }
 0x4b2   : > { %v4492_v56 = vsel %vm3280_vm6, %v4491_v1, %v4490_v34  ;;  %v4506_v15 = vsel %vm3280_vm6, %v4505_v55, %v4504_v24  ;;  %v3662_v44 = vrot.slane %v7690_v38, 1  ;;  %v3663_v14 = vrot.slane %v7690_v38, 2 }
 0x4b3   : > { %v4622_v20 = vpack.c.b16 %v4506_v15, %v4492_v56  ;;  %v3660_v53 = vrot.slane %v8503_v25, 6  ;;  %v3661_v40 = vrot.slane %v8503_v25, 7  ;;  %v3664_v50 = vrot.slane %v7690_v38, 3 }
 0x4b4   : > { %v3665_v37 = vrot.slane %v7690_v38, 4  ;;  %v3666_v29 = vrot.slane %v7690_v38, 5  ;;  %v3900_v31 = vmul.f32 %v3655_v48, %v8504_v18  ;;  %v3901_v3 = vmul.f32 %v3656_v13, %v8505_v21 }
 0x4b5   : > { %4639 = vmatpush.bf16.xpose.msrb.mxu1 %v4622_v20  ;;  %v3667_v33 = vrot.slane %v7690_v38, 6  ;;  %v3668_v36 = vrot.slane %v7690_v38, 7  ;;  %v3899_v22 = vmul.f32 %v8503_v25, %v8506_v41  ;;  %v3902_v32 = vmul.f32 %v3657_v12, %v8507_v35 }
 0x4b6   : > { %v3903_v51 = vmul.f32 %v3658_v47, %v8508_v27  ;;  %v3904_v6 = vmul.f32 %v3659_v0, %v8509_v5  ;;  %v3908_v7 = vmul.f32 %v3662_v44, %v8510_v9  ;;  %v3909_v10 = vmul.f32 %v3663_v14, %v8511_v30 }
 0x4b7   : > { %v3905_v60 = vmul.f32 %v3660_v53, %v8512_v16  ;;  %v3906_v45 = vmul.f32 %v3661_v40, %v8513_v17  ;;  %v3907_v54 = vmul.f32 %v7690_v38, %v8514_v43  ;;  %v3910_v19 = vmul.f32 %v3664_v50, %v8515_v61 }
 0x4b8   : > { %v3911_v58 = vmul.f32 %v3665_v37, %v8516_v62  ;;  %v3912_v52 = vmul.f32 %v3666_v29, %v8517_v11  ;;  %v4028_v57 = vpack.c.bf16 %v3900_v31, %v3900_v31  ;;  %v4029_v28 = vpack.c.bf16 %v3901_v3, %v3901_v3 }
 0x4b9   : > { %v3913_v1 = vmul.f32 %v3667_v33, %v8518_v42  ;;  %v3914_v39 = vmul.f32 %v3668_v36, %v8519_v46  ;;  %v4027_v63 = vpack.c.bf16 %v3899_v22, %v3899_v22  ;;  %v4030_v26 = vpack.c.bf16 %v3902_v32, %v3902_v32 }
 0x4ba   : > { %v4031_v23 = vpack.c.bf16 %v3903_v51, %v3903_v51  ;;  %v4032_v55 = vpack.c.bf16 %v3904_v6, %v3904_v6  ;;  %v4036_v34 = vpack.c.bf16 %v3908_v7, %v3908_v7  ;;  %v4037_v59 = vpack.c.bf16 %v3909_v10, %v3909_v10 }
 0x4bb   : > { %v4033_v25 = vpack.c.bf16 %v3905_v60, %v3905_v60  ;;  %v4034_v38 = vpack.c.bf16 %v3906_v45, %v3906_v45  ;;  %v4035_v48 = vpack.c.bf16 %v3907_v54, %v3907_v54  ;;  %v4038_v13 = vpack.c.bf16 %v3910_v19, %v3910_v19 }
 0x4bc   : > { %v4039_v24 = vpack.c.bf16 %v3911_v58, %v3911_v58  ;;  %v4040_v12 = vpack.c.bf16 %v3912_v52, %v3912_v52  ;;  %v4300_v47 = vunpack.c.l.b16 %v4028_v57  ;;  %v4301_v0 = vunpack.c.l.b16 %v4029_v28 }
 0x4bd   : > { %v4041_v56 = vpack.c.bf16 %v3913_v1, %v3913_v1  ;;  %v4042_v15 = vpack.c.bf16 %v3914_v39, %v3914_v39  ;;  %v4299_v44 = vunpack.c.l.b16 %v4027_v63  ;;  %v4302_v14 = vunpack.c.l.b16 %v4030_v26  ;;  %v8520_v26 = vld [vmem:[#allocation28_spill] sm:$0xff] }
 0x4be   : > { %v4303_v20 = vunpack.c.l.b16 %v4031_v23  ;;  %v4304_v53 = vunpack.c.l.b16 %v4032_v55  ;;  %v4308_v40 = vunpack.c.l.b16 %v4036_v34  ;;  %v4309_v50 = vunpack.c.l.b16 %v4037_v59 }
 0x4bf   : > { %v4305_v37 = vunpack.c.l.b16 %v4033_v25  ;;  %v4306_v29 = vunpack.c.l.b16 %v4034_v38  ;;  %v4310_v18 = vunpack.c.l.b16 %v4038_v13  ;;  %v4451_v31 = vrot.slane %v4300_v47, 7  ;;  %v8521_v13 = vld [vmem:[#allocation79_spill] sm:$0xff] }
 0x4c0   : > { %v4307_v21 = vunpack.c.l.b16 %v4035_v48  ;;  %v4311_v3 = vunpack.c.l.b16 %v4039_v24  ;;  %v4312_v33 = vunpack.c.l.b16 %v4040_v12  ;;  %v4453_v36 = vrot.slane %v4301_v0, 6  ;;  %v8522_v12 = vld [vmem:[#allocation82_spill] sm:$0xff] }
 0x4c1   : > { %v4313_v41 = vunpack.c.l.b16 %v4041_v56  ;;  %v4452_v22 = vsel %vm3268_vm0, %v4451_v31, %v4299_v44  ;;  %v4455_v35 = vrot.slane %v4302_v14, 5  ;;  %v4465_v32 = vrot.slane %v4308_v40, 7  ;;  %v8524_v40 = vld [vmem:[#allocation114_spill] sm:$0xff] }
 0x4c2   : > { %v4314_v27 = vunpack.c.l.b16 %v4042_v15  ;;  %v4454_v51 = vsel %vm3270_vm1, %v4453_v36, %v4452_v22  ;;  %v4457_v5 = vrot.slane %v4303_v20, 4  ;;  %v4467_v6 = vrot.slane %v4309_v50, 6  ;;  %v8523_v20 = vld [vmem:[#allocation87_spill] sm:$0xff]  ;;  %v8527_v31 = vld [vmem:[#allocation70_spill] sm:$0xff] }
 0x4c3   : > { %v4456_v9 = vsel %vm3272_vm2, %v4455_v35, %v4454_v51  ;;  %v4459_v7 = vrot.slane %v4304_v53, 3  ;;  %v4466_v30 = vsel %vm3268_vm0, %v4465_v32, %v4307_v21  ;;  %v4469_v10 = vrot.slane %v4310_v18, 5  ;;  %v8529_v36 = vld [vmem:[#allocation66_spill] sm:$0xff]  ;;  %v8532_v51 = vld [vmem:[#allocation128_spill] sm:$0xff] }
 0x4c4   : > { %v4458_v16 = vsel %vm3274_vm3, %v4457_v5, %v4456_v9  ;;  %v4461_v60 = vrot.slane %v4305_v37, 2  ;;  %v4468_v17 = vsel %vm3270_vm1, %v4467_v6, %v4466_v30  ;;  %v4471_v45 = vrot.slane %v4311_v3, 4  ;;  %v8528_v3 = vld [vmem:[#allocation98_spill] sm:$0xff] }
 0x4c5   : > { %v4460_v43 = vsel %vm3276_vm4, %v4459_v7, %v4458_v16  ;;  %v4470_v54 = vsel %vm3272_vm2, %v4469_v10, %v4468_v17  ;;  %v4473_v61 = vrot.slane %v4312_v33, 3  ;;  %v4475_v19 = vrot.slane %v4313_v41, 2  ;;  %v8530_v22 = vld [vmem:[#allocation74_spill] sm:$0xff]  ;;  %v8533_v7 = vld [vmem:[#allocation108_spill] sm:$0xff]  ;;  %v8534_v10 = vld [vmem:[#allocation129_spill] sm:$0xff] }
 0x4c6   : > { %v4462_v62 = vsel %vm3278_vm5, %v4461_v60, %v4460_v43  ;;  %v4472_v58 = vsel %vm3274_vm3, %v4471_v45, %v4470_v54  ;;  %v3641_v11 = vrot.slane %v7701_v8, 1  ;;  %v3642_v52 = vrot.slane %v7701_v8, 2  ;;  %v8531_v32 = vld [vmem:[#allocation102_spill] sm:$0xff]  ;;  %v8535_v60 = vld [vmem:[#allocation32_spill] sm:$0xff]  ;;  %v8537_v43 = vld [vmem:[#allocation29_spill] sm:$0xff] }
 0x4c7   : > { %v4463_v57 = vrot.slane %v4306_v29, 1  ;;  %v4474_v28 = vsel %vm3276_vm4, %v4473_v61, %v4472_v58  ;;  %v4477_v42 = vrot.slane %v4314_v27, 1  ;;  %v3643_v1 = vrot.slane %v7701_v8, 3  ;;  %v8526_v29 = vld [vmem:[#allocation115_spill] sm:$0xff] }
 0x4c8   : > { %v4476_v46 = vsel %vm3278_vm5, %v4475_v19, %v4474_v28  ;;  %v3644_v39 = vrot.slane %v7701_v8, 4  ;;  %v3645_v63 = vrot.slane %v7701_v8, 5  ;;  %v3649_v23 = vrot.slane %v8520_v26, 2 }
 0x4c9   : > { %v4464_v55 = vsel %vm3280_vm6, %v4463_v57, %v4462_v62  ;;  %v4478_v34 = vsel %vm3280_vm6, %v4477_v42, %v4476_v46  ;;  %v3646_v59 = vrot.slane %v7701_v8, 6  ;;  %v3647_v25 = vrot.slane %v7701_v8, 7 }
 0x4ca   : > { %v4621_v38 = vpack.c.b16 %v4478_v34, %v4464_v55  ;;  %v3650_v48 = vrot.slane %v8520_v26, 3  ;;  %v3884_v24 = vmul.f32 %v3641_v11, %v8521_v13  ;;  %v3885_v47 = vmul.f32 %v3642_v52, %v8522_v12 }
 0x4cb   : > { %v3634_v0 = vrot.slane %v7714_v4, 1  ;;  %v3651_v56 = vrot.slane %v8520_v26, 4  ;;  %v3652_v15 = vrot.slane %v8520_v26, 5  ;;  %v3653_v44 = vrot.slane %v8520_v26, 6 }
 0x4cc   : > { %4640 = vmatpush.bf16.xpose.msrb.mxu1 %v4621_v38  ;;  %v3654_v14 = vrot.slane %v8520_v26, 7  ;;  %v3886_v53 = vmul.f32 %v3643_v1, %v8523_v20  ;;  %v8525_v50 = vrot.slane %v8520_v26, 1  ;;  %v3893_v18 = vmul.f32 %v3649_v23, %v8526_v29 }
 0x4cd   : > { %v3883_v21 = vmul.f32 %v7701_v8, %v8527_v31  ;;  %v3887_v33 = vmul.f32 %v3644_v39, %v8528_v3  ;;  %v3888_v41 = vmul.f32 %v3645_v63, %v8529_v36  ;;  %v3889_v35 = vmul.f32 %v3646_v59, %v8530_v22  ;;  %v8536_v8 = vld [vmem:[#allocation46_spill] sm:$0xff] }
 0x4ce   : > { %v3892_v37 = vmul.f32 %v8525_v50, %v8524_v40  ;;  %v3890_v27 = vmul.f32 %v3647_v25, %v8531_v32  ;;  %v3894_v5 = vmul.f32 %v3650_v48, %v8532_v51  ;;  %v4012_v6 = vpack.c.bf16 %v3884_v24, %v3884_v24 }
 0x4cf   : > { %v4013_v9 = vpack.c.bf16 %v3885_v47, %v3885_v47  ;;  %v3891_v30 = vmul.f32 %v8520_v26, %v8533_v7  ;;  %v3895_v16 = vmul.f32 %v3651_v56, %v8534_v10  ;;  %v3896_v17 = vmul.f32 %v3652_v15, %v8535_v60 }
 0x4d0   : > { %v3897_v45 = vmul.f32 %v3653_v44, %v8536_v8  ;;  %v3898_v54 = vmul.f32 %v3654_v14, %v8537_v43  ;;  %v4014_v61 = vpack.c.bf16 %v3886_v53, %v3886_v53  ;;  %v4020_v19 = vpack.c.bf16 %v3892_v37, %v3892_v37 }
 0x4d1   : > { %v4021_v62 = vpack.c.bf16 %v3893_v18, %v3893_v18  ;;  %v4011_v58 = vpack.c.bf16 %v3883_v21, %v3883_v21  ;;  %v4015_v11 = vpack.c.bf16 %v3887_v33, %v3887_v33  ;;  %v4016_v52 = vpack.c.bf16 %v3888_v41, %v3888_v41 }
 0x4d2   : > { %v4017_v57 = vpack.c.bf16 %v3889_v35, %v3889_v35  ;;  %v4018_v28 = vpack.c.bf16 %v3890_v27, %v3890_v27  ;;  %v4022_v42 = vpack.c.bf16 %v3894_v5, %v3894_v5  ;;  %v4284_v1 = vunpack.c.l.b16 %v4012_v6 }
 0x4d3   : > { %v4285_v46 = vunpack.c.l.b16 %v4013_v9  ;;  %v4019_v39 = vpack.c.bf16 %v3891_v30, %v3891_v30  ;;  %v4023_v63 = vpack.c.bf16 %v3895_v16, %v3895_v16  ;;  %v4024_v26 = vpack.c.bf16 %v3896_v17, %v3896_v17 }
 0x4d4   : > { %v4025_v23 = vpack.c.bf16 %v3897_v45, %v3897_v45  ;;  %v4026_v55 = vpack.c.bf16 %v3898_v54, %v3898_v54  ;;  %v4286_v34 = vunpack.c.l.b16 %v4014_v61  ;;  %v4292_v59 = vunpack.c.l.b16 %v4020_v19 }
 0x4d5   : > { %v4293_v25 = vunpack.c.l.b16 %v4021_v62  ;;  %v4283_v38 = vunpack.c.l.b16 %v4011_v58  ;;  %v4287_v48 = vunpack.c.l.b16 %v4015_v11  ;;  %v4288_v13 = vunpack.c.l.b16 %v4016_v52 }
 0x4d6   : > { %v4289_v24 = vunpack.c.l.b16 %v4017_v57  ;;  %v4290_v12 = vunpack.c.l.b16 %v4018_v28  ;;  %v4294_v47 = vunpack.c.l.b16 %v4022_v42  ;;  %v4423_v56 = vrot.slane %v4284_v1, 7  ;;  %v8538_v57 = vld [vmem:[#allocation7_spill] sm:$0xff] }
 0x4d7   : > { %v4425_v15 = vrot.slane %v4285_v46, 6  ;;  %v4291_v44 = vunpack.c.l.b16 %v4019_v39  ;;  %v4295_v14 = vunpack.c.l.b16 %v4023_v63  ;;  %v4296_v20 = vunpack.c.l.b16 %v4024_v26  ;;  %v8539_v39 = vld [vmem:[#allocation11_spill] sm:$0xff] }
 0x4d8   : > { %v4297_v53 = vunpack.c.l.b16 %v4025_v23  ;;  %v4424_v40 = vsel %vm3268_vm0, %v4423_v56, %v4283_v38  ;;  %v4427_v50 = vrot.slane %v4286_v34, 5  ;;  %v4437_v37 = vrot.slane %v4292_v59, 7  ;;  %v8541_v59 = vld [vmem:[#allocation41_spill] sm:$0xff]  ;;  %v8542_v38 = vld [vmem:[#allocation4_spill] sm:$0xff] }
 0x4d9   : > { %v4439_v29 = vrot.slane %v4293_v25, 6  ;;  %v4298_v18 = vunpack.c.l.b16 %v4026_v55  ;;  %v4426_v31 = vsel %vm3270_vm1, %v4425_v15, %v4424_v40  ;;  %v4429_v21 = vrot.slane %v4287_v48, 4  ;;  %v8540_v55 = vld [vmem:[#allocation16_spill] sm:$0xff]  ;;  %v8543_v48 = vld [vmem:[#allocation17_spill] sm:$0xff]  ;;  %v8546_v15 = vld [vmem:[#allocation42_spill] sm:$0xff] }
 0x4da   : > { %v4431_v3 = vrot.slane %v4288_v13, 3  ;;  %v4428_v33 = vsel %vm3272_vm2, %v4427_v50, %v4426_v31  ;;  %v4433_v36 = vrot.slane %v4289_v24, 2  ;;  %v4438_v41 = vsel %vm3268_vm0, %v4437_v37, %v4291_v44  ;;  %v8544_v24 = vld [vmem:[#allocation22_spill] sm:$0xff]  ;;  %v8549_v37 = vld [vmem:[#allocation33_spill] sm:$0xff]  ;;  %v8551_v31 = vld [vmem:[#allocation56_spill] sm:$0xff] }
 0x4db   : > { %v4441_v22 = vrot.slane %v4294_v47, 5  ;;  %v4430_v35 = vsel %vm3274_vm3, %v4429_v21, %v4428_v33  ;;  %v4435_v32 = vrot.slane %v4290_v12, 1  ;;  %v4440_v27 = vsel %vm3270_vm1, %v4439_v29, %v4438_v41  ;;  %v8545_v47 = vld [vmem:[#allocation45_spill] sm:$0xff] }
 0x4dc   : > { %v4443_v51 = vrot.slane %v4295_v14, 4  ;;  %v4432_v5 = vsel %vm3276_vm4, %v4431_v3, %v4430_v35  ;;  %v4445_v9 = vrot.slane %v4296_v20, 3  ;;  %v4447_v7 = vrot.slane %v4297_v53, 2  ;;  %v8547_v14 = vld [vmem:[#allocation49_spill] sm:$0xff]  ;;  %v8548_v53 = vld [vmem:[#allocation52_spill] sm:$0xff]  ;;  %v8552_v3 = vld [vmem:[#allocation6_spill] sm:$0xff] }
 0x4dd   : > { %v4442_v6 = vsel %vm3272_vm2, %v4441_v22, %v4440_v27  ;;  %v4434_v30 = vsel %vm3278_vm5, %v4433_v36, %v4432_v5  ;;  %v4449_v16 = vrot.slane %v4298_v18, 1  ;;  %v3628_v60 = vrot.slane %v7706_v49, 2  ;;  %v8550_v29 = vld [vmem:[#allocation57_spill] sm:$0xff]  ;;  %v8553_v36 = vld [vmem:[#allocation10_spill] sm:$0xff] }
 0x4de   : > { %v4444_v10 = vsel %vm3274_vm3, %v4443_v51, %v4442_v6  ;;  %v4436_v17 = vsel %vm3280_vm6, %v4435_v32, %v4434_v30  ;;  %v3629_v45 = vrot.slane %v7706_v49, 3  ;;  %v3630_v43 = vrot.slane %v7706_v49, 4 }
 0x4df   : > { %v4446_v8 = vsel %vm3276_vm4, %v4445_v9, %v4444_v10  ;;  %v3631_v61 = vrot.slane %v7706_v49, 5  ;;  %v3632_v19 = vrot.slane %v7706_v49, 6  ;;  %v3635_v62 = vrot.slane %v7714_v4, 2 }
 0x4e0   : > { %v4448_v54 = vsel %vm3278_vm5, %v4447_v7, %v4446_v8  ;;  %v3633_v11 = vrot.slane %v7706_v49, 7  ;;  %v3636_v52 = vrot.slane %v7714_v4, 3  ;;  %v3868_v28 = vmul.f32 %v3627_v2, %v8538_v57 }
 0x4e1   : > { %v4450_v58 = vsel %vm3280_vm6, %v4449_v16, %v4448_v54  ;;  %v3637_v1 = vrot.slane %v7714_v4, 4  ;;  %v3638_v46 = vrot.slane %v7714_v4, 5  ;;  %v3869_v63 = vmul.f32 %v3628_v60, %v8539_v39 }
 0x4e2   : > { %v4620_v42 = vpack.c.b16 %v4450_v58, %v4436_v17  ;;  %v3639_v26 = vrot.slane %v7714_v4, 6  ;;  %v3640_v23 = vrot.slane %v7714_v4, 7  ;;  %v3870_v34 = vmul.f32 %v3629_v45, %v8540_v55 }
 0x4e3   : > { %v3876_v25 = vmul.f32 %v3634_v0, %v8541_v59  ;;  %v3867_v2 = vmul.f32 %v7706_v49, %v8542_v38  ;;  %v3871_v13 = vmul.f32 %v3630_v43, %v8543_v48  ;;  %v3872_v12 = vmul.f32 %v3631_v61, %v8544_v24 }
 0x4e4   : > { %4641 = vmatpush.bf16.xpose.msrb.mxu1 %v4620_v42  ;;  %v3877_v56 = vmul.f32 %v3635_v62, %v8545_v47  ;;  %v3873_v44 = vmul.f32 %v3632_v19, %v8546_v15  ;;  %v3874_v20 = vmul.f32 %v3633_v11, %v8547_v14  ;;  %v3878_v40 = vmul.f32 %v3636_v52, %v8548_v53 }
 0x4e5   : > { %v3996_v50 = vpack.c.bf16 %v3868_v28, %v3868_v28  ;;  %v3875_v0 = vmul.f32 %v7714_v4, %v8549_v37  ;;  %v3879_v18 = vmul.f32 %v3637_v1, %v8550_v29  ;;  %v3880_v49 = vmul.f32 %v3638_v46, %v8551_v31 }
 0x4e6   : > { %v3997_v21 = vpack.c.bf16 %v3869_v63, %v3869_v63  ;;  %v3881_v33 = vmul.f32 %v3639_v26, %v8552_v3  ;;  %v3882_v41 = vmul.f32 %v3640_v23, %v8553_v36  ;;  %v3998_v22 = vpack.c.bf16 %v3870_v34, %v3870_v34  ;;  %v5254_v3 = vld [vmem:[#allocation2 + $0x8] sm:$0xff] }
 0x4e7   : > { %v4004_v35 = vpack.c.bf16 %v3876_v25, %v3876_v25  ;;  %v3995_v32 = vpack.c.bf16 %v3867_v2, %v3867_v2  ;;  %v3999_v27 = vpack.c.bf16 %v3871_v13, %v3871_v13  ;;  %v4000_v51 = vpack.c.bf16 %v3872_v12, %v3872_v12 }
 0x4e8   : > { %v4005_v5 = vpack.c.bf16 %v3877_v56, %v3877_v56  ;;  %v4001_v6 = vpack.c.bf16 %v3873_v44, %v3873_v44  ;;  %v4002_v9 = vpack.c.bf16 %v3874_v20, %v3874_v20  ;;  %v4006_v7 = vpack.c.bf16 %v3878_v40, %v3878_v40 }
 0x4e9   : > { %v4268_v30 = vunpack.c.l.b16 %v3996_v50  ;;  %v4003_v4 = vpack.c.bf16 %v3875_v0, %v3875_v0  ;;  %v4007_v10 = vpack.c.bf16 %v3879_v18, %v3879_v18  ;;  %v4008_v16 = vpack.c.bf16 %v3880_v49, %v3880_v49 }
 0x4ea   : > { %v4269_v60 = vunpack.c.l.b16 %v3997_v21  ;;  %v4009_v17 = vpack.c.bf16 %v3881_v33, %v3881_v33  ;;  %v4010_v8 = vpack.c.bf16 %v3882_v41, %v3882_v41  ;;  %v4270_v45 = vunpack.c.l.b16 %v3998_v22  ;;  %v5253_v21 = vld [vmem:[#allocation2] sm:$0xff] }
 0x4eb   : > { %v4276_v43 = vunpack.c.l.b16 %v4004_v35  ;;  %v4267_v54 = vunpack.c.l.b16 %v3995_v32  ;;  %v4271_v61 = vunpack.c.l.b16 %v3999_v27  ;;  %v4272_v19 = vunpack.c.l.b16 %v4000_v51 }
 0x4ec   : > { %v4277_v62 = vunpack.c.l.b16 %v4005_v5  ;;  %v4273_v58 = vunpack.c.l.b16 %v4001_v6  ;;  %v4278_v11 = vunpack.c.l.b16 %v4006_v7  ;;  %v4395_v52 = vrot.slane %v4268_v30, 7 }
 0x4ed   : > { %v4397_v57 = vrot.slane %v4269_v60, 6  ;;  %v4274_v28 = vunpack.c.l.b16 %v4002_v9  ;;  %v4275_v42 = vunpack.c.l.b16 %v4003_v4  ;;  %v4279_v1 = vunpack.c.l.b16 %v4007_v10 }
 0x4ee   : > { %v4280_v46 = vunpack.c.l.b16 %v4008_v16  ;;  %v4396_v39 = vsel %vm3268_vm0, %v4395_v52, %v4267_v54  ;;  %v4399_v63 = vrot.slane %v4270_v45, 5  ;;  %v4409_v26 = vrot.slane %v4276_v43, 7 }
 0x4ef   : > { %v4411_v23 = vrot.slane %v4277_v62, 6  ;;  %v4281_v55 = vunpack.c.l.b16 %v4009_v17  ;;  %v4282_v34 = vunpack.c.l.b16 %v4010_v8  ;;  %v4398_v59 = vsel %vm3270_vm1, %v4397_v57, %v4396_v39 }
 0x4f0   : > { %v4401_v25 = vrot.slane %v4271_v61, 4  ;;  %v4400_v38 = vsel %vm3272_vm2, %v4399_v63, %v4398_v59  ;;  %v4403_v2 = vrot.slane %v4272_v19, 3  ;;  %v4410_v48 = vsel %vm3268_vm0, %v4409_v26, %v4275_v42 }
 0x4f1   : > { %v4413_v13 = vrot.slane %v4278_v11, 5  ;;  %v4405_v12 = vrot.slane %v4273_v58, 2  ;;  %v4412_v47 = vsel %vm3270_vm1, %v4411_v23, %v4410_v48  ;;  %v4415_v56 = vrot.slane %v4279_v1, 4 }
 0x4f2   : > { %v4402_v24 = vsel %vm3274_vm3, %v4401_v25, %v4400_v38  ;;  %v4417_v14 = vrot.slane %v4280_v46, 3  ;;  %v4419_v40 = vrot.slane %v4281_v55, 2  ;;  %v4407_v50 = vrot.slane %v4274_v28, 1 }
 0x4f3   : > { %v4404_v15 = vsel %vm3276_vm4, %v4403_v2, %v4402_v24  ;;  %v4414_v44 = vsel %vm3272_vm2, %v4413_v13, %v4412_v47  ;;  %v4421_v0 = vrot.slane %v4282_v34, 1 }
 0x4f4   : > { %v4406_v20 = vsel %vm3278_vm5, %v4405_v12, %v4404_v15  ;;  %v4416_v53 = vsel %vm3274_vm3, %v4415_v56, %v4414_v44 }
 0x4f5   : > { %v4418_v37 = vsel %vm3276_vm4, %v4417_v14, %v4416_v53  ;;  %v4408_v18 = vsel %vm3280_vm6, %v4407_v50, %v4406_v20 }
 0x4f6   : > { %v4420_v29 = vsel %vm3278_vm5, %v4419_v40, %v4418_v37 }
 0x4f7   : > { %v4422_v31 = vsel %vm3280_vm6, %v4421_v0, %v4420_v29 }
 0x4f8   : > { %v4619_v49 = vpack.c.b16 %v4422_v31, %v4408_v18 }
 0x4fa   : > { %4642 = vmatpush.bf16.xpose.msrb.mxu1 %v4619_v49 }
 0x501   : > { %4643 = vmatmul.bf16.vlgmr.msrb.gmra.mxu1 %v5253_v21 }
 0x511   : > { %4648 = vmatmul.bf16.gmra.mxu1 %v5254_v3 }
 0x57e   : > { %v4644_v33 = vpop.f32.mrf.mxu1 }
 0x57f   : > { %v4654_v36 = vmax.f32 %v4644_v33, 0.0 }
 0x581   : > { %4658 = vst [vmem:[%s8073_s4] sm:$0xff] %v4654_v36 }
 0x586   : > { %v4646_v41 = vpop.f32.mrf.mxu1 }
 0x587   : > { %v4655_v22 = vmax.f32 %v4646_v41, 0.0 }
 0x589   : > { %4659 = vst [vmem:[%s8073_s4 + $0x8] sm:$0xff] %v4655_v22 }
 0x58e   : > { %v4649_v35 = vpop.f32.mrf.mxu1 }
 0x58f   : > { %v4656_v32 = vmax.f32 %v4649_v35, 0.0 }
 0x591   : > { %4660 = vst [vmem:[%s8073_s4 + $0x10] sm:$0xff] %v4656_v32 }
 0x596   : > { %v4651_v27 = vpop.f32.mrf.mxu1 }
 0x597   : > { %v4657_v51 = vmax.f32 %v4651_v27, 0.0 }
 0x599   : > { %4661 = vst [vmem:[%s8073_s4 + $0x18] sm:$0xff] %v4657_v51 }
 0x59a PF: > { %s14_s15 = sadd.s32 1, %s5681_s15  }
 0x59b   : > { %p11_p9 = scmp.ge.s32.totalorder %s14_s15, 4  }
 0x59d   :  { %13 = sbr.rel (!%p11_p9) target bundleno = 1 (0x1), region = 78 }

</bundles_post_ra>
